<compile_context>
chip_gen: v7x
topology: tpu7x:2x2x1
jax: 0.10.0
libtpu: 0.0.40
codegen_flags: <defaults>
</compile_context>

<pallas_src>
import functools
import math

import jax
import jax.numpy as jnp
from jax import lax
from jax.experimental import pallas as pl
from jax.experimental.pallas import tpu as pltpu


# ---------------------------------------------------------------------------
# tiling helpers
# ---------------------------------------------------------------------------
def _row_tile(m, cap=256):
    if m <= cap:
        return m
    for t in range(cap, 7, -8):
        if m % t == 0:
            return t
    return m


def _lane_tile(n, cap=512):
    for t in (cap, 512, 256, 128):
        if t <= n and n % t == 0:
            return t
    return n


def _heads_per_block(n_heads, n_kv_heads, head_dim, max_lanes=512):
    # widest head block such that Q/K and K/V boundaries stay block-aligned
    for t in (4, 2, 1):
        if n_heads % t == 0 and n_kv_heads % t == 0 and t * head_dim <= max_lanes:
            return t
    return 1


# ---------------------------------------------------------------------------
# Kernel 1: fused RMSNorm + concatenated QKV projection + rotary embedding
#   grid = (M tiles, head-column tiles); one N tile == heads_per_block heads
#   (256-512 lanes).  The normalized activations are computed once per M tile
#   (j == 0) into a bf16 VMEM scratch and reused for every head tile.
# ---------------------------------------------------------------------------
def _rmsnorm_qkv_rope_kernel(x_ref, nw_ref, w_ref, cos_ref, sin_ref,
                             o_ref, xn_ref, *, eps, n_rope_blocks,
                             head_dim, heads_per_block):
    j = pl.program_id(1)

    @pl.when(j == 0)
    def _():
        x = x_ref[...].astype(jnp.float32)
        var = jnp.mean(x * x, axis=-1, keepdims=True)
        xn_ref[...] = ((x * lax.rsqrt(var + eps)) * nw_ref[...]).astype(xn_ref.dtype)

    # bf16 x bf16 -> fp32 on the MXU; heads_per_block heads per tile
    y = jnp.dot(xn_ref[...], w_ref[...], preferred_element_type=jnp.float32)

    @pl.when(j < n_rope_blocks)                      # Q and K head blocks: rope
    def _():
        c = cos_ref[...]                             # (tm, hd) shared by all heads
        s = sin_ref[...]                             # (tm, hd) sign-folded [-sin|+sin]
        for h in range(heads_per_block):             # per 128-lane head segment
            lo = h * head_dim
            yh = y[:, lo:lo + head_dim]
            partner = pltpu.roll(yh, shift=head_dim // 2, axis=1)
            o_ref[:, lo:lo + head_dim] = (yh * c + partner * s).astype(o_ref.dtype)

    @pl.when(j >= n_rope_blocks)                     # V head blocks: no rope
    def _():
        o_ref[...] = y.astype(o_ref.dtype)


def rmsnorm_qkv_rope(x2d, norm_w, wqkv_t, cos_half, sin_half, *,
                     head_dim, n_rope_heads, heads_per_block, eps):
    M, D = x2d.shape
    N = wqkv_t.shape[1]
    hd, hpb = head_dim, heads_per_block
    nblk = hpb * hd
    tm = _row_tile(M)
    assert M % tm == 0 and N % nblk == 0 and hd % 128 == 0
    assert n_rope_heads % hpb == 0
    grid = (M // tm, N // nblk)
    return pl.pallas_call(
        functools.partial(_rmsnorm_qkv_rope_kernel, eps=eps,
                          n_rope_blocks=n_rope_heads // hpb,
                          head_dim=hd, heads_per_block=hpb),
        grid=grid,
        in_specs=[
            pl.BlockSpec((tm, D), lambda i, j: (i, 0)),
            pl.BlockSpec((1, D), lambda i, j: (0, 0)),
            pl.BlockSpec((D, nblk), lambda i, j: (0, j)),
            pl.BlockSpec((tm, hd), lambda i, j: (i, 0)),
            pl.BlockSpec((tm, hd), lambda i, j: (i, 0)),
        ],
        out_specs=pl.BlockSpec((tm, nblk), lambda i, j: (i, j)),
        out_shape=jax.ShapeDtypeStruct((M, N), jnp.bfloat16),
        scratch_shapes=[pltpu.VMEM((tm, D), jnp.bfloat16)],
        compiler_params=pltpu.CompilerParams(
            dimension_semantics=("parallel", "arbitrary")),
    )(x2d, norm_w, wqkv_t, cos_half, sin_half)


# ---------------------------------------------------------------------------
# Kernel 2: in-place KV cache writeback.
#   Caches are head-major: (max_batch, n_kv_heads, max_seq, head_dim).  Only the
#   new (S, hd) slice per (batch, kv_head) is DMA'd into HBM; the caches are
#   aliased input->output so nothing else moves.
# ---------------------------------------------------------------------------
def _kv_cache_update_kernel(knew_ref, vnew_ref, ck_in_ref, cv_in_ref,
                            ck_ref, cv_ref, sem, *, start_pos, seq_len):
    del ck_in_ref, cv_in_ref                 # aliased with ck_ref / cv_ref
    b = pl.program_id(0)
    kv = pl.program_id(1)
    ck_copy = pltpu.make_async_copy(
        knew_ref, ck_ref.at[b, kv, pl.ds(start_pos, seq_len), :], sem.at[0])
    cv_copy = pltpu.make_async_copy(
        vnew_ref, cv_ref.at[b, kv, pl.ds(start_pos, seq_len), :], sem.at[1])
    ck_copy.start()
    cv_copy.start()
    ck_copy.wait()
    cv_copy.wait()


def kv_cache_update(qkv2d, cache_k, cache_v, *, start_pos, batch, seq_len,
                    n_heads, n_kv_heads, head_dim):
    B, S, hd = batch, seq_len, head_dim
    H, KVH = n_heads, n_kv_heads
    return pl.pallas_call(
        functools.partial(_kv_cache_update_kernel,
                          start_pos=start_pos, seq_len=S),
        grid=(B, KVH),
        in_specs=[
            pl.BlockSpec((S, hd), lambda b, kv: (b, H + kv)),         # new K
            pl.BlockSpec((S, hd), lambda b, kv: (b, H + KVH + kv)),   # new V
            pl.BlockSpec(memory_space=pl.ANY),
            pl.BlockSpec(memory_space=pl.ANY),
        ],
        out_specs=(pl.BlockSpec(memory_space=pl.ANY),
                   pl.BlockSpec(memory_space=pl.ANY)),
        out_shape=(jax.ShapeDtypeStruct(cache_k.shape, cache_k.dtype),
                   jax.ShapeDtypeStruct(cache_v.shape, cache_v.dtype)),
        scratch_shapes=[pltpu.SemaphoreType.DMA((2,))],
        input_output_aliases={2: 0, 3: 1},
        compiler_params=pltpu.CompilerParams(
            dimension_semantics=("arbitrary", "arbitrary")),
    )(qkv2d, qkv2d, cache_k, cache_v)


# ---------------------------------------------------------------------------
# Kernel 3: GQA-grouped flash attention over the KV cache.
#   grid = (batch, kv_head, KV tile); the n_rep grouped query heads share the
#   resident K/V tile, so the cache is read from HBM once per layer.  Q already
#   carries the 1/sqrt(hd) scale (folded into wq).  Q and the output are
#   addressed directly as (B*S, H*hd) 2-D slabs -> no host transposes.
# ---------------------------------------------------------------------------
def _flash_attention_kernel(q_ref, k_ref, v_ref, o_ref, m_sc, l_sc, acc_sc,
                            *, start_pos, kv_tile, n_rep, head_dim):
    t = pl.program_id(2)

    @pl.when(t == 0)
    def _():
        m_sc[...] = jnp.full_like(m_sc, -jnp.inf)
        l_sc[...] = jnp.zeros_like(l_sc)
        acc_sc[...] = jnp.zeros_like(acc_sc)

    k = k_ref[...]                                   # (kv_tile, hd) bf16
    v = v_ref[...]                                   # (kv_tile, hd) bf16
    S = q_ref.shape[0]

    # causal + KV-cache mask bias, built once and shared by all grouped heads.
    # -1e30 (finite) is safe: KV tile 0 always holds >=1 visible key per row.
    q_pos = start_pos + lax.broadcasted_iota(jnp.int32, (S, kv_tile), 0)
    k_pos = t * kv_tile + lax.broadcasted_iota(jnp.int32, (S, kv_tile), 1)
    bias = jnp.where(k_pos <= q_pos, 0.0, -1e30)

    for r in range(n_rep):                           # grouped query heads
        lo = r * head_dim
        q = q_ref[:, lo:lo + head_dim]               # (S, hd) bf16, pre-scaled
        s = lax.dot_general(q, k, (((1,), (1,)), ((), ())),
                            preferred_element_type=jnp.float32) + bias
        m_new = jnp.maximum(m_sc[r], jnp.max(s, axis=-1, keepdims=True))
        alpha = jnp.exp(m_sc[r] - m_new)
        p = jnp.exp(s - m_new)
        l_sc[r] = alpha * l_sc[r] + jnp.sum(p, axis=-1, keepdims=True)
        acc_sc[:, lo:lo + head_dim] = (
            alpha * acc_sc[:, lo:lo + head_dim]
            + jnp.dot(p.astype(jnp.bfloat16), v,
                      preferred_element_type=jnp.float32))
        m_sc[r] = m_new

    @pl.when(t == pl.num_programs(2) - 1)
    def _():
        for r in range(n_rep):
            lo = r * head_dim
            inv_l = pl.reciprocal(l_sc[r], approx=True)
            o_ref[:, lo:lo + head_dim] = (
                acc_sc[:, lo:lo + head_dim] * inv_l).astype(o_ref.dtype)


def flash_attention(qkv2d, cache_k, cache_v, *, batch, seq_len, start_pos,
                    n_heads, n_kv_heads, head_dim, kv_block=512):
    B, S, hd = batch, seq_len, head_dim
    H, KVH = n_heads, n_kv_heads
    n_rep = H // KVH
    T = start_pos + S
    assert S % 8 == 0 and T % 8 == 0 and hd % 128 == 0

    # widest KV tile: prefer kv_block / 512 / 256 / 128, else the whole cache
    kv_tile = T
    for cand in (kv_block, 512, 256, 128):
        if cand <= T and T % cand == 0:
            kv_tile = cand
            break

    gw = n_rep * hd                                  # group width (lanes)
    return pl.pallas_call(
        functools.partial(_flash_attention_kernel, start_pos=start_pos,
                          kv_tile=kv_tile, n_rep=n_rep, head_dim=hd),
        grid=(B, KVH, T // kv_tile),
        in_specs=[
            pl.BlockSpec((S, gw), lambda b, kv, t: (b, kv)),
            pl.BlockSpec((None, None, kv_tile, hd),
                         lambda b, kv, t: (b, kv, t, 0)),
            pl.BlockSpec((None, None, kv_tile, hd),
                         lambda b, kv, t: (b, kv, t, 0)),
        ],
        out_specs=pl.BlockSpec((S, gw), lambda b, kv, t: (b, kv)),
        out_shape=jax.ShapeDtypeStruct((B * S, H * hd), jnp.bfloat16),
        scratch_shapes=[pltpu.VMEM((n_rep, S, 1), jnp.float32),
                        pltpu.VMEM((n_rep, S, 1), jnp.float32),
                        pltpu.VMEM((S, gw), jnp.float32)],
        compiler_params=pltpu.CompilerParams(
            dimension_semantics=("parallel", "parallel", "arbitrary")),
    )(qkv2d, cache_k, cache_v)


# ---------------------------------------------------------------------------
# Kernel 4: output projection wo + residual add (tiled over M and D)
# ---------------------------------------------------------------------------
def _wo_residual_kernel(a_ref, w_ref, x_ref, o_ref):
    o_ref[...] = x_ref[...] + jnp.dot(a_ref[...], w_ref[...],
                                      preferred_element_type=jnp.float32)


def wo_residual(attn2d, wo_t, x2d):
    M, Dq = attn2d.shape
    D = wo_t.shape[1]
    tm = _row_tile(M)
    tn = _lane_tile(D, cap=256)
    assert M % tm == 0 and D % tn == 0
    return pl.pallas_call(
        _wo_residual_kernel,
        grid=(M // tm, D // tn),
        in_specs=[
            pl.BlockSpec((tm, Dq), lambda i, j: (i, 0)),
            pl.BlockSpec((Dq, tn), lambda i, j: (0, j)),
            pl.BlockSpec((tm, tn), lambda i, j: (i, j)),
        ],
        out_specs=pl.BlockSpec((tm, tn), lambda i, j: (i, j)),
        out_shape=jax.ShapeDtypeStruct((M, D), jnp.float32),
        compiler_params=pltpu.CompilerParams(
            dimension_semantics=("parallel", "parallel")),
    )(attn2d, wo_t, x2d)


# ---------------------------------------------------------------------------
# Kernel 5: fused RMSNorm + SwiGLU FFN + residual.
#   The hidden dimension is the reduction grid axis: per hidden tile compute
#   w1/w3 slices, SiLU*gate, and accumulate g @ w2[tile, :] into an
#   (M_tile, D) fp32 accumulator -> no (M, hidden) intermediate anywhere.
# ---------------------------------------------------------------------------
def _ffn_kernel(h_ref, nw_ref, w1_ref, w3_ref, w2_ref, o_ref,
                hn_sc, acc_sc, *, eps):
    j = pl.program_id(1)

    @pl.when(j == 0)
    def _():
        h = h_ref[...].astype(jnp.float32)
        var = jnp.mean(h * h, axis=-1, keepdims=True)
        hn_sc[...] = ((h * lax.rsqrt(var + eps)) * nw_ref[...]).astype(hn_sc.dtype)
        acc_sc[...] = jnp.zeros_like(acc_sc)

    hn = hn_sc[...]
    a = jnp.dot(hn, w1_ref[...], preferred_element_type=jnp.float32)
    b = jnp.dot(hn, w3_ref[...], preferred_element_type=jnp.float32)
    g = (a * jax.nn.sigmoid(a)) * b                       # SiLU * gate (fp32)
    acc_sc[...] += jnp.dot(g.astype(jnp.bfloat16), w2_ref[...],
                           preferred_element_type=jnp.float32)

    @pl.when(j == pl.num_programs(1) - 1)
    def _():
        o_ref[...] = h_ref[...] + acc_sc[...]             # fused residual


def ffn_block(h2d, norm_w, w1_t, w3_t, w2_t, eps):
    M, D = h2d.shape
    Hd = w1_t.shape[1]
    tm = _row_tile(M)
    th = _lane_tile(Hd, cap=512)
    assert M % tm == 0 and Hd % th == 0
    return pl.pallas_call(
        functools.partial(_ffn_kernel, eps=eps),
        grid=(M // tm, Hd // th),
        in_specs=[
            pl.BlockSpec((tm, D), lambda i, j: (i, 0)),
            pl.BlockSpec((1, D), lambda i, j: (0, 0)),
            pl.BlockSpec((D, th), lambda i, j: (0, j)),
            pl.BlockSpec((D, th), lambda i, j: (0, j)),
            pl.BlockSpec((th, D), lambda i, j: (j, 0)),
        ],
        out_specs=pl.BlockSpec((tm, D), lambda i, j: (i, 0)),
        out_shape=jax.ShapeDtypeStruct((M, D), jnp.float32),
        scratch_shapes=[pltpu.VMEM((tm, D), jnp.bfloat16),
                        pltpu.VMEM((tm, D), jnp.float32)],
        compiler_params=pltpu.CompilerParams(
            dimension_semantics=("parallel", "arbitrary"),
            vmem_limit_bytes=32 * 1024 * 1024),
    )(h2d, norm_w, w1_t, w3_t, w2_t)


# ---------------------------------------------------------------------------
# Weight preparation (one-time, like checkpoint conversion):
#   * per-head de-interleave of wq/wk columns (even feats first, then odd) so
#     rotary becomes a symmetric half-roll in-kernel,
#   * 1/sqrt(head_dim) folded into the wq columns,
#   * concat wq|wk|wv into a single [D, Dq+2*Dkv] matrix, all bf16.
# ---------------------------------------------------------------------------
def _deinterleave_columns(w_t, n_heads, head_dim):
    half_idx = jnp.concatenate([jnp.arange(0, head_dim, 2),
                                jnp.arange(1, head_dim, 2)])
    perm = (jnp.arange(n_heads)[:, None] * head_dim + half_idx[None, :]).reshape(-1)
    return w_t[:, perm]


def prepare_params(p, n_heads, n_kv_heads, head_dim):
    scale = 1.0 / math.sqrt(head_dim)
    wq = _deinterleave_columns(p["wq_t"], n_heads, head_dim) * scale
    wk = _deinterleave_columns(p["wk_t"], n_kv_heads, head_dim)
    wqkv = jnp.concatenate([wq, wk, p["wv_t"]], axis=1).astype(jnp.bfloat16)
    return {
        "attn_norm_w": p["attn_norm_w"].astype(jnp.float32),
        "ffn_norm_w": p["ffn_norm_w"].astype(jnp.float32),
        "wqkv_t": wqkv,
        "wo_t": p["wo_t"].astype(jnp.bfloat16),
        "w1_t": p["w1_t"].astype(jnp.bfloat16),
        "w3_t": p["w3_t"].astype(jnp.bfloat16),
        "w2_t": p["w2_t"].astype(jnp.bfloat16),
    }


# ---------------------------------------------------------------------------
# Full TransformerBlock forward
# ---------------------------------------------------------------------------
def _transformer_block_impl(x, cos_half, sin_half, params, cache_k, cache_v, *,
                            start_pos, n_heads, n_kv_heads, eps, kv_block=512):
    B, S, D = x.shape
    H, KVH = n_heads, n_kv_heads
    hd = D // H
    M = B * S
    hpb = _heads_per_block(H, KVH, hd)

    x2d = x.reshape(M, D)

    # fused RMSNorm + QKV projection + rotary (Pallas)
    qkv2d = rmsnorm_qkv_rope(x2d, params["attn_norm_w"], params["wqkv_t"],
                             cos_half, sin_half, head_dim=hd,
                             n_rope_heads=H + KVH, heads_per_block=hpb, eps=eps)

    # in-place KV-cache update (Pallas, aliased, DMA only the new slice)
    cache_k, cache_v = kv_cache_update(qkv2d, cache_k, cache_v,
                                       start_pos=start_pos, batch=B, seq_len=S,
                                       n_heads=H, n_kv_heads=KVH, head_dim=hd)

    # GQA-grouped flash attention over the cache (Pallas)
    attn2d = flash_attention(qkv2d, cache_k, cache_v, batch=B, seq_len=S,
                             start_pos=start_pos, n_heads=H, n_kv_heads=KVH,
                             head_dim=hd, kv_block=kv_block)

    # wo projection + residual (Pallas, tiled)
    h2d = wo_residual(attn2d, params["wo_t"], x2d)

    # ffn_norm + SwiGLU FFN + residual (Pallas, hidden-dim reduction)
    out2d = ffn_block(h2d, params["ffn_norm_w"], params["w1_t"],
                      params["w3_t"], params["w2_t"], eps)

    return out2d.reshape(B, S, D), cache_k, cache_v


transformer_block = jax.jit(
    _transformer_block_impl,
    static_argnames=("start_pos", "n_heads", "n_kv_heads", "eps", "kv_block"),
    donate_argnames=("cache_k", "cache_v"),
)


# ---------------------------------------------------------------------------
# Pure-JAX fp32 reference (mirrors the PyTorch module) for correctness check
# ---------------------------------------------------------------------------
def apply_rotary(x, cos, sin):
    # interleaved-pair rotary == torch.view_as_complex semantics
    B, S, H, hd = x.shape
    xr = x.reshape(B, S, H, hd // 2, 2)
    x0, x1 = xr[..., 0], xr[..., 1]
    c = cos[None, :, None, :]
    s = sin[None, :, None, :]
    o0 = x0 * c - x1 * s
    o1 = x0 * s + x1 * c
    return jnp.stack([o0, o1], axis=-1).reshape(B, S, H, hd)


def reference_block(x, start_pos, freqs_cos, freqs_sin, mask, params,
                    cache_k, cache_v, *, n_heads, n_kv_heads, eps):
    B, S, D = x.shape
    hd = D // n_heads
    n_rep = n_heads // n_kv_heads

    def rmsnorm(v, w):
        var = jnp.mean(v * v, axis=-1, keepdims=True)
        return v * lax.rsqrt(var + eps) * w[0]

    xn = rmsnorm(x, params["attn_norm_w"])
    xq = (xn @ params["wq_t"]).reshape(B, S, n_heads, hd)
    xk = (xn @ params["wk_t"]).reshape(B, S, n_kv_heads, hd)
    xv = (xn @ params["wv_t"]).reshape(B, S, n_kv_heads, hd)
    xq = apply_rotary(xq, freqs_cos, freqs_sin)
    xk = apply_rotary(xk, freqs_cos, freqs_sin)
    cache_k = lax.dynamic_update_slice(cache_k, xk, (0, start_pos, 0, 0))
    cache_v = lax.dynamic_update_slice(cache_v, xv, (0, start_pos, 0, 0))
    T = start_pos + S
    keys = jnp.repeat(cache_k[:B, :T], n_rep, axis=2)
    values = jnp.repeat(cache_v[:B, :T], n_rep, axis=2)
    q = jnp.transpose(xq, (0, 2, 1, 3))
    k = jnp.transpose(keys, (0, 2, 1, 3))
    v = jnp.transpose(values, (0, 2, 1, 3))
    scores = jnp.einsum("bhsd,bhtd->bhst", q, k) / math.sqrt(hd) + mask
    probs = jax.nn.softmax(scores, axis=-1)
    out = jnp.einsum("bhst,bhtd->bhsd", probs, v)
    out = jnp.transpose(out, (0, 2, 1, 3)).reshape(B, S, -1)
    h = x + out @ params["wo_t"]
    hn = rmsnorm(h, params["ffn_norm_w"])
    a = hn @ params["w1_t"]
    g = a * jax.nn.sigmoid(a)
    return h + (g * (hn @ params["w3_t"])) @ params["w2_t"]


# ---------------------------------------------------------------------------
if __name__ == "__main__":
    # small ModelArgs-consistent config (head_dim kept at 128 for lane-dense tiles)
    dim = 512
    n_heads = 4
    n_kv_heads = 2             # exercises GQA grouping (n_rep = 2)
    head_dim = dim // n_heads  # 128
    multiple_of = 256
    norm_eps = 1e-5
    rope_theta = 10000.0
    max_batch_size = 2
    max_seq_len = 32

    hidden_dim = 4 * dim
    hidden_dim = multiple_of * ((hidden_dim + multiple_of - 1) // multiple_of)

    B, S = 2, 8
    start_pos = 24            # exercises the KV-cache path (cached prefix = zeros)
    T = start_pos + S         # 32 -> two 16-row KV tiles (online-softmax steps)

    key = jax.random.PRNGKey(0)
    ks = jax.random.split(key, 8)
    init = lambda k, shape: (0.05 * jax.random.normal(k, shape)).astype(jnp.float32)

    raw_params = {
        "attn_norm_w": jnp.ones((1, dim), jnp.float32),
        "ffn_norm_w": jnp.ones((1, dim), jnp.float32),
        "wq_t": init(ks[0], (dim, n_heads * head_dim)),
        "wk_t": init(ks[1], (dim, n_kv_heads * head_dim)),
        "wv_t": init(ks[2], (dim, n_kv_heads * head_dim)),
        "wo_t": init(ks[3], (n_heads * head_dim, dim)),
        "w1_t": init(ks[4], (dim, hidden_dim)),
        "w3_t": init(ks[5], (dim, hidden_dim)),
        "w2_t": init(ks[6], (hidden_dim, dim)),
    }
    x = jax.random.normal(ks[7], (B, S, dim), dtype=jnp.float32)

    # rotary frequencies for positions [start_pos, start_pos + S)
    inv_freq = 1.0 / (rope_theta ** (jnp.arange(0, head_dim, 2, dtype=jnp.float32)
                                     / head_dim))
    t = jnp.arange(start_pos, start_pos + S, dtype=jnp.float32)
    angles = jnp.outer(t, inv_freq)                     # (S, head_dim // 2)
    freqs_cos, freqs_sin = jnp.cos(angles), jnp.sin(angles)

    # half-split per-row cos/sin tables (B*S, head_dim); rope sign pre-folded
    # into the sin table so the kernel does a pure y*c + roll(y)*s fma.
    cos_half = jnp.tile(jnp.concatenate([freqs_cos, freqs_cos], axis=-1), (B, 1))
    sin_half = jnp.tile(jnp.concatenate([-freqs_sin, freqs_sin], axis=-1), (B, 1))

    params = prepare_params(raw_params, n_heads, n_kv_heads, head_dim)

    # head-major bf16 KV cache (maxB, KVH, maxT, hd); donated -> updated in place
    cache_k = jnp.zeros((max_batch_size, n_kv_heads, max_seq_len, head_dim),
                        jnp.bfloat16)
    cache_v = jnp.zeros_like(cache_k)

    out, cache_k, cache_v = transformer_block(
        x, cos_half, sin_half, params, cache_k, cache_v,
        start_pos=start_pos, n_heads=n_heads, n_kv_heads=n_kv_heads,
        eps=norm_eps, kv_block=16)     # kv_block=16 -> 2 online-softmax steps here
    jax.block_until_ready(out)

    # fp32 reference (original unpermuted weights, explicit causal mask)
    row = jnp.arange(S)[:, None]
    col = jnp.arange(T)[None, :]
    mask = jnp.where(col > row + start_pos, -jnp.inf, 0.0).astype(jnp.float32)
    ref_ck = jnp.zeros((max_batch_size, max_seq_len, n_kv_heads, head_dim),
                       jnp.float32)
    ref_cv = jnp.zeros_like(ref_ck)
    ref = reference_block(x, start_pos, freqs_cos, freqs_sin, mask, raw_params,
                          ref_ck, ref_cv, n_heads=n_heads,
                          n_kv_heads=n_kv_heads, eps=norm_eps)

    assert out.shape == (B, S, dim)
    assert not bool(jnp.any(jnp.isnan(out)))
    # bf16 MXU operands -> compare against the fp32 reference with a loose tol
    assert bool(jnp.allclose(out, ref, atol=5e-2, rtol=5e-2)), (
        "mismatch vs reference: max abs err "
        f"{float(jnp.max(jnp.abs(out - ref)))}")

    print("KERNEL_OK")
</pallas_src>

<mosaic_0001>
module attributes {stable_mosaic.version = 11 : i64} {
  func.func @_kv_cache_update_kernel(%arg0: i32, %arg1: i32, %arg2: memref<8x128xbf16, #tpu.memory_space<vmem>>, %arg3: memref<8x128xbf16, #tpu.memory_space<vmem>>, %arg4: memref<2x2x32x128xbf16, #tpu.memory_space<any>>, %arg5: memref<2x2x32x128xbf16, #tpu.memory_space<any>>, %arg6: memref<2x2x32x128xbf16, #tpu.memory_space<any>>, %arg7: memref<2x2x32x128xbf16, #tpu.memory_space<any>>, %arg8: memref<2x!tpu.dma_semaphore, #tpu.memory_space<semaphore_mem>>) attributes {dimension_semantics = [#tpu.dimension_semantics<arbitrary>, #tpu.dimension_semantics<arbitrary>], iteration_bounds = array<i64: 2, 2>, scalar_prefetch = 0 : i64, scratch_operands = 1 : i64, tpu.core_type = #tpu.core_type<tc>, window_params = [{transform_indices = @transform_0, window_bounds = array<i64: 8, 128>}, {transform_indices = @transform_1, window_bounds = array<i64: 8, 128>}, {}, {}, {}, {}]} {
    %c0_i32 = arith.constant 0 : i32
    %c24_i32 = arith.constant 24 : i32
    %c0_i32_0 = arith.constant 0 : i32
    %0 = tpu.memref_slice %arg6[%arg0, %arg1, %c24_i32, %c0_i32_0] : memref<2x2x32x128xbf16, #tpu.memory_space<any>> -> memref<1x1x8x128xbf16, #tpu.memory_space<any>>
    %1 = tpu.memref_squeeze %0 : memref<1x1x8x128xbf16, #tpu.memory_space<any>> -> memref<8x128xbf16, #tpu.memory_space<any>>
    %2 = tpu.memref_slice %arg8[%c0_i32] : memref<2x!tpu.dma_semaphore, #tpu.memory_space<semaphore_mem>> -> memref<1x!tpu.dma_semaphore, #tpu.memory_space<semaphore_mem>>
    %3 = tpu.memref_squeeze %2 : memref<1x!tpu.dma_semaphore, #tpu.memory_space<semaphore_mem>> -> memref<!tpu.dma_semaphore, #tpu.memory_space<semaphore_mem>>
    tpu.enqueue_dma source(%arg2 : memref<8x128xbf16, #tpu.memory_space<vmem>>) target(%1 : memref<8x128xbf16, #tpu.memory_space<any>>) target_semaphore(%3 : memref<!tpu.dma_semaphore, #tpu.memory_space<semaphore_mem>>)
    %c1_i32 = arith.constant 1 : i32
    %c24_i32_1 = arith.constant 24 : i32
    %c0_i32_2 = arith.constant 0 : i32
    %4 = tpu.memref_slice %arg7[%arg0, %arg1, %c24_i32_1, %c0_i32_2] : memref<2x2x32x128xbf16, #tpu.memory_space<any>> -> memref<1x1x8x128xbf16, #tpu.memory_space<any>>
    %5 = tpu.memref_squeeze %4 : memref<1x1x8x128xbf16, #tpu.memory_space<any>> -> memref<8x128xbf16, #tpu.memory_space<any>>
    %6 = tpu.memref_slice %arg8[%c1_i32] : memref<2x!tpu.dma_semaphore, #tpu.memory_space<semaphore_mem>> -> memref<1x!tpu.dma_semaphore, #tpu.memory_space<semaphore_mem>>
    %7 = tpu.memref_squeeze %6 : memref<1x!tpu.dma_semaphore, #tpu.memory_space<semaphore_mem>> -> memref<!tpu.dma_semaphore, #tpu.memory_space<semaphore_mem>>
    tpu.enqueue_dma source(%arg3 : memref<8x128xbf16, #tpu.memory_space<vmem>>) target(%5 : memref<8x128xbf16, #tpu.memory_space<any>>) target_semaphore(%7 : memref<!tpu.dma_semaphore, #tpu.memory_space<semaphore_mem>>)
    %c0_i32_3 = arith.constant 0 : i32
    %c24_i32_4 = arith.constant 24 : i32
    %c0_i32_5 = arith.constant 0 : i32
    %8 = tpu.memref_slice %arg6[%arg0, %arg1, %c24_i32_4, %c0_i32_5] : memref<2x2x32x128xbf16, #tpu.memory_space<any>> -> memref<1x1x8x128xbf16, #tpu.memory_space<any>>
    %9 = tpu.memref_squeeze %8 : memref<1x1x8x128xbf16, #tpu.memory_space<any>> -> memref<8x128xbf16, #tpu.memory_space<any>>
    %10 = tpu.memref_slice %arg8[%c0_i32_3] : memref<2x!tpu.dma_semaphore, #tpu.memory_space<semaphore_mem>> -> memref<1x!tpu.dma_semaphore, #tpu.memory_space<semaphore_mem>>
    %11 = tpu.memref_squeeze %10 : memref<1x!tpu.dma_semaphore, #tpu.memory_space<semaphore_mem>> -> memref<!tpu.dma_semaphore, #tpu.memory_space<semaphore_mem>>
    tpu.wait_dma2 semaphore(%11 : memref<!tpu.dma_semaphore, #tpu.memory_space<semaphore_mem>>) src(%arg2 : memref<8x128xbf16, #tpu.memory_space<vmem>>) dst(%9 : memref<8x128xbf16, #tpu.memory_space<any>>)
    %c1_i32_6 = arith.constant 1 : i32
    %c24_i32_7 = arith.constant 24 : i32
    %c0_i32_8 = arith.constant 0 : i32
    %12 = tpu.memref_slice %arg7[%arg0, %arg1, %c24_i32_7, %c0_i32_8] : memref<2x2x32x128xbf16, #tpu.memory_space<any>> -> memref<1x1x8x128xbf16, #tpu.memory_space<any>>
    %13 = tpu.memref_squeeze %12 : memref<1x1x8x128xbf16, #tpu.memory_space<any>> -> memref<8x128xbf16, #tpu.memory_space<any>>
    %14 = tpu.memref_slice %arg8[%c1_i32_6] : memref<2x!tpu.dma_semaphore, #tpu.memory_space<semaphore_mem>> -> memref<1x!tpu.dma_semaphore, #tpu.memory_space<semaphore_mem>>
    %15 = tpu.memref_squeeze %14 : memref<1x!tpu.dma_semaphore, #tpu.memory_space<semaphore_mem>> -> memref<!tpu.dma_semaphore, #tpu.memory_space<semaphore_mem>>
    tpu.wait_dma2 semaphore(%15 : memref<!tpu.dma_semaphore, #tpu.memory_space<semaphore_mem>>) src(%arg3 : memref<8x128xbf16, #tpu.memory_space<vmem>>) dst(%13 : memref<8x128xbf16, #tpu.memory_space<any>>)
    return
  }
  func.func @transform_0(%arg0: i32, %arg1: i32) -> (i32, i32) {
    %c4_i32 = arith.constant 4 : i32
    %0 = arith.addi %c4_i32, %arg1 : i32
    %c0_i32 = arith.constant 0 : i32
    return %arg0, %0 : i32, i32
  }
  func.func @transform_1(%arg0: i32, %arg1: i32) -> (i32, i32) {
    %c6_i32 = arith.constant 6 : i32
    %0 = arith.addi %c6_i32, %arg1 : i32
    %c0_i32 = arith.constant 0 : i32
    return %arg0, %0 : i32, i32
  }
}

module attributes {stable_mosaic.version = 11 : i64} {
  func.func @_rmsnorm_qkv_rope_kernel(%arg0: i32, %arg1: i32, %arg2: memref<16x512xf32, #tpu.memory_space<vmem>>, %arg3: memref<1x512xf32, #tpu.memory_space<vmem>>, %arg4: memref<512x256xbf16, #tpu.memory_space<vmem>>, %arg5: memref<16x128xf32, #tpu.memory_space<vmem>>, %arg6: memref<16x128xf32, #tpu.memory_space<vmem>>, %arg7: memref<16x256xbf16, #tpu.memory_space<vmem>>, %arg8: memref<16x512xbf16, #tpu.memory_space<vmem>>) attributes {dimension_semantics = [#tpu.dimension_semantics<parallel>, #tpu.dimension_semantics<arbitrary>], iteration_bounds = array<i64: 1, 4>, scalar_prefetch = 0 : i64, scratch_operands = 1 : i64, tpu.core_type = #tpu.core_type<tc>, window_params = [{transform_indices = @transform_0, window_bounds = array<i64: 16, 512>}, {pipeline_mode = #tpu.pipeline_mode<synchronous>, transform_indices = @transform_1, window_bounds = array<i64: 1, 512>}, {transform_indices = @transform_2, window_bounds = array<i64: 512, 256>}, {transform_indices = @transform_3, window_bounds = array<i64: 16, 128>}, {transform_indices = @transform_4, window_bounds = array<i64: 16, 128>}, {transform_indices = @transform_5, window_bounds = array<i64: 16, 256>}]} {
    %c0_i32 = arith.constant 0 : i32
    %0 = arith.cmpi eq, %arg1, %c0_i32 : i32
    %1 = arith.extui %0 : i1 to i32
    %c0_i32_0 = arith.constant 0 : i32
    %2 = arith.cmpi ne, %1, %c0_i32_0 : i32
    scf.if %2 {
      %c0_7 = arith.constant 0 : index
      %c0_8 = arith.constant 0 : index
      %12 = vector.load %arg2[%c0_7, %c0_8] : memref<16x512xf32, #tpu.memory_space<vmem>>, vector<16x512xf32>
      %13 = arith.mulf %12, %12 : vector<16x512xf32>
      %cst_9 = arith.constant dense<0.000000e+00> : vector<16xf32>
      %14 = vector.multi_reduction <add>, %13, %cst_9 [1] : vector<16x512xf32> to vector<16xf32>
      %15 = vector.shape_cast %14 : vector<16xf32> to vector<16x1xf32>
      %cst_10 = arith.constant 5.120000e+02 : f32
      %16 = vector.broadcast %cst_10 : f32 to vector<16x1xf32>
      %17 = arith.divf %15, %16 : vector<16x1xf32>
      %cst_11 = arith.constant 9.99999974E-6 : f32
      %18 = vector.broadcast %cst_11 : f32 to vector<16x1xf32>
      %19 = arith.addf %17, %18 : vector<16x1xf32>
      %20 = math.rsqrt %19 : vector<16x1xf32>
      %21 = vector.broadcast %20 : vector<16x1xf32> to vector<16x512xf32>
      %22 = arith.mulf %12, %21 : vector<16x512xf32>
      %c0_12 = arith.constant 0 : index
      %c0_13 = arith.constant 0 : index
      %23 = vector.load %arg3[%c0_12, %c0_13] : memref<1x512xf32, #tpu.memory_space<vmem>>, vector<1x512xf32>
      %24 = vector.broadcast %23 : vector<1x512xf32> to vector<16x512xf32>
      %25 = arith.mulf %22, %24 : vector<16x512xf32>
      %26 = arith.truncf %25 : vector<16x512xf32> to vector<16x512xbf16>
      %c0_14 = arith.constant 0 : index
      %c0_15 = arith.constant 0 : index
      %27 = vector.load %arg8[%c0_14, %c0_15] : memref<16x512xbf16, #tpu.memory_space<vmem>>, vector<16x512xbf16>
      tpu.vector_store %arg8[%c0_14, %c0_15], %26 {strides = array<i32>} : memref<16x512xbf16, #tpu.memory_space<vmem>>, vector<16x512xbf16>,
    } else {
    }
    %c0 = arith.constant 0 : index
    %c0_1 = arith.constant 0 : index
    %3 = vector.load %arg8[%c0, %c0_1] : memref<16x512xbf16, #tpu.memory_space<vmem>>, vector<16x512xbf16>
    %c0_2 = arith.constant 0 : index
    %c0_3 = arith.constant 0 : index
    %4 = vector.load %arg4[%c0_2, %c0_3] : memref<512x256xbf16, #tpu.memory_space<vmem>>, vector<512x256xbf16>
    %cst = arith.constant dense<0.000000e+00> : vector<16x256xf32>
    %5 = tpu.matmul %3, %4, %cst {dimension_numbers = #tpu.dot_dimension_numbers<[1], [0], [0], [1], [0, 0, 1, 1], [], []>} : vector<16x512xbf16>, vector<512x256xbf16>, vector<16x256xf32> -> vector<16x256xf32>
    %c3_i32 = arith.constant 3 : i32
    %6 = arith.cmpi slt, %arg1, %c3_i32 : i32
    %7 = arith.extui %6 : i1 to i32
    %c0_i32_4 = arith.constant 0 : i32
    %8 = arith.cmpi ne, %7, %c0_i32_4 : i32
    scf.if %8 {
      %c0_7 = arith.constant 0 : index
      %c0_8 = arith.constant 0 : index
      %12 = vector.load %arg5[%c0_7, %c0_8] : memref<16x128xf32, #tpu.memory_space<vmem>>, vector<16x128xf32>
      %c0_9 = arith.constant 0 : index
      %c0_10 = arith.constant 0 : index
      %13 = vector.load %arg6[%c0_9, %c0_10] : memref<16x128xf32, #tpu.memory_space<vmem>>, vector<16x128xf32>
      %14 = vector.extract_strided_slice %5 {offsets = [0, 0], sizes = [16, 128], strides = [1, 1]} : vector<16x256xf32> to vector<16x128xf32>
      %c64_i32 = arith.constant 64 : i32
      %15 = tpu.dynamic_rotate %14 by %c64_i32 dim 1 : vector<16x128xf32>, i32 -> vector<16x128xf32>
      %16 = arith.mulf %14, %12 : vector<16x128xf32>
      %17 = arith.mulf %15, %13 : vector<16x128xf32>
      %18 = arith.addf %16, %17 : vector<16x128xf32>
      %19 = arith.truncf %18 : vector<16x128xf32> to vector<16x128xbf16>
      %c0_11 = arith.constant 0 : index
      %c0_12 = arith.constant 0 : index
      %20 = vector.load %arg7[%c0_11, %c0_12] : memref<16x256xbf16, #tpu.memory_space<vmem>>, vector<16x128xbf16>
      tpu.vector_store %arg7[%c0_11, %c0_12], %19 {strides = array<i32>} : memref<16x256xbf16, #tpu.memory_space<vmem>>, vector<16x128xbf16>,
      %21 = vector.extract_strided_slice %5 {offsets = [0, 128], sizes = [16, 128], strides = [1, 1]} : vector<16x256xf32> to vector<16x128xf32>
      %c64_i32_13 = arith.constant 64 : i32
      %22 = tpu.dynamic_rotate %21 by %c64_i32_13 dim 1 : vector<16x128xf32>, i32 -> vector<16x128xf32>
      %23 = arith.mulf %21, %12 : vector<16x128xf32>
      %24 = arith.mulf %22, %13 : vector<16x128xf32>
      %25 = arith.addf %23, %24 : vector<16x128xf32>
      %26 = arith.truncf %25 : vector<16x128xf32> to vector<16x128xbf16>
      %c0_14 = arith.constant 0 : index
      %c128 = arith.constant 128 : index
      %27 = vector.load %arg7[%c0_14, %c128] : memref<16x256xbf16, #tpu.memory_space<vmem>>, vector<16x128xbf16>
      tpu.vector_store %arg7[%c0_14, %c128], %26 {strides = array<i32>} : memref<16x256xbf16, #tpu.memory_space<vmem>>, vector<16x128xbf16>,
    } else {
    }
    %c3_i32_5 = arith.constant 3 : i32
    %9 = arith.cmpi sge, %arg1, %c3_i32_5 : i32
    %10 = arith.extui %9 : i1 to i32
    %c0_i32_6 = arith.constant 0 : i32
    %11 = arith.cmpi ne, %10, %c0_i32_6 : i32
    scf.if %11 {
      %12 = arith.truncf %5 : vector<16x256xf32> to vector<16x256xbf16>
      %c0_7 = arith.constant 0 : index
      %c0_8 = arith.constant 0 : index
      %13 = vector.load %arg7[%c0_7, %c0_8] : memref<16x256xbf16, #tpu.memory_space<vmem>>, vector<16x256xbf16>
      tpu.vector_store %arg7[%c0_7, %c0_8], %12 {strides = array<i32>} : memref<16x256xbf16, #tpu.memory_space<vmem>>, vector<16x256xbf16>,
    } else {
    }
    return
  }
  func.func @transform_0(%arg0: i32, %arg1: i32) -> (i32, i32) {
    %c0_i32 = arith.constant 0 : i32
    %c0_i32_0 = arith.constant 0 : i32
    return %arg0, %c0_i32 : i32, i32
  }
  func.func @transform_1(%arg0: i32, %arg1: i32) -> (i32, i32) {
    %c0_i32 = arith.constant 0 : i32
    %c0_i32_0 = arith.constant 0 : i32
    %c0_i32_1 = arith.constant 0 : i32
    return %c0_i32, %c0_i32_0 : i32, i32
  }
  func.func @transform_2(%arg0: i32, %arg1: i32) -> (i32, i32) {
    %c0_i32 = arith.constant 0 : i32
    %c0_i32_0 = arith.constant 0 : i32
    return %c0_i32, %arg1 : i32, i32
  }
  func.func @transform_3(%arg0: i32, %arg1: i32) -> (i32, i32) {
    %c0_i32 = arith.constant 0 : i32
    %c0_i32_0 = arith.constant 0 : i32
    return %arg0, %c0_i32 : i32, i32
  }
  func.func @transform_4(%arg0: i32, %arg1: i32) -> (i32, i32) {
    %c0_i32 = arith.constant 0 : i32
    %c0_i32_0 = arith.constant 0 : i32
    return %arg0, %c0_i32 : i32, i32
  }
  func.func @transform_5(%arg0: i32, %arg1: i32) -> (i32, i32) {
    %c0_i32 = arith.constant 0 : i32
    return %arg0, %arg1 : i32, i32
  }
}

module attributes {stable_mosaic.version = 11 : i64} {
  func.func @_wo_residual_kernel(%arg0: i32, %arg1: i32, %arg2: memref<16x512xbf16, #tpu.memory_space<vmem>>, %arg3: memref<512x256xbf16, #tpu.memory_space<vmem>>, %arg4: memref<16x256xf32, #tpu.memory_space<vmem>>, %arg5: memref<16x256xf32, #tpu.memory_space<vmem>>) attributes {dimension_semantics = [#tpu.dimension_semantics<parallel>, #tpu.dimension_semantics<parallel>], iteration_bounds = array<i64: 1, 2>, scalar_prefetch = 0 : i64, scratch_operands = 0 : i64, tpu.core_type = #tpu.core_type<tc>, window_params = [{transform_indices = @transform_0, window_bounds = array<i64: 16, 512>}, {transform_indices = @transform_1, window_bounds = array<i64: 512, 256>}, {transform_indices = @transform_2, window_bounds = array<i64: 16, 256>}, {transform_indices = @transform_3, window_bounds = array<i64: 16, 256>}]} {
    %c0 = arith.constant 0 : index
    %c0_0 = arith.constant 0 : index
    %0 = vector.load %arg4[%c0, %c0_0] : memref<16x256xf32, #tpu.memory_space<vmem>>, vector<16x256xf32>
    %c0_1 = arith.constant 0 : index
    %c0_2 = arith.constant 0 : index
    %1 = vector.load %arg2[%c0_1, %c0_2] : memref<16x512xbf16, #tpu.memory_space<vmem>>, vector<16x512xbf16>
    %c0_3 = arith.constant 0 : index
    %c0_4 = arith.constant 0 : index
    %2 = vector.load %arg3[%c0_3, %c0_4] : memref<512x256xbf16, #tpu.memory_space<vmem>>, vector<512x256xbf16>
    %cst = arith.constant dense<0.000000e+00> : vector<16x256xf32>
    %3 = tpu.matmul %1, %2, %cst {dimension_numbers = #tpu.dot_dimension_numbers<[1], [0], [0], [1], [0, 0, 1, 1], [], []>} : vector<16x512xbf16>, vector<512x256xbf16>, vector<16x256xf32> -> vector<16x256xf32>
    %4 = arith.addf %0, %3 : vector<16x256xf32>
    %c0_5 = arith.constant 0 : index
    %c0_6 = arith.constant 0 : index
    %5 = vector.load %arg5[%c0_5, %c0_6] : memref<16x256xf32, #tpu.memory_space<vmem>>, vector<16x256xf32>
    tpu.vector_store %arg5[%c0_5, %c0_6], %4 {strides = array<i32>} : memref<16x256xf32, #tpu.memory_space<vmem>>, vector<16x256xf32>,
    return
  }
  func.func @transform_0(%arg0: i32, %arg1: i32) -> (i32, i32) {
    %c0_i32 = arith.constant 0 : i32
    %c0_i32_0 = arith.constant 0 : i32
    return %arg0, %c0_i32 : i32, i32
  }
  func.func @transform_1(%arg0: i32, %arg1: i32) -> (i32, i32) {
    %c0_i32 = arith.constant 0 : i32
    %c0_i32_0 = arith.constant 0 : i32
    return %c0_i32, %arg1 : i32, i32
  }
  func.func @transform_2(%arg0: i32, %arg1: i32) -> (i32, i32) {
    %c0_i32 = arith.constant 0 : i32
    return %arg0, %arg1 : i32, i32
  }
  func.func @transform_3(%arg0: i32, %arg1: i32) -> (i32, i32) {
    %c0_i32 = arith.constant 0 : i32
    return %arg0, %arg1 : i32, i32
  }
}

module attributes {stable_mosaic.version = 11 : i64} {
  func.func @_flash_attention_kernel(%arg0: i32, %arg1: i32, %arg2: i32, %arg3: memref<8x256xbf16, #tpu.memory_space<vmem>>, %arg4: memref<1x1x16x128xbf16, #tpu.memory_space<vmem>>, %arg5: memref<1x1x16x128xbf16, #tpu.memory_space<vmem>>, %arg6: memref<8x256xbf16, #tpu.memory_space<vmem>>, %arg7: memref<2x8x1xf32, #tpu.memory_space<vmem>>, %arg8: memref<2x8x1xf32, #tpu.memory_space<vmem>>, %arg9: memref<8x256xf32, #tpu.memory_space<vmem>>) attributes {dimension_semantics = [#tpu.dimension_semantics<parallel>, #tpu.dimension_semantics<parallel>, #tpu.dimension_semantics<arbitrary>], iteration_bounds = array<i64: 2, 2, 2>, scalar_prefetch = 0 : i64, scratch_operands = 3 : i64, tpu.core_type = #tpu.core_type<tc>, window_params = [{transform_indices = @transform_0, window_bounds = array<i64: 8, 256>}, {transform_indices = @transform_1, window_bounds = array<i64: 1, 1, 16, 128>}, {transform_indices = @transform_2, window_bounds = array<i64: 1, 1, 16, 128>}, {transform_indices = @transform_3, window_bounds = array<i64: 8, 256>}]} {
    %c0_i32 = arith.constant 0 : i32
    %0 = arith.cmpi eq, %arg2, %c0_i32 : i32
    %1 = arith.extui %0 : i1 to i32
    %c0_i32_0 = arith.constant 0 : i32
    %2 = arith.cmpi ne, %1, %c0_i32_0 : i32
    scf.if %2 {
      %cst_58 = arith.constant 0xFF800000 : f32
      %89 = vector.broadcast %cst_58 : f32 to vector<2x8x1xf32>
      %c0_59 = arith.constant 0 : index
      %c0_60 = arith.constant 0 : index
      %c0_61 = arith.constant 0 : index
      %90 = vector.load %arg7[%c0_59, %c0_60, %c0_61] : memref<2x8x1xf32, #tpu.memory_space<vmem>>, vector<2x8x1xf32>
      tpu.vector_store %arg7[%c0_59, %c0_60, %c0_61], %89 {strides = array<i32>} : memref<2x8x1xf32, #tpu.memory_space<vmem>>, vector<2x8x1xf32>,
      %cst_62 = arith.constant 0.000000e+00 : f32
      %91 = vector.broadcast %cst_62 : f32 to vector<2x8x1xf32>
      %c0_63 = arith.constant 0 : index
      %c0_64 = arith.constant 0 : index
      %c0_65 = arith.constant 0 : index
      %92 = vector.load %arg8[%c0_63, %c0_64, %c0_65] : memref<2x8x1xf32, #tpu.memory_space<vmem>>, vector<2x8x1xf32>
      tpu.vector_store %arg8[%c0_63, %c0_64, %c0_65], %91 {strides = array<i32>} : memref<2x8x1xf32, #tpu.memory_space<vmem>>, vector<2x8x1xf32>,
      %cst_66 = arith.constant 0.000000e+00 : f32
      %93 = vector.broadcast %cst_66 : f32 to vector<8x256xf32>
      %c0_67 = arith.constant 0 : index
      %c0_68 = arith.constant 0 : index
      %94 = vector.load %arg9[%c0_67, %c0_68] : memref<8x256xf32, #tpu.memory_space<vmem>>, vector<8x256xf32>
      tpu.vector_store %arg9[%c0_67, %c0_68], %93 {strides = array<i32>} : memref<8x256xf32, #tpu.memory_space<vmem>>, vector<8x256xf32>,
    } else {
    }
    %c0 = arith.constant 0 : index
    %c0_1 = arith.constant 0 : index
    %c0_2 = arith.constant 0 : index
    %c0_3 = arith.constant 0 : index
    %3 = vector.load %arg4[%c0, %c0_1, %c0_2, %c0_3] : memref<1x1x16x128xbf16, #tpu.memory_space<vmem>>, vector<1x1x16x128xbf16>
    %4 = vector.shape_cast %3 : vector<1x1x16x128xbf16> to vector<16x128xbf16>
    %c0_4 = arith.constant 0 : index
    %c0_5 = arith.constant 0 : index
    %c0_6 = arith.constant 0 : index
    %c0_7 = arith.constant 0 : index
    %5 = vector.load %arg5[%c0_4, %c0_5, %c0_6, %c0_7] : memref<1x1x16x128xbf16, #tpu.memory_space<vmem>>, vector<1x1x16x128xbf16>
    %6 = vector.shape_cast %5 : vector<1x1x16x128xbf16> to vector<16x128xbf16>
    %7 = tpu.iota {dimensions = array<i32: 0>} : vector<8x16xi32>
    %c24_i32 = arith.constant 24 : i32
    %8 = vector.broadcast %c24_i32 : i32 to vector<8x16xi32>
    %9 = arith.addi %8, %7 : vector<8x16xi32>
    %c16_i32 = arith.constant 16 : i32
    %10 = arith.muli %arg2, %c16_i32 : i32
    %11 = tpu.iota {dimensions = array<i32: 1>} : vector<8x16xi32>
    %12 = vector.broadcast %10 : i32 to vector<8x16xi32>
    %13 = arith.addi %12, %11 : vector<8x16xi32>
    %14 = arith.cmpi sle, %13, %9 : vector<8x16xi32>
    %cst = arith.constant 0.000000e+00 : f32
    %cst_8 = arith.constant -1.000000e+30 : f32
    %15 = vector.broadcast %cst : f32 to vector<8x16xf32>
    %16 = vector.broadcast %cst_8 : f32 to vector<8x16xf32>
    %17 = arith.select %14, %15, %16 : vector<8x16xi1>, vector<8x16xf32>
    %c0_9 = arith.constant 0 : index
    %c0_10 = arith.constant 0 : index
    %18 = vector.load %arg3[%c0_9, %c0_10] : memref<8x256xbf16, #tpu.memory_space<vmem>>, vector<8x128xbf16>
    %cst_11 = arith.constant dense<0.000000e+00> : vector<8x16xf32>
    %19 = tpu.matmul %18, %4, %cst_11 {dimension_numbers = #tpu.dot_dimension_numbers<[1], [1], [0], [0], [0, 0, 1, 0], [], []>} : vector<8x128xbf16>, vector<16x128xbf16>, vector<8x16xf32> -> vector<8x16xf32>
    %20 = arith.addf %19, %17 : vector<8x16xf32>
    %c0_12 = arith.constant 0 : index
    %c0_13 = arith.constant 0 : index
    %c0_14 = arith.constant 0 : index
    %21 = vector.load %arg7[%c0_12, %c0_13, %c0_14] : memref<2x8x1xf32, #tpu.memory_space<vmem>>, vector<1x8x1xf32>
    %22 = vector.shape_cast %21 : vector<1x8x1xf32> to vector<8x1xf32>
    %cst_15 = arith.constant dense<0xFF800000> : vector<8xf32>
    %23 = vector.multi_reduction <maximumf>, %20, %cst_15 [1] : vector<8x16xf32> to vector<8xf32>
    %24 = vector.shape_cast %23 : vector<8xf32> to vector<8x1xf32>
    %25 = arith.maximumf %22, %24 : vector<8x1xf32>
    %c0_16 = arith.constant 0 : index
    %c0_17 = arith.constant 0 : index
    %c0_18 = arith.constant 0 : index
    %26 = vector.load %arg7[%c0_16, %c0_17, %c0_18] : memref<2x8x1xf32, #tpu.memory_space<vmem>>, vector<1x8x1xf32>
    %27 = vector.shape_cast %26 : vector<1x8x1xf32> to vector<8x1xf32>
    %28 = arith.subf %27, %25 : vector<8x1xf32>
    %29 = math.exp %28 : vector<8x1xf32>
    %30 = vector.broadcast %25 : vector<8x1xf32> to vector<8x16xf32>
    %31 = arith.subf %20, %30 : vector<8x16xf32>
    %32 = math.exp %31 : vector<8x16xf32>
    %c0_19 = arith.constant 0 : index
    %c0_20 = arith.constant 0 : index
    %c0_21 = arith.constant 0 : index
    %33 = vector.load %arg8[%c0_19, %c0_20, %c0_21] : memref<2x8x1xf32, #tpu.memory_space<vmem>>, vector<1x8x1xf32>
    %34 = vector.shape_cast %33 : vector<1x8x1xf32> to vector<8x1xf32>
    %35 = arith.mulf %29, %34 : vector<8x1xf32>
    %cst_22 = arith.constant dense<0.000000e+00> : vector<8xf32>
    %36 = vector.multi_reduction <add>, %32, %cst_22 [1] : vector<8x16xf32> to vector<8xf32>
    %37 = vector.shape_cast %36 : vector<8xf32> to vector<8x1xf32>
    %38 = arith.addf %35, %37 : vector<8x1xf32>
    %c0_23 = arith.constant 0 : index
    %c0_24 = arith.constant 0 : index
    %c0_25 = arith.constant 0 : index
    %39 = vector.load %arg8[%c0_23, %c0_24, %c0_25] : memref<2x8x1xf32, #tpu.memory_space<vmem>>, vector<1x8x1xf32>
    %40 = vector.shape_cast %39 : vector<1x8x1xf32> to vector<8x1xf32>
    %41 = vector.shape_cast %38 : vector<8x1xf32> to vector<1x8x1xf32>
    tpu.vector_store %arg8[%c0_23, %c0_24, %c0_25], %41 {strides = array<i32>} : memref<2x8x1xf32, #tpu.memory_space<vmem>>, vector<1x8x1xf32>,
    %c0_26 = arith.constant 0 : index
    %c0_27 = arith.constant 0 : index
    %42 = vector.load %arg9[%c0_26, %c0_27] : memref<8x256xf32, #tpu.memory_space<vmem>>, vector<8x128xf32>
    %43 = vector.broadcast %29 : vector<8x1xf32> to vector<8x128xf32>
    %44 = arith.mulf %43, %42 : vector<8x128xf32>
    %45 = arith.truncf %32 : vector<8x16xf32> to vector<8x16xbf16>
    %cst_28 = arith.constant dense<0.000000e+00> : vector<8x128xf32>
    %46 = tpu.matmul %45, %6, %cst_28 {dimension_numbers = #tpu.dot_dimension_numbers<[1], [0], [0], [1], [0, 0, 1, 1], [], []>} : vector<8x16xbf16>, vector<16x128xbf16>, vector<8x128xf32> -> vector<8x128xf32>
    %47 = arith.addf %44, %46 : vector<8x128xf32>
    %c0_29 = arith.constant 0 : index
    %c0_30 = arith.constant 0 : index
    %48 = vector.load %arg9[%c0_29, %c0_30] : memref<8x256xf32, #tpu.memory_space<vmem>>, vector<8x128xf32>
    tpu.vector_store %arg9[%c0_29, %c0_30], %47 {strides = array<i32>} : memref<8x256xf32, #tpu.memory_space<vmem>>, vector<8x128xf32>,
    %c0_31 = arith.constant 0 : index
    %c0_32 = arith.constant 0 : index
    %c0_33 = arith.constant 0 : index
    %49 = vector.load %arg7[%c0_31, %c0_32, %c0_33] : memref<2x8x1xf32, #tpu.memory_space<vmem>>, vector<1x8x1xf32>
    %50 = vector.shape_cast %49 : vector<1x8x1xf32> to vector<8x1xf32>
    %51 = vector.shape_cast %25 : vector<8x1xf32> to vector<1x8x1xf32>
    tpu.vector_store %arg7[%c0_31, %c0_32, %c0_33], %51 {strides = array<i32>} : memref<2x8x1xf32, #tpu.memory_space<vmem>>, vector<1x8x1xf32>,
    %c0_34 = arith.constant 0 : index
    %c128 = arith.constant 128 : index
    %52 = vector.load %arg3[%c0_34, %c128] : memref<8x256xbf16, #tpu.memory_space<vmem>>, vector<8x128xbf16>
    %cst_35 = arith.constant dense<0.000000e+00> : vector<8x16xf32>
    %53 = tpu.matmul %52, %4, %cst_35 {dimension_numbers = #tpu.dot_dimension_numbers<[1], [1], [0], [0], [0, 0, 1, 0], [], []>} : vector<8x128xbf16>, vector<16x128xbf16>, vector<8x16xf32> -> vector<8x16xf32>
    %54 = arith.addf %53, %17 : vector<8x16xf32>
    %c1 = arith.constant 1 : index
    %c0_36 = arith.constant 0 : index
    %c0_37 = arith.constant 0 : index
    %55 = vector.load %arg7[%c1, %c0_36, %c0_37] : memref<2x8x1xf32, #tpu.memory_space<vmem>>, vector<1x8x1xf32>
    %56 = vector.shape_cast %55 : vector<1x8x1xf32> to vector<8x1xf32>
    %cst_38 = arith.constant dense<0xFF800000> : vector<8xf32>
    %57 = vector.multi_reduction <maximumf>, %54, %cst_38 [1] : vector<8x16xf32> to vector<8xf32>
    %58 = vector.shape_cast %57 : vector<8xf32> to vector<8x1xf32>
    %59 = arith.maximumf %56, %58 : vector<8x1xf32>
    %c1_39 = arith.constant 1 : index
    %c0_40 = arith.constant 0 : index
    %c0_41 = arith.constant 0 : index
    %60 = vector.load %arg7[%c1_39, %c0_40, %c0_41] : memref<2x8x1xf32, #tpu.memory_space<vmem>>, vector<1x8x1xf32>
    %61 = vector.shape_cast %60 : vector<1x8x1xf32> to vector<8x1xf32>
    %62 = arith.subf %61, %59 : vector<8x1xf32>
    %63 = math.exp %62 : vector<8x1xf32>
    %64 = vector.broadcast %59 : vector<8x1xf32> to vector<8x16xf32>
    %65 = arith.subf %54, %64 : vector<8x16xf32>
    %66 = math.exp %65 : vector<8x16xf32>
    %c1_42 = arith.constant 1 : index
    %c0_43 = arith.constant 0 : index
    %c0_44 = arith.constant 0 : index
    %67 = vector.load %arg8[%c1_42, %c0_43, %c0_44] : memref<2x8x1xf32, #tpu.memory_space<vmem>>, vector<1x8x1xf32>
    %68 = vector.shape_cast %67 : vector<1x8x1xf32> to vector<8x1xf32>
    %69 = arith.mulf %63, %68 : vector<8x1xf32>
    %cst_45 = arith.constant dense<0.000000e+00> : vector<8xf32>
    %70 = vector.multi_reduction <add>, %66, %cst_45 [1] : vector<8x16xf32> to vector<8xf32>
    %71 = vector.shape_cast %70 : vector<8xf32> to vector<8x1xf32>
    %72 = arith.addf %69, %71 : vector<8x1xf32>
    %c1_46 = arith.constant 1 : index
    %c0_47 = arith.constant 0 : index
    %c0_48 = arith.constant 0 : index
    %73 = vector.load %arg8[%c1_46, %c0_47, %c0_48] : memref<2x8x1xf32, #tpu.memory_space<vmem>>, vector<1x8x1xf32>
    %74 = vector.shape_cast %73 : vector<1x8x1xf32> to vector<8x1xf32>
    %75 = vector.shape_cast %72 : vector<8x1xf32> to vector<1x8x1xf32>
    tpu.vector_store %arg8[%c1_46, %c0_47, %c0_48], %75 {strides = array<i32>} : memref<2x8x1xf32, #tpu.memory_space<vmem>>, vector<1x8x1xf32>,
    %c0_49 = arith.constant 0 : index
    %c128_50 = arith.constant 128 : index
    %76 = vector.load %arg9[%c0_49, %c128_50] : memref<8x256xf32, #tpu.memory_space<vmem>>, vector<8x128xf32>
    %77 = vector.broadcast %63 : vector<8x1xf32> to vector<8x128xf32>
    %78 = arith.mulf %77, %76 : vector<8x128xf32>
    %79 = arith.truncf %66 : vector<8x16xf32> to vector<8x16xbf16>
    %cst_51 = arith.constant dense<0.000000e+00> : vector<8x128xf32>
    %80 = tpu.matmul %79, %6, %cst_51 {dimension_numbers = #tpu.dot_dimension_numbers<[1], [0], [0], [1], [0, 0, 1, 1], [], []>} : vector<8x16xbf16>, vector<16x128xbf16>, vector<8x128xf32> -> vector<8x128xf32>
    %81 = arith.addf %78, %80 : vector<8x128xf32>
    %c0_52 = arith.constant 0 : index
    %c128_53 = arith.constant 128 : index
    %82 = vector.load %arg9[%c0_52, %c128_53] : memref<8x256xf32, #tpu.memory_space<vmem>>, vector<8x128xf32>
    tpu.vector_store %arg9[%c0_52, %c128_53], %81 {strides = array<i32>} : memref<8x256xf32, #tpu.memory_space<vmem>>, vector<8x128xf32>,
    %c1_54 = arith.constant 1 : index
    %c0_55 = arith.constant 0 : index
    %c0_56 = arith.constant 0 : index
    %83 = vector.load %arg7[%c1_54, %c0_55, %c0_56] : memref<2x8x1xf32, #tpu.memory_space<vmem>>, vector<1x8x1xf32>
    %84 = vector.shape_cast %83 : vector<1x8x1xf32> to vector<8x1xf32>
    %85 = vector.shape_cast %59 : vector<8x1xf32> to vector<1x8x1xf32>
    tpu.vector_store %arg7[%c1_54, %c0_55, %c0_56], %85 {strides = array<i32>} : memref<2x8x1xf32, #tpu.memory_space<vmem>>, vector<1x8x1xf32>,
    %c1_i32 = arith.constant 1 : i32
    %86 = arith.cmpi eq, %arg2, %c1_i32 : i32
    %87 = arith.extui %86 : i1 to i32
    %c0_i32_57 = arith.constant 0 : i32
    %88 = arith.cmpi ne, %87, %c0_i32_57 : i32
    scf.if %88 {
      %c0_58 = arith.constant 0 : index
      %c0_59 = arith.constant 0 : index
      %c0_60 = arith.constant 0 : index
      %89 = vector.load %arg8[%c0_58, %c0_59, %c0_60] : memref<2x8x1xf32, #tpu.memory_space<vmem>>, vector<1x8x1xf32>
      %90 = vector.shape_cast %89 : vector<1x8x1xf32> to vector<8x1xf32>
      %91 = tpu.reciprocal %90 {approx = true} : vector<8x1xf32> -> vector<8x1xf32>
      %c0_61 = arith.constant 0 : index
      %c0_62 = arith.constant 0 : index
      %92 = vector.load %arg9[%c0_61, %c0_62] : memref<8x256xf32, #tpu.memory_space<vmem>>, vector<8x128xf32>
      %93 = vector.broadcast %91 : vector<8x1xf32> to vector<8x128xf32>
      %94 = arith.mulf %92, %93 : vector<8x128xf32>
      %95 = arith.truncf %94 : vector<8x128xf32> to vector<8x128xbf16>
      %c0_63 = arith.constant 0 : index
      %c0_64 = arith.constant 0 : index
      %96 = vector.load %arg6[%c0_63, %c0_64] : memref<8x256xbf16, #tpu.memory_space<vmem>>, vector<8x128xbf16>
      tpu.vector_store %arg6[%c0_63, %c0_64], %95 {strides = array<i32>} : memref<8x256xbf16, #tpu.memory_space<vmem>>, vector<8x128xbf16>,
      %c1_65 = arith.constant 1 : index
      %c0_66 = arith.constant 0 : index
      %c0_67 = arith.constant 0 : index
      %97 = vector.load %arg8[%c1_65, %c0_66, %c0_67] : memref<2x8x1xf32, #tpu.memory_space<vmem>>, vector<1x8x1xf32>
      %98 = vector.shape_cast %97 : vector<1x8x1xf32> to vector<8x1xf32>
      %99 = tpu.reciprocal %98 {approx = true} : vector<8x1xf32> -> vector<8x1xf32>
      %c0_68 = arith.constant 0 : index
      %c128_69 = arith.constant 128 : index
      %100 = vector.load %arg9[%c0_68, %c128_69] : memref<8x256xf32, #tpu.memory_space<vmem>>, vector<8x128xf32>
      %101 = vector.broadcast %99 : vector<8x1xf32> to vector<8x128xf32>
      %102 = arith.mulf %100, %101 : vector<8x128xf32>
      %103 = arith.truncf %102 : vector<8x128xf32> to vector<8x128xbf16>
      %c0_70 = arith.constant 0 : index
      %c128_71 = arith.constant 128 : index
      %104 = vector.load %arg6[%c0_70, %c128_71] : memref<8x256xbf16, #tpu.memory_space<vmem>>, vector<8x128xbf16>
      tpu.vector_store %arg6[%c0_70, %c128_71], %103 {strides = array<i32>} : memref<8x256xbf16, #tpu.memory_space<vmem>>, vector<8x128xbf16>,
    } else {
    }
    return
  }
  func.func @transform_0(%arg0: i32, %arg1: i32, %arg2: i32) -> (i32, i32) {
    %c0_i32 = arith.constant 0 : i32
    return %arg0, %arg1 : i32, i32
  }
  func.func @transform_1(%arg0: i32, %arg1: i32, %arg2: i32) -> (i32, i32, i32, i32) {
    %c0_i32 = arith.constant 0 : i32
    %c0_i32_0 = arith.constant 0 : i32
    return %arg0, %arg1, %arg2, %c0_i32 : i32, i32, i32, i32
  }
  func.func @transform_2(%arg0: i32, %arg1: i32, %arg2: i32) -> (i32, i32, i32, i32) {
    %c0_i32 = arith.constant 0 : i32
    %c0_i32_0 = arith.constant 0 : i32
    return %arg0, %arg1, %arg2, %c0_i32 : i32, i32, i32, i32
  }
  func.func @transform_3(%arg0: i32, %arg1: i32, %arg2: i32) -> (i32, i32) {
    %c0_i32 = arith.constant 0 : i32
    return %arg0, %arg1 : i32, i32
  }
}

module attributes {stable_mosaic.version = 11 : i64} {
  func.func @_ffn_kernel(%arg0: i32, %arg1: i32, %arg2: memref<16x512xf32, #tpu.memory_space<vmem>>, %arg3: memref<1x512xf32, #tpu.memory_space<vmem>>, %arg4: memref<512x512xbf16, #tpu.memory_space<vmem>>, %arg5: memref<512x512xbf16, #tpu.memory_space<vmem>>, %arg6: memref<512x512xbf16, #tpu.memory_space<vmem>>, %arg7: memref<16x512xf32, #tpu.memory_space<vmem>>, %arg8: memref<16x512xbf16, #tpu.memory_space<vmem>>, %arg9: memref<16x512xf32, #tpu.memory_space<vmem>>) attributes {dimension_semantics = [#tpu.dimension_semantics<parallel>, #tpu.dimension_semantics<arbitrary>], iteration_bounds = array<i64: 1, 4>, scalar_prefetch = 0 : i64, scratch_operands = 2 : i64, tpu.core_type = #tpu.core_type<tc>, window_params = [{transform_indices = @transform_0, window_bounds = array<i64: 16, 512>}, {pipeline_mode = #tpu.pipeline_mode<synchronous>, transform_indices = @transform_1, window_bounds = array<i64: 1, 512>}, {transform_indices = @transform_2, window_bounds = array<i64: 512, 512>}, {transform_indices = @transform_3, window_bounds = array<i64: 512, 512>}, {transform_indices = @transform_4, window_bounds = array<i64: 512, 512>}, {transform_indices = @transform_5, window_bounds = array<i64: 16, 512>}]} {
    %c0_i32 = arith.constant 0 : i32
    %0 = arith.cmpi eq, %arg1, %c0_i32 : i32
    %1 = arith.extui %0 : i1 to i32
    %c0_i32_0 = arith.constant 0 : i32
    %2 = arith.cmpi ne, %1, %c0_i32_0 : i32
    scf.if %2 {
      %c0_16 = arith.constant 0 : index
      %c0_17 = arith.constant 0 : index
      %24 = vector.load %arg2[%c0_16, %c0_17] : memref<16x512xf32, #tpu.memory_space<vmem>>, vector<16x512xf32>
      %25 = arith.mulf %24, %24 : vector<16x512xf32>
      %cst_18 = arith.constant dense<0.000000e+00> : vector<16xf32>
      %26 = vector.multi_reduction <add>, %25, %cst_18 [1] : vector<16x512xf32> to vector<16xf32>
      %27 = vector.shape_cast %26 : vector<16xf32> to vector<16x1xf32>
      %cst_19 = arith.constant 5.120000e+02 : f32
      %28 = vector.broadcast %cst_19 : f32 to vector<16x1xf32>
      %29 = arith.divf %27, %28 : vector<16x1xf32>
      %cst_20 = arith.constant 9.99999974E-6 : f32
      %30 = vector.broadcast %cst_20 : f32 to vector<16x1xf32>
      %31 = arith.addf %29, %30 : vector<16x1xf32>
      %32 = math.rsqrt %31 : vector<16x1xf32>
      %33 = vector.broadcast %32 : vector<16x1xf32> to vector<16x512xf32>
      %34 = arith.mulf %24, %33 : vector<16x512xf32>
      %c0_21 = arith.constant 0 : index
      %c0_22 = arith.constant 0 : index
      %35 = vector.load %arg3[%c0_21, %c0_22] : memref<1x512xf32, #tpu.memory_space<vmem>>, vector<1x512xf32>
      %36 = vector.broadcast %35 : vector<1x512xf32> to vector<16x512xf32>
      %37 = arith.mulf %34, %36 : vector<16x512xf32>
      %38 = arith.truncf %37 : vector<16x512xf32> to vector<16x512xbf16>
      %c0_23 = arith.constant 0 : index
      %c0_24 = arith.constant 0 : index
      %39 = vector.load %arg8[%c0_23, %c0_24] : memref<16x512xbf16, #tpu.memory_space<vmem>>, vector<16x512xbf16>
      tpu.vector_store %arg8[%c0_23, %c0_24], %38 {strides = array<i32>} : memref<16x512xbf16, #tpu.memory_space<vmem>>, vector<16x512xbf16>,
      %cst_25 = arith.constant 0.000000e+00 : f32
      %40 = vector.broadcast %cst_25 : f32 to vector<16x512xf32>
      %c0_26 = arith.constant 0 : index
      %c0_27 = arith.constant 0 : index
      %41 = vector.load %arg9[%c0_26, %c0_27] : memref<16x512xf32, #tpu.memory_space<vmem>>, vector<16x512xf32>
      tpu.vector_store %arg9[%c0_26, %c0_27], %40 {strides = array<i32>} : memref<16x512xf32, #tpu.memory_space<vmem>>, vector<16x512xf32>,
    } else {
    }
    %c0 = arith.constant 0 : index
    %c0_1 = arith.constant 0 : index
    %3 = vector.load %arg8[%c0, %c0_1] : memref<16x512xbf16, #tpu.memory_space<vmem>>, vector<16x512xbf16>
    %c0_2 = arith.constant 0 : index
    %c0_3 = arith.constant 0 : index
    %4 = vector.load %arg4[%c0_2, %c0_3] : memref<512x512xbf16, #tpu.memory_space<vmem>>, vector<512x512xbf16>
    %cst = arith.constant dense<0.000000e+00> : vector<16x512xf32>
    %5 = tpu.matmul %3, %4, %cst {dimension_numbers = #tpu.dot_dimension_numbers<[1], [0], [0], [1], [0, 0, 1, 1], [], []>} : vector<16x512xbf16>, vector<512x512xbf16>, vector<16x512xf32> -> vector<16x512xf32>
    %c0_4 = arith.constant 0 : index
    %c0_5 = arith.constant 0 : index
    %6 = vector.load %arg5[%c0_4, %c0_5] : memref<512x512xbf16, #tpu.memory_space<vmem>>, vector<512x512xbf16>
    %cst_6 = arith.constant dense<0.000000e+00> : vector<16x512xf32>
    %7 = tpu.matmul %3, %6, %cst_6 {dimension_numbers = #tpu.dot_dimension_numbers<[1], [0], [0], [1], [0, 0, 1, 1], [], []>} : vector<16x512xbf16>, vector<512x512xbf16>, vector<16x512xf32> -> vector<16x512xf32>
    %8 = arith.negf %5 : vector<16x512xf32>
    %9 = math.exp %8 : vector<16x512xf32>
    %cst_7 = arith.constant 1.000000e+00 : f32
    %10 = vector.broadcast %cst_7 : f32 to vector<16x512xf32>
    %11 = arith.addf %10, %9 : vector<16x512xf32>
    %12 = arith.divf %10, %11 : vector<16x512xf32>
    %13 = arith.mulf %5, %12 : vector<16x512xf32>
    %14 = arith.mulf %13, %7 : vector<16x512xf32>
    %c0_8 = arith.constant 0 : index
    %c0_9 = arith.constant 0 : index
    %15 = vector.load %arg9[%c0_8, %c0_9] : memref<16x512xf32, #tpu.memory_space<vmem>>, vector<16x512xf32>
    %16 = arith.truncf %14 : vector<16x512xf32> to vector<16x512xbf16>
    %c0_10 = arith.constant 0 : index
    %c0_11 = arith.constant 0 : index
    %17 = vector.load %arg6[%c0_10, %c0_11] : memref<512x512xbf16, #tpu.memory_space<vmem>>, vector<512x512xbf16>
    %cst_12 = arith.constant dense<0.000000e+00> : vector<16x512xf32>
    %18 = tpu.matmul %16, %17, %cst_12 {dimension_numbers = #tpu.dot_dimension_numbers<[1], [0], [0], [1], [0, 0, 1, 1], [], []>} : vector<16x512xbf16>, vector<512x512xbf16>, vector<16x512xf32> -> vector<16x512xf32>
    %19 = arith.addf %15, %18 : vector<16x512xf32>
    %c0_13 = arith.constant 0 : index
    %c0_14 = arith.constant 0 : index
    %20 = vector.load %arg9[%c0_13, %c0_14] : memref<16x512xf32, #tpu.memory_space<vmem>>, vector<16x512xf32>
    tpu.vector_store %arg9[%c0_13, %c0_14], %19 {strides = array<i32>} : memref<16x512xf32, #tpu.memory_space<vmem>>, vector<16x512xf32>,
    %c3_i32 = arith.constant 3 : i32
    %21 = arith.cmpi eq, %arg1, %c3_i32 : i32
    %22 = arith.extui %21 : i1 to i32
    %c0_i32_15 = arith.constant 0 : i32
    %23 = arith.cmpi ne, %22, %c0_i32_15 : i32
    scf.if %23 {
      %c0_16 = arith.constant 0 : index
      %c0_17 = arith.constant 0 : index
      %24 = vector.load %arg2[%c0_16, %c0_17] : memref<16x512xf32, #tpu.memory_space<vmem>>, vector<16x512xf32>
      %c0_18 = arith.constant 0 : index
      %c0_19 = arith.constant 0 : index
      %25 = vector.load %arg9[%c0_18, %c0_19] : memref<16x512xf32, #tpu.memory_space<vmem>>, vector<16x512xf32>
      %26 = arith.addf %24, %25 : vector<16x512xf32>
      %c0_20 = arith.constant 0 : index
      %c0_21 = arith.constant 0 : index
      %27 = vector.load %arg7[%c0_20, %c0_21] : memref<16x512xf32, #tpu.memory_space<vmem>>, vector<16x512xf32>
      tpu.vector_store %arg7[%c0_20, %c0_21], %26 {strides = array<i32>} : memref<16x512xf32, #tpu.memory_space<vmem>>, vector<16x512xf32>,
    } else {
    }
    return
  }
  func.func @transform_0(%arg0: i32, %arg1: i32) -> (i32, i32) {
    %c0_i32 = arith.constant 0 : i32
    %c0_i32_0 = arith.constant 0 : i32
    return %arg0, %c0_i32 : i32, i32
  }
  func.func @transform_1(%arg0: i32, %arg1: i32) -> (i32, i32) {
    %c0_i32 = arith.constant 0 : i32
    %c0_i32_0 = arith.constant 0 : i32
    %c0_i32_1 = arith.constant 0 : i32
    return %c0_i32, %c0_i32_0 : i32, i32
  }
  func.func @transform_2(%arg0: i32, %arg1: i32) -> (i32, i32) {
    %c0_i32 = arith.constant 0 : i32
    %c0_i32_0 = arith.constant 0 : i32
    return %c0_i32, %arg1 : i32, i32
  }
  func.func @transform_3(%arg0: i32, %arg1: i32) -> (i32, i32) {
    %c0_i32 = arith.constant 0 : i32
    %c0_i32_0 = arith.constant 0 : i32
    return %c0_i32, %arg1 : i32, i32
  }
  func.func @transform_4(%arg0: i32, %arg1: i32) -> (i32, i32) {
    %c0_i32 = arith.constant 0 : i32
    %c0_i32_0 = arith.constant 0 : i32
    return %arg1, %c0_i32 : i32, i32
  }
  func.func @transform_5(%arg0: i32, %arg1: i32) -> (i32, i32) {
    %c0_i32 = arith.constant 0 : i32
    %c0_i32_0 = arith.constant 0 : i32
    return %arg0, %c0_i32 : i32, i32
  }
}

</mosaic_0001>

<bundles_post_ra>
// kernel: _transformer_block_impl.6
= control target key start
LH: loop header
LB: loop body
LE: loop exit
PB: predicated region body
PF: predicated region fallthrough
CT: control target
= control target key end

     0   :  { %s471_s18 = smov 0   ;;  %s473_s19 = smov 0   ;;  %s584_s0 = inlined_call_operand.vmem [shape: bf16[16,1024], index: 0, kind: input, shape index: {}, may-alias: {0,1}]   ;;  %s585_s1 = inlined_call_operand.vmem [shape: bf16[16,1024], index: 1, kind: input, shape index: {}, may-alias: {0,1}]   ;;  %s586_s2 = inlined_call_operand.hbm [shape: bf16[2,2,32,128], index: 2, kind: input, shape index: {}, may-alias: {2,4}]   ;;  %s587_s3 = inlined_call_operand.hbm [shape: bf16[2,2,32,128], index: 3, kind: input, shape index: {}, may-alias: {3,5}]   ;;  %s588_s4 = inlined_call_operand.hbm [shape: bf16[2,2,32,128], index: 4, kind: output, shape index: {0}, may-alias: {2,4}]   ;;  %s589_s5 = inlined_call_operand.hbm [shape: bf16[2,2,32,128], index: 5, kind: output, shape index: {1}, may-alias: {3,5}]  }
   0x1   :  { %s475_s20 = smov 0   ;;  %s477_s21 = smov 0  }
   0x2   :  { %s479_s22 = smov 0  }
   0x3 LB: > { %s22_s2 = sadd.s32 1, %s431_s20  ;;  %s25_s3 = sadd.s32 1, %s435_s21  ;;  %s439_s22 = sphi %s479_s22, %s16_s22   ;;  %s435_s21 = sphi %s477_s21, %s593_s21   ;;  %s431_s20 = sphi %s475_s20, %s592_s20   ;;  %s427_s19 = sphi %s473_s19, %s591_s19   ;;  %s423_s18 = sphi %s471_s18, %s590_s18  }
   0x4   : > { %p23_p0 = scmp.ge.s32.totalorder %s22_s2, 2  ;;  %p294_p1 = scmp.ge.s32.totalorder %s439_s22, 1 }
   0x5   : > { %s137_s23 = sadd.s32 4, %s423_s18  ;;  %p138_p2 = scmp.lt.s32.totalorder %s427_s19, 1 }
   0x6   : > { %s595_s2 = smov (%p23_p0, %s22_s2), 0  ;;  %s597_s3 = smov (!%p23_p0, %s25_s3), %s435_s21 }
   0x7   : > { %p140_p3 = scmp.lt.s32.totalorder %s137_s23, 7  ;;  %p27_p4 = scmp.ge.s32.totalorder %s597_s3, 2 }
   0x8   : > { %s281_s24 = sshll.u32 %s423_s18, 2  ;;  %s282_s27 = sshll.u32 %s427_s19, 3 }
   0x9   : > { %s502_s25 = scalar_select %p138_p2, %s427_s19, 1 }
   0xa   : > { %s599_s3 = smov (%p27_p4, %s597_s3), 0  ;;  %s601_s23 = smov (!%p140_p3, %s137_s23), 7 }
   0xb   : > { %s277_s26 = sshll.u32 %s502_s25, 3  ;;  %s509_s29 = sadd.s32 %s282_s27, %s281_s24 }
   0xc   : > { %s143_s28 = sadd.s32 %s277_s26, %s601_s23  ;;  %s283_s6 = sshll.u32 %s509_s29, 6 }
   0xd   : > { %s278_s30 = sshll.u32 %s143_s28, 2  ;;  %s235_s12 = scalar_lea.hbm %s588_s4, %s283_s6 }
   0xe   : > { %s145_s9 = scalar_lea.vmem %s584_s0, %s278_s30  ;;  %s236_s13 = scalar_lea.hbm %s235_s12, 192 }
   0xf   : > { %s170_s14 = sshll.u32 %s145_s9, 4  ;;  %s147_s15 = sadd.s32 6, %s423_s18  ;;  %s171_s14 = int_to_ptr.vmem [resolvable:$true] %s170_s14 }
  0x10   : > { %s335_s16 = scalar_lea.vmem %s171_s14, 64  ;;  %s339_s23 = sshll.u32 %s584_s0, 4  ;;  %s340_s23 = int_to_ptr.vmem [resolvable:$false] %s339_s23 }
  0x11   : > { %p336_p5 = scmp.ne.s32.totalorder %s171_s14, %s335_s16  ;;  %s341_s24 = scalar_lea.vmem %s340_s23, 1024 }
  0x12   : > { %p342_p8 = scmp.lt.s32.totalorder %s171_s14, %s340_s23  ;;  %p343_p9 = scmp.lt.s32.totalorder %s341_s24, %s335_s16 }
  0x13   : > { %p337_p6 = pnand %p336_p5, %p294_p1 }
  0x14   : > { %p344_p10 = por %p343_p9, %p342_p8 }
  0x15   : > { %p338_p7 = pneg %p337_p6 }
  0x17   : > { %p345_p11 = pnand %p344_p10, %p338_p7 }
  0x19   : > { %348 = shalt.err (!%p345_p11)  }
  0x1a   : > { %s363_s27 = scalar_lea.hbm %s235_s12, 256  ;;  %s353_s30 = scalar_lea.hbm %s588_s4, 1024 }
  0x1b   : > { %p350_p12 = scmp.ne.s32.totalorder %s236_s13, %s363_s27  ;;  %p354_p2 = scmp.lt.u32.totalorder %s236_s13, %s588_s4 }
  0x1c   : > { %p355_p3 = scmp.lt.u32.totalorder %s353_s30, %s363_s27  ;;  %p357_p5 = scmp.lt.u32.totalorder %s363_s27, %s236_s13 }
  0x1d   : > { %p351_p13 = pnand %p350_p12, %p294_p1 }
  0x1e   : > { %p356_p4 = por %p355_p3, %p354_p2 }
  0x1f   : > { %p352_p0 = pneg %p351_p13 }
  0x20   : > { %p358_p6 = por %p357_p5, %p356_p4 }
  0x22   : > { %p359_p7 = pnand %p358_p6, %p352_p0 }
  0x24   : > { %362 = shalt.err (!%p359_p7)  }
  0x25   : > { %290 = dma.vmem_to_hbm [thread:$0]  (%p294_p1), %s171_s14, 64, %s236_s13, [#allocation2] }
  0x26   : > { %p150_p8 = scmp.lt.s32.totalorder %s147_s15, 7  ;;  %s241_s11 = scalar_lea.hbm %s589_s5, %s283_s6 }
  0x27   : > { %s242_s24 = scalar_lea.hbm %s241_s11, 192  ;;  %s368_s14 = sshll.u32 %s585_s1, 4  ;;  %s369_s14 = int_to_ptr.vmem [resolvable:$false] %s368_s14 }
  0x28   : > { %s603_s15 = smov (!%p150_p8, %s147_s15), 7  ;;  %s370_s25 = scalar_lea.vmem %s369_s14, 1024 }
  0x29   : > { %s153_s12 = sadd.s32 %s277_s26, %s603_s15 }
  0x2a   : > { %s280_s16 = sshll.u32 %s153_s12, 2 }
  0x2b   : > { %s155_s23 = scalar_lea.vmem %s585_s1, %s280_s16 }
  0x2c   : > { %s184_s27 = sshll.u32 %s155_s23, 4  ;;  %s185_s27 = int_to_ptr.vmem [resolvable:$true] %s184_s27 }
  0x2d   : > { %s364_s18 = scalar_lea.vmem %s185_s27, 64  ;;  %p371_p12 = scmp.lt.s32.totalorder %s185_s27, %s369_s14 }
  0x2e   : > { %p365_p9 = scmp.ne.s32.totalorder %s185_s27, %s364_s18  ;;  %p372_p13 = scmp.lt.s32.totalorder %s370_s25, %s364_s18 }
  0x30   : > { %p366_p10 = pnand %p365_p9, %p294_p1  ;;  %p373_p0 = por %p372_p13, %p371_p12 }
  0x32   : > { %p367_p11 = pneg %p366_p10 }
  0x34   : > { %p374_p2 = pnand %p373_p0, %p367_p11 }
  0x36   : > { %377 = shalt.err (!%p374_p2)  }
  0x37   : > { %s392_s26 = scalar_lea.hbm %s241_s11, 256  ;;  %s382_s28 = scalar_lea.hbm %s589_s5, 1024 }
  0x38   : > { %p379_p3 = scmp.ne.s32.totalorder %s242_s24, %s392_s26  ;;  %p383_p6 = scmp.lt.u32.totalorder %s242_s24, %s589_s5 }
  0x39   : > { %p384_p7 = scmp.lt.u32.totalorder %s382_s28, %s392_s26  ;;  %p386_p9 = scmp.lt.u32.totalorder %s392_s26, %s242_s24 }
  0x3a   : > { %p380_p4 = pnand %p379_p3, %p294_p1 }
  0x3b   : > { %p385_p8 = por %p384_p7, %p383_p6 }
  0x3c   : > { %p381_p5 = pneg %p380_p4 }
  0x3d   : > { %p387_p10 = por %p386_p9, %p385_p8 }
  0x3f   : > { %p388_p11 = pnand %p387_p10, %p381_p5 }
  0x41   : > { %391 = shalt.err (!%p388_p11)  }
  0x42   : > { %291 = dma.vmem_to_hbm [thread:$0]  (%p294_p1), %s185_s27, 64, %s242_s24, [#allocation2 + $0x1] }
  0x43   : > { %414 = dma.done.wait (%p294_p1), [#allocation2], 64 }
  0x44   : > { %416 = vsyncadd (%p294_p1), [#allocation2], 4294967232 }
  0x45   : > { %418 = dma.done.wait (%p294_p1), [#allocation2 + $0x1], 64 }
  0x46   : > { %420 = vsyncadd (%p294_p1), [#allocation2 + $0x1], 4294967232  ;;  %s16_s22 = sadd.s32 1, %s439_s22   ;;  %s590_s18 = smov %s431_s20 }
  0x47   : > { %p13_p12 = scmp.ge.s32.totalorder %s16_s22, 5   ;;  %s591_s19 = smov %s435_s21 }
  0x48   : > { %s592_s20 = smov %s595_s2  ;;  %s593_s21 = smov %s599_s3 }
  0x49   :  { %15 = sbr.rel (!%p13_p12) target bundleno = 3 (0x3), region = 57 }
  0x50   :  { %194 = vsyncmov [#allocation2] }
  0x53   :  { %s195_s8 = vpop.sfrf %194 }
  0x54   :  { %p287_p1 = scmp.ne.s32.totalorder %s195_s8, 0 }
  0x56   :  { %199 = shalt.err (%p287_p1)  }
  0x57   :  { %201 = vsyncmov [#allocation2 + $0x1] }
  0x5a   :  { %s202_s9 = vpop.sfrf %201 }
  0x5b   :  { %p288_p13 = scmp.ne.s32.totalorder %s202_s9, 0 }
  0x5d   :  { %206 = shalt.err (%p288_p13)  }

// kernel: _transformer_block_impl.8
= control target key start
LH: loop header
LB: loop body
LE: loop exit
PB: predicated region body
PF: predicated region fallthrough
CT: control target
= control target key end

     0   :  { %8 = vsyncpa [#allocation3], 0  ;;  %s1610_s0 = inlined_call_operand.vmem [shape: bf16[16,512], index: 0, kind: input, shape index: {}]   ;;  %s1611_s1 = inlined_call_operand.hbm [shape: bf16[512,512], index: 1, kind: input, shape index: {}]   ;;  %s1612_s2 = inlined_call_operand.hbm [shape: f32[16,512], index: 2, kind: input, shape index: {}]   ;;  %s1613_s3 = inlined_call_operand.vmem [shape: f32[16,512], index: 3, kind: output, shape index: {}]  }
   0x1   :  { %10 = vsyncpa [#allocation3 + $0x1], 0 }
   0x2   :  { %11 = vsyncpa [#allocation5], 0 }
   0x3   :  { %13 = vsyncpa [#allocation5 + $0x1], 0  ;;  %s1335_s12 = smov 0   ;;  %s1337_s13 = smov 0  }
   0x4   :  { %s1339_s14 = smov 0   ;;  %s1341_s15 = smov 0  }
   0x5   :  { %s1343_s16 = smov 0   ;;  %s1345_s17 = smov 0  }
   0x6 LB: > { %s930_s18 = sadd.s32 4294967295, %s1306_s17   ;;  %s28_s19 = sadd.s32 1, %s1302_s16  ;;  %s1306_s17 = sphi %s1345_s17, %s19_s17   ;;  %s1302_s16 = sphi %s1343_s16, %s1627_s16   ;;  %s1298_s15 = sphi %s1341_s15, %s1626_s15   ;;  %s1294_s14 = sphi %s1339_s14, %s1625_s14   ;;  %s1290_s13 = sphi %s1337_s13, %s1624_s13   ;;  %s1286_s12 = sphi %s1335_s12, %s1623_s12  }
   0x7   : > { %p29_p0 = scmp.ge.s32.totalorder %s28_s19, 2  ;;  %s64_s20 = sadd.s32 1, %s1294_s14 }
   0x8   : > { %p71_p1 = scmp.ne.s32.totalorder %s1294_s14, %s1290_s13  ;;  %p72_p2 = scmp.eq.s32.totalorder %s1306_s17, 0 }
   0x9   : > { %s1629_s19 = smov (%p29_p0, %s28_s19), 0  ;;  %p77_p4 = scmp.ne.s32.totalorder %s1290_s13, %s1286_s12 }
   0xa   : > { %p1371_p3 = por %p72_p2, %p71_p1  ;;  %s61_s22 = ssub.s32 %s1302_s16, %s1629_s19 }
   0xb   : > { %p78_p5 = scmp.eq.s32.totalorder %s930_s18, 0  ;;  %p62_p6 = scmp.eq.s32.totalorder %s61_s22, 0 }
   0xc   : > { %p131_p7 = scmp.eq.s32.totalorder %s930_s18, 1  ;;  %p1036_p10 = scmp.lt.s32.totalorder %s1306_s17, 2 }
   0xd   : > { %p1378_p8 = por %p78_p5, %p77_p4  ;;  %s1391_s26 = sand.u32 1, %s1294_s14  }
   0xe   : > { %s1383_s24 = scalar_select %p62_p6, %s1294_s14, %s64_s20  }
   0xf   : > { %s1616_s23 = scalar_select %p1378_p8, 1, 0 }
  0x10   : > { %p1385_p9 = por %p131_p7, %p71_p1  ;;  %s1018_s27 = sshll.u32 %s1302_s16, 7 }
  0x11   : > { %s935_s28 = sshll.u32 %s1391_s26, 9  ;;  %s1398_s4 = scalar_lea.hbm %s1611_s1, %s1018_s27 }
  0x12   : > { %s1617_s25 = scalar_select %p1385_p9, 1, 0 }
  0x13   : > { %s171_s5 = scalar_lea.vmem [#allocation2], %s935_s28  ;;  %p1402_p11 = pnand %p1036_p10, %p1371_p3 }
  0x14   : > { %s178_s6 = sshll.u32 %s171_s5, 4  ;;  %s168_s8 = scalar_lea.sflag [#allocation3], %s1391_s26  ;;  %s1406_s6 = int_to_ptr.vmem [resolvable:$true] %s178_s6 }
  0x15   : > { %s1192_s9 = scalar_lea.hbm %s1398_s4, 8192  ;;  %p1194_p0 = pneg %p1402_p11 }
  0x16   : > { %p1193_p13 = scmp.ne.s32.totalorder %s1398_s4, %s1192_s9  ;;  %s1197_s12 = scalar_lea.hbm %s1611_s1, 16384 }
  0x17   : > { %p1198_p3 = scmp.lt.u32.totalorder %s1398_s4, %s1611_s1  ;;  %p1199_p4 = scmp.lt.u32.totalorder %s1197_s12, %s1192_s9 }
  0x18   : > { %p1195_p1 = pnand %p1194_p0, %p1193_p13  ;;  %p1201_p6 = scmp.lt.u32.totalorder %s1192_s9, %s1398_s4 }
  0x19   : > { %p1200_p5 = por %p1199_p4, %p1198_p3 }
  0x1a   : > { %p1196_p2 = pneg %p1195_p1 }
  0x1b   : > { %p1202_p7 = por %p1201_p6, %p1200_p5 }
  0x1d   : > { %p1203_p10 = pnand %p1202_p7, %p1196_p2 }
  0x1f   : > { %1206 = shalt.err (!%p1203_p10)
}
  0x20   : > { %s1207_s21 = scalar_lea.vmem %s1406_s6, 8192  ;;  %s1308_s22 = smov [#allocation2]  }
  0x21   : > { %p1208_p13 = scmp.ne.s32.totalorder %s1406_s6, %s1207_s21  ;;  %s1212_s27 = sshll.u32 %s1308_s22, 4  ;;  %s1213_s27 = int_to_ptr.vmem [resolvable:$false] %s1212_s27 }
  0x22   : > { %s1214_s28 = scalar_lea.vmem %s1213_s27, 16384  ;;  %p1215_p9 = scmp.lt.s32.totalorder %s1406_s6, %s1213_s27 }
  0x23   : > { %p1210_p1 = pnand %p1208_p13, %p1194_p0  ;;  %p1216_p3 = scmp.lt.s32.totalorder %s1214_s28, %s1207_s21 }
  0x25   : > { %p1211_p12 = pneg %p1210_p1  ;;  %p1217_p4 = por %p1216_p3, %p1215_p9 }
  0x27   : > { %p1218_p5 = pnand %p1217_p4, %p1211_p12 }
  0x29   : > { %1221 = shalt.err (!%p1218_p5)
}
  0x2a   : > { %s1309_s29 = smov 256   ;;  %s1310_s30 = smov 128  }
  0x2b   : > { %s1311_s5 = smov 8   ;;  %p210_p9 = scmp.lt.s32.totalorder %s1306_s17, 3 }
  0x2c   : > { %1032 = dma.hbm_to_vmem [thread:$0]  (!%p1402_p11), %s1398_s4, 8192, %s1406_s6, %s168_s8, %s1309_s29, %s1310_s30, %s1311_s5  }
  0x2d   : > { %s938_s9 = sshll.u32 %s1391_s26, 5  ;;  %s1019_s10 = sshll.u32 %s1302_s16, 8 }
  0x2e   : > { %p1619_p12 = scmp.ge.s32.totalorder %s1306_s17, 1  ;;  %s1450_s20 = scalar_lea.hbm %s1612_s2, %s1019_s10 }
  0x2f   : > { %s192_s21 = scalar_lea.vmem [#allocation4], %s938_s9  ;;  %s189_s4 = scalar_lea.sflag [#allocation5], %s1391_s26 }
  0x30   : > { %p1443_p2 = pnand %p1619_p12, %p210_p9  ;;  %s202_s22 = sshll.u32 %s192_s21, 4  ;;  %s1452_s22 = int_to_ptr.vmem [resolvable:$true] %s202_s22 }
  0x31   : > { %s1222_s6 = scalar_lea.hbm %s1450_s20, 512  ;;  %s1227_s28 = scalar_lea.hbm %s1612_s2, 1024 }
  0x32   : > { %p1223_p6 = scmp.ne.s32.totalorder %s1450_s20, %s1222_s6  ;;  %p1228_p13 = scmp.lt.u32.totalorder %s1450_s20, %s1612_s2 }
  0x33   : > { %p1229_p1 = scmp.lt.u32.totalorder %s1227_s28, %s1222_s6  ;;  %p1231_p4 = scmp.lt.u32.totalorder %s1222_s6, %s1450_s20 }
  0x34   : > { %p1225_p7 = pnand %p1223_p6, %p1194_p0 }
  0x35   : > { %p1230_p3 = por %p1229_p1, %p1228_p13 }
  0x36   : > { %p1226_p10 = pneg %p1225_p7 }
  0x37   : > { %p1232_p5 = por %p1231_p4, %p1230_p3 }
  0x39   : > { %p1233_p9 = pnand %p1232_p5, %p1226_p10 }
  0x3b   : > { %1236 = shalt.err (!%p1233_p9)
}
  0x3c   : > { %s1237_s9 = scalar_lea.vmem %s1452_s22, 512  ;;  %s1312_s10 = smov [#allocation4]  }
  0x3d   : > { %p1238_p12 = scmp.ne.s32.totalorder %s1452_s22, %s1237_s9  ;;  %s1242_s12 = sshll.u32 %s1312_s10, 4  ;;  %s1243_s12 = int_to_ptr.vmem [resolvable:$false] %s1242_s12 }
  0x3e   : > { %s1244_s18 = scalar_lea.vmem %s1243_s12, 1024  ;;  %p1245_p8 = scmp.lt.s32.totalorder %s1452_s22, %s1243_s12 }
  0x3f   : > { %p1240_p6 = pnand %p1238_p12, %p1194_p0  ;;  %p1246_p13 = scmp.lt.s32.totalorder %s1244_s18, %s1237_s9 }
  0x41   : > { %p1241_p7 = pneg %p1240_p6  ;;  %p1247_p1 = por %p1246_p13, %p1245_p8 }
  0x43   : > { %p1248_p3 = pnand %p1247_p1, %p1241_p7 }
  0x45   : > { %1251 = shalt.err (!%p1248_p3)
}
  0x46   : > { %s1313_s21 = smov 512   ;;  %s1314_s6 = smov 16  }
  0x47   : > { %1035 = dma.hbm_to_vmem [thread:$0]  (!%p1402_p11), %s1450_s20, 512, %s1452_s22, %s189_s4, %s1313_s21, %s1309_s29, %s1314_s6  }
  0x48   : > { %214 = sbr.rel (%p1443_p2) target bundleno = 377 (0x179), region = 32  ;;  %s1484_s8 = sand.u32 (!%p1443_p2), 1, %s1290_s13  }
  0x49   : > { %s942_s27 = sshll.u32 (!%p1443_p2), %s1484_s8, 9  ;;  %s217_s28 = scalar_lea.sflag (!%p1443_p2), [#allocation3], %s1484_s8 }
  0x4a   : > { %s1488_s30 = scalar_lea.vmem (!%p1443_p2), [#allocation2], %s942_s27  ;;  %p1621_p8 = scmp.ne.s32.totalorder (!%p1443_p2), %s1616_s23, 0 }
  0x4f   : > { %1277 = dma.done.wait (%p1621_p8), %s217_s28, 8192  }
  0x50   : > { %1279 = vsyncadd (%p1621_p8), %s217_s28, 4294959104  ;;  %s943_s26 = sshll.u32 %s1484_s8, 5  ;;  %s226_s7 = scalar_lea.sflag [#allocation5], %s1484_s8 }
  0x51   : > { %s1498_s29 = scalar_lea.vmem [#allocation4], %s943_s26 }
  0x52   : > { %1281 = dma.done.wait (%p1621_p8), %s226_s7, 512  }
  0x53   : > { %1283 = vsyncadd (%p1621_p8), %s226_s7, 4294966784  ;;  %v1090_v0 = vld [vmem:[%s1488_s30 + $0x4] ss:$8 sps:$4 sm:$0xff]   ;;  %v1094_v2 = vld [vmem:[%s1488_s30] ss:$8 sps:$4 sm:$0xff]   ;;  %s261_s12 = scalar_lea.vmem [#allocation6], %s943_s26 }
  0x54   : > { %v1092_v1 = vld [vmem:[%s1488_s30 + $0x104] ss:$8 sps:$4 sm:$0xff]   ;;  %686 = vmatprep.subr.bf16.mxu1 %v1090_v0  ;;  %v1095_v3 = vld [vmem:[%s1488_s30 + $0x100] ss:$8 sps:$4 sm:$0xff]   ;;  %v1096_v4 = vld [vmem:[%s1488_s30 + $0x14] ss:$8 sps:$4 sm:$0xff]  }
  0x55   : > { %729 = vmatprep.subr.bf16.mxu0 %v1092_v1  ;;  %687 = vmatpush1.bf16.msra.mxu1 %v1094_v2  ;;  %v1098_v5 = vld [vmem:[%s1488_s30 + $0x114] ss:$8 sps:$4 sm:$0xff]   ;;  %v1100_v6 = vld [vmem:[%s1488_s30 + $0x10] ss:$8 sps:$4 sm:$0xff]   ;;  %v1102_v8 = vld [vmem:[%s1488_s30 + $0x24] ss:$8 sps:$4 sm:$0xff]  }
  0x56   : > { %730 = vmatpush1.bf16.msra.mxu0 %v1095_v3  ;;  %688 = vmatprep.subr.bf16.mxu1 %v1096_v4  ;;  %v1101_v7 = vld [vmem:[%s1488_s30 + $0x110] ss:$8 sps:$4 sm:$0xff]   ;;  %v1104_v9 = vld [vmem:[%s1488_s30 + $0x124] ss:$8 sps:$4 sm:$0xff]   ;;  %v1106_v10 = vld [vmem:[%s1488_s30 + $0x20] ss:$8 sps:$4 sm:$0xff]  }
  0x57   : > { %731 = vmatprep.subr.bf16.mxu0 %v1098_v5  ;;  %v1107_v11 = vld [vmem:[%s1488_s30 + $0x120] ss:$8 sps:$4 sm:$0xff]   ;;  %v1108_v12 = vld [vmem:[%s1488_s30 + $0x34] ss:$8 sps:$4 sm:$0xff]   ;;  %v1112_v14 = vld [vmem:[%s1488_s30 + $0x30] ss:$8 sps:$4 sm:$0xff]  }
  0x58   : > { %v1110_v13 = vld [vmem:[%s1488_s30 + $0x134] ss:$8 sps:$4 sm:$0xff]   ;;  %v1113_v15 = vld [vmem:[%s1488_s30 + $0x130] ss:$8 sps:$4 sm:$0xff]   ;;  %v1114_v16 = vld [vmem:[%s1488_s30 + $0x44] ss:$8 sps:$4 sm:$0xff]  }
  0x59   : > { %689 = vmatpush1.bf16.msra.mxu1 %v1100_v6  ;;  %v1116_v17 = vld [vmem:[%s1488_s30 + $0x144] ss:$8 sps:$4 sm:$0xff]   ;;  %v1118_v18 = vld [vmem:[%s1488_s30 + $0x40] ss:$8 sps:$4 sm:$0xff]   ;;  %v1120_v20 = vld [vmem:[%s1488_s30 + $0x54] ss:$8 sps:$4 sm:$0xff]  }
  0x5a   : > { %732 = vmatpush1.bf16.msra.mxu0 %v1101_v7  ;;  %690 = vmatprep.subr.bf16.mxu1 %v1102_v8  ;;  %v1119_v19 = vld [vmem:[%s1488_s30 + $0x140] ss:$8 sps:$4 sm:$0xff]   ;;  %v1122_v21 = vld [vmem:[%s1488_s30 + $0x154] ss:$8 sps:$4 sm:$0xff]   ;;  %v1124_v22 = vld [vmem:[%s1488_s30 + $0x50] ss:$8 sps:$4 sm:$0xff]  }
  0x5b   : > { %733 = vmatprep.subr.bf16.mxu0 %v1104_v9  ;;  %v1125_v23 = vld [vmem:[%s1488_s30 + $0x150] ss:$8 sps:$4 sm:$0xff]   ;;  %v1126_v24 = vld [vmem:[%s1488_s30 + $0x64] ss:$8 sps:$4 sm:$0xff]   ;;  %v1130_v26 = vld [vmem:[%s1488_s30 + $0x60] ss:$8 sps:$4 sm:$0xff]  }
  0x5c   : > { %v1128_v25 = vld [vmem:[%s1488_s30 + $0x164] ss:$8 sps:$4 sm:$0xff]   ;;  %v1131_v27 = vld [vmem:[%s1488_s30 + $0x160] ss:$8 sps:$4 sm:$0xff]   ;;  %v1132_v28 = vld [vmem:[%s1488_s30 + $0x74] ss:$8 sps:$4 sm:$0xff]  }
  0x5d   : > { %691 = vmatpush1.bf16.msra.mxu1 %v1106_v10  ;;  %v1134_v29 = vld [vmem:[%s1488_s30 + $0x174] ss:$8 sps:$4 sm:$0xff]   ;;  %v1136_v30 = vld [vmem:[%s1488_s30 + $0x70] ss:$8 sps:$4 sm:$0xff]   ;;  %v1138_v32 = vld [vmem:[%s1488_s30 + $0x84] ss:$8 sps:$4 sm:$0xff]  }
  0x5e   : > { %734 = vmatpush1.bf16.msra.mxu0 %v1107_v11  ;;  %692 = vmatprep.subr.bf16.mxu1 %v1108_v12  ;;  %v1137_v31 = vld [vmem:[%s1488_s30 + $0x170] ss:$8 sps:$4 sm:$0xff]   ;;  %v1140_v33 = vld [vmem:[%s1488_s30 + $0x184] ss:$8 sps:$4 sm:$0xff]   ;;  %v1142_v34 = vld [vmem:[%s1488_s30 + $0x80] ss:$8 sps:$4 sm:$0xff]  }
  0x5f   : > { %735 = vmatprep.subr.bf16.mxu0 %v1110_v13  ;;  %v1143_v35 = vld [vmem:[%s1488_s30 + $0x180] ss:$8 sps:$4 sm:$0xff]   ;;  %v1144_v36 = vld [vmem:[%s1488_s30 + $0x94] ss:$8 sps:$4 sm:$0xff]   ;;  %v1148_v38 = vld [vmem:[%s1488_s30 + $0x90] ss:$8 sps:$4 sm:$0xff]  }
  0x60   : > { %v1146_v37 = vld [vmem:[%s1488_s30 + $0x194] ss:$8 sps:$4 sm:$0xff]   ;;  %v1149_v39 = vld [vmem:[%s1488_s30 + $0x190] ss:$8 sps:$4 sm:$0xff]   ;;  %v1150_v40 = vld [vmem:[%s1488_s30 + $0xa4] ss:$8 sps:$4 sm:$0xff]  }
  0x61   : > { %693 = vmatpush1.bf16.msra.mxu1 %v1112_v14  ;;  %v1152_v41 = vld [vmem:[%s1488_s30 + $0x1a4] ss:$8 sps:$4 sm:$0xff]   ;;  %v1154_v42 = vld [vmem:[%s1488_s30 + $0xa0] ss:$8 sps:$4 sm:$0xff]   ;;  %v1156_v44 = vld [vmem:[%s1488_s30 + $0xb4] ss:$8 sps:$4 sm:$0xff]  }
  0x62   : > { %736 = vmatpush1.bf16.msra.mxu0 %v1113_v15  ;;  %694 = vmatprep.subr.bf16.mxu1 %v1114_v16  ;;  %v1155_v43 = vld [vmem:[%s1488_s30 + $0x1a0] ss:$8 sps:$4 sm:$0xff]   ;;  %v1158_v45 = vld [vmem:[%s1488_s30 + $0x1b4] ss:$8 sps:$4 sm:$0xff]   ;;  %v1160_v46 = vld [vmem:[%s1488_s30 + $0xb0] ss:$8 sps:$4 sm:$0xff]  }
  0x63   : > { %737 = vmatprep.subr.bf16.mxu0 %v1116_v17  ;;  %v1188_v47 = vld [vmem:[%s1610_s0 + $0x4] ss:$16 sps:$4 sm:$0xff]   ;;  %v1161_v48 = vld [vmem:[%s1488_s30 + $0x1b0] ss:$8 sps:$4 sm:$0xff]   ;;  %v1191_v51 = vld [vmem:[%s1610_s0 + $0xc] ss:$16 sps:$4 sm:$0xff]  }
  0x64   : > { %v1162_v49 = vld [vmem:[%s1488_s30 + $0xc4] ss:$8 sps:$4 sm:$0xff]   ;;  %718 = vmatprep.mubr.bf16.mxu1 %v1188_v47  ;;  %761 = vmatprep.mubr.bf16.mxu0 %v1191_v51  ;;  %v1166_v52 = vld [vmem:[%s1488_s30 + $0xc0] ss:$8 sps:$4 sm:$0xff]   ;;  %v1168_v54 = vld [vmem:[%s1488_s30 + $0xd4] ss:$8 sps:$4 sm:$0xff]  }
  0x65   : > { %695 = vmatpush1.bf16.msra.mxu1 %v1118_v18  ;;  %v1164_v50 = vld [vmem:[%s1488_s30 + $0x1c4] ss:$8 sps:$4 sm:$0xff]   ;;  %v1167_v53 = vld [vmem:[%s1488_s30 + $0x1c0] ss:$8 sps:$4 sm:$0xff]   ;;  %v1170_v55 = vld [vmem:[%s1488_s30 + $0x1d4] ss:$8 sps:$4 sm:$0xff]  }
  0x66   : > { %738 = vmatpush1.bf16.msra.mxu0 %v1119_v19  ;;  %696 = vmatprep.subr.bf16.mxu1 %v1120_v20  ;;  %v1172_v56 = vld [vmem:[%s1488_s30 + $0xd0] ss:$8 sps:$4 sm:$0xff]   ;;  %v1174_v58 = vld [vmem:[%s1488_s30 + $0xe4] ss:$8 sps:$4 sm:$0xff]   ;;  %v1178_v60 = vld [vmem:[%s1488_s30 + $0xe0] ss:$8 sps:$4 sm:$0xff]  }
  0x67   : > { %739 = vmatprep.subr.bf16.mxu0 %v1122_v21  ;;  %v1173_v57 = vld [vmem:[%s1488_s30 + $0x1d0] ss:$8 sps:$4 sm:$0xff]   ;;  %v1176_v59 = vld [vmem:[%s1488_s30 + $0x1e4] ss:$8 sps:$4 sm:$0xff]   ;;  %v1179_v61 = vld [vmem:[%s1488_s30 + $0x1e0] ss:$8 sps:$4 sm:$0xff]  }
  0x68   : > { %v1180_v62 = vld [vmem:[%s1488_s30 + $0xf4] ss:$8 sps:$4 sm:$0xff]   ;;  %v1184_v0 = vld [vmem:[%s1488_s30 + $0xf0] ss:$8 sps:$4 sm:$0xff]   ;;  %v274_v5 = vld [vmem:[%s1498_s29] sm:$0xff]  ;;  %p1622_p11 = scmp.ne.s32.totalorder %s1617_s25, 0 }
  0x69   : > { %697 = vmatpush1.bf16.msra.mxu1 %v1124_v22  ;;  %v1182_v63 = vld [vmem:[%s1488_s30 + $0x1f4] ss:$8 sps:$4 sm:$0xff]   ;;  %v1185_v1 = vld [vmem:[%s1488_s30 + $0x1f0] ss:$8 sps:$4 sm:$0xff]   ;;  %v275_v9 = vld [vmem:[%s1498_s29 + $0x8] sm:$0xff]  ;;  %s1020_s18 = sshll.u32 (%p1622_p11), %s1298_s15, 4 }
  0x6a   : > { %740 = vmatpush1.bf16.msra.mxu0 %v1125_v23  ;;  %698 = vmatprep.subr.bf16.mxu1 %v1126_v24  ;;  %v1186_v2 = vld [vmem:[%s1610_s0] ss:$16 sps:$4 sm:$0xff]   ;;  %v1189_v3 = vld [vmem:[%s1610_s0 + $0x8] ss:$16 sps:$4 sm:$0xff]   ;;  %s792_s27 = scalar_lea.vmem (%p1622_p11), %s1613_s3, %s1020_s18 }
  0x6b   : > { %741 = vmatprep.subr.bf16.mxu0 %v1128_v25  ;;  %v276_v13 = vld [vmem:[%s1498_s29 + $0x10] sm:$0xff]  ;;  %v277_v18 = vld [vmem:[%s1498_s29 + $0x18] sm:$0xff] }
  0x6d   : > { %699 = vmatpush1.bf16.msra.mxu1 %v1130_v26 }
  0x6e   : > { %742 = vmatpush1.bf16.msra.mxu0 %v1131_v27  ;;  %700 = vmatprep.subr.bf16.mxu1 %v1132_v28 }
  0x6f   : > { %743 = vmatprep.subr.bf16.mxu0 %v1134_v29 }
  0x71   : > { %701 = vmatpush1.bf16.msra.mxu1 %v1136_v30 }
  0x72   : > { %744 = vmatpush1.bf16.msra.mxu0 %v1137_v31  ;;  %702 = vmatprep.subr.bf16.mxu1 %v1138_v32 }
  0x73   : > { %745 = vmatprep.subr.bf16.mxu0 %v1140_v33 }
  0x75   : > { %703 = vmatpush1.bf16.msra.mxu1 %v1142_v34 }
  0x76   : > { %746 = vmatpush1.bf16.msra.mxu0 %v1143_v35  ;;  %704 = vmatprep.subr.bf16.mxu1 %v1144_v36 }
  0x77   : > { %747 = vmatprep.subr.bf16.mxu0 %v1146_v37 }
  0x79   : > { %705 = vmatpush1.bf16.msra.mxu1 %v1148_v38 }
  0x7a   : > { %748 = vmatpush1.bf16.msra.mxu0 %v1149_v39  ;;  %706 = vmatprep.subr.bf16.mxu1 %v1150_v40 }
  0x7b   : > { %749 = vmatprep.subr.bf16.mxu0 %v1152_v41 }
  0x7d   : > { %707 = vmatpush1.bf16.msra.mxu1 %v1154_v42 }
  0x7e   : > { %750 = vmatpush1.bf16.msra.mxu0 %v1155_v43  ;;  %708 = vmatprep.subr.bf16.mxu1 %v1156_v44 }
  0x7f   : > { %751 = vmatprep.subr.bf16.mxu0 %v1158_v45 }
  0x81   : > { %709 = vmatpush1.bf16.msra.mxu1 %v1160_v46 }
  0x82   : > { %752 = vmatpush1.bf16.msra.mxu0 %v1161_v48  ;;  %710 = vmatprep.subr.bf16.mxu1 %v1162_v49 }
  0x83   : > { %753 = vmatprep.subr.bf16.mxu0 %v1164_v50 }
  0x85   : > { %711 = vmatpush1.bf16.msra.mxu1 %v1166_v52 }
  0x86   : > { %754 = vmatpush1.bf16.msra.mxu0 %v1167_v53  ;;  %712 = vmatprep.subr.bf16.mxu1 %v1168_v54 }
  0x87   : > { %755 = vmatprep.subr.bf16.mxu0 %v1170_v55 }
  0x89   : > { %713 = vmatpush1.bf16.msra.mxu1 %v1172_v56 }
  0x8a   : > { %756 = vmatpush1.bf16.msra.mxu0 %v1173_v57  ;;  %714 = vmatprep.subr.bf16.mxu1 %v1174_v58 }
  0x8b   : > { %757 = vmatprep.subr.bf16.mxu0 %v1176_v59 }
  0x8d   : > { %715 = vmatpush1.bf16.msra.mxu1 %v1178_v60 }
  0x8e   : > { %758 = vmatpush1.bf16.msra.mxu0 %v1179_v61  ;;  %716 = vmatprep.subr.bf16.mxu1 %v1180_v62 }
  0x8f   : > { %759 = vmatprep.subr.bf16.mxu0 %v1182_v63 }
  0x91   : > { %717 = vmatpush1.bf16.msra.mxu1 %v1184_v0 }
  0x92   : > { %760 = vmatpush1.bf16.msra.mxu0 %v1185_v1 }
  0x94   : > { %719 = vmatmul.mubr.bf16.vlgmr.msra.gmra.mrb[0].mxu1 %v1186_v2 }
  0x95   : > { %762 = vmatmul.mubr.bf16.vlgmr.msra.gmra.mrb[0].mxu0 %v1189_v3 }
 0x167   : > { %v720_v4 = vpop.f32.mrb[0].mxu1 }
 0x168   : > { %v763_v6 = vpop.f32.mrb[0].mxu0  ;;  %v722_v8 = vpop.f32.mrb[1].mxu1 }
 0x169   : > { %v764_v7 = vadd.f32 %v763_v6, %v720_v4  ;;  %v765_v10 = vpop.f32.mrb[1].mxu0  ;;  %v724_v12 = vpop.f32.mrb[2].mxu1 }
 0x16a   : > { %v766_v11 = vadd.f32 %v765_v10, %v722_v8  ;;  %v767_v14 = vpop.f32.mrb[2].mxu0  ;;  %v726_v17 = vpop.f32.mrb[3].mxu1  ;;  %786 = sbr.rel (!%p1622_p11) target bundleno = 377 (0x179), region = 44 }
 0x16b   : > { %v772_v15 = vadd.f32 %v764_v7, %v274_v5  ;;  %v768_v16 = vadd.f32 %v767_v14, %v724_v12  ;;  %v769_v19 = vpop.f32.mrb[3].mxu0 }
 0x16c   : > { %v773_v20 = vadd.f32 %v766_v11, %v275_v9  ;;  %v770_v21 = vadd.f32 %v769_v19, %v726_v17 }
 0x16d   : > { %776 = vst [vmem:[%s261_s12] sm:$0xff] %v772_v15  ;;  %v774_v22 = vadd.f32 %v768_v16, %v276_v13 }
 0x16e   : > { %777 = vst [vmem:[%s261_s12 + $0x8] sm:$0xff] %v773_v20  ;;  %v775_v23 = vadd.f32 %v770_v21, %v277_v18 }
 0x16f   : > { %778 = vst [vmem:[%s261_s12 + $0x10] sm:$0xff] %v774_v22 }
 0x170   : > { %779 = vst [vmem:[%s261_s12 + $0x18] sm:$0xff] %v775_v23 }
 0x174   : > { %v805_v24 = vld [vmem:[%s261_s12] sm:$0xff] }
 0x175   : > { %v807_v25 = vld [vmem:[%s261_s12 + $0x8] sm:$0xff]  ;;  %806 = vst [vmem:[%s792_s27] sm:$0xff] %v805_v24 }
 0x176   : > { %v809_v26 = vld [vmem:[%s261_s12 + $0x10] sm:$0xff]  ;;  %808 = vst [vmem:[%s792_s27 + $0x8] sm:$0xff] %v807_v25 }
 0x177   : > { %v811_v27 = vld [vmem:[%s261_s12 + $0x18] sm:$0xff]  ;;  %810 = vst [vmem:[%s792_s27 + $0x20] sm:$0xff] %v809_v26 }
 0x178   : > { %812 = vst [vmem:[%s792_s27 + $0x28] sm:$0xff] %v811_v27 }
 0x179 PF: > { %s19_s17 = sadd.s32 1, %s1306_s17   ;;  %s1623_s12 = smov %s1290_s13 }
 0x17a   : > { %p16_p0 = scmp.ge.s32.totalorder %s19_s17, 4   ;;  %s1624_s13 = smov %s1294_s14 }
 0x17b   : > { %s1625_s14 = smov %s1383_s24  ;;  %s1626_s15 = smov %s1302_s16 }
 0x17c   : > { %s1627_s16 = smov %s1629_s19  ;;  %18 = sbr.rel (!%p16_p0) target bundleno = 6 (0x6), region = 111 }
 0x183   :  { %828 = vsyncpa [#allocation3], 1 }
 0x184   :  { %830 = vsyncpa [#allocation3 + $0x1], 1 }
 0x185   :  { %831 = vsyncpa [#allocation5], 1 }
 0x186   :  { %833 = vsyncpa [#allocation5 + $0x1], 1 }

// kernel: _transformer_block_impl.7
= control target key start
LH: loop header
LB: loop body
LE: loop exit
PB: predicated region body
PF: predicated region fallthrough
CT: control target
= control target key end

     0   :  { %8 = vsyncpa [#allocation6], 0  ;;  %s1404_s0 = inlined_call_operand.vmem [shape: bf16[16,1024], index: 0, kind: input, shape index: {}]   ;;  %s1405_s1 = inlined_call_operand.hbm [shape: bf16[2,2,32,128], index: 1, kind: input, shape index: {}]   ;;  %s1406_s2 = inlined_call_operand.hbm [shape: bf16[2,2,32,128], index: 2, kind: input, shape index: {}]   ;;  %s1407_s3 = inlined_call_operand.vmem [shape: bf16[16,512], index: 3, kind: output, shape index: {}]  }
   0x1   :  { %10 = vsyncpa [#allocation6 + $0x1], 0 }
   0x2   :  { %11 = vsyncpa [#allocation8], 0 }
   0x3   :  { %13 = vsyncpa [#allocation8 + $0x1], 0  ;;  %s1132_s12 = smov 0   ;;  %s1134_s13 = smov 0  }
   0x4   :  { %s1136_s14 = smov 0   ;;  %s1138_s15 = smov 0  }
   0x5   :  { %s1140_s16 = smov 0   ;;  %s1142_s17 = smov 0  }
   0x6   :  { %s1144_s18 = smov 0   ;;  %s1146_s19 = smov 0  }
   0x7   :  { %s1148_s20 = smov 0   ;;  %s1150_s21 = smov 0  }
   0x8 LB: > { %1413 = sst [smem:[#allocation11_spill]] %s1075_s15  ;;  %s771_s22 = sadd.s32 4294967295, %s1099_s21   ;;  %s1099_s21 = sphi %s1150_s21, %s19_s21   ;;  %s1095_s20 = sphi %s1148_s20, %s1434_s20   ;;  %s1091_s19 = sphi %s1146_s19, %s1433_s19   ;;  %s1087_s18 = sphi %s1144_s18, %s1426_s18   ;;  %s1083_s17 = sphi %s1142_s17, %s1432_s17   ;;  %s1079_s16 = sphi %s1140_s16, %s1431_s16   ;;  %s1075_s15 = sphi %s1138_s15, %s1425_s15   ;;  %s1071_s14 = sphi %s1136_s14, %s1430_s14   ;;  %s1067_s13 = sphi %s1134_s13, %s1429_s13   ;;  %s1063_s12 = sphi %s1132_s12, %s1428_s12  }
   0x9   : > { %1414 = sst [smem:[#allocation12_spill]] %s1087_s18  ;;  %s31_s23 = sadd.s32 1, %s1087_s18 }
   0xa   : > { %p32_p0 = scmp.ge.s32.totalorder %s31_s23, 2  ;;  %s34_s24 = sadd.s32 1, %s1091_s19 }
   0xb   : > { %s38_s25 = sadd.s32 1, %s1095_s20  ;;  %s77_s26 = sadd.s32 1, %s1071_s14 }
   0xc   : > { %s1436_s23 = smov (%p32_p0, %s31_s23), 0  ;;  %s1438_s24 = smov (!%p32_p0, %s34_s24), %s1091_s19 }
   0xd   : > { %1415 = sst [smem:[#allocation13_spill]] %s1436_s23  ;;  %s73_s27 = ssub.s32 %s1087_s18, %s1436_s23 }
   0xe   : > { %p84_p1 = scmp.ne.s32.totalorder %s1071_s14, %s1067_s13  ;;  %p36_p2 = scmp.ge.s32.totalorder %s1438_s24, 2 }
   0xf   : > { %p85_p3 = scmp.eq.s32.totalorder %s1099_s21, 0  ;;  %p90_p4 = scmp.ne.s32.totalorder %s1067_s13, %s1063_s12 }
  0x10   : > { %p91_p5 = scmp.eq.s32.totalorder %s771_s22, 0  ;;  %s1440_s24 = smov (%p36_p2, %s1438_s24), 0 }
  0x11   : > { %1416 = sst [smem:[#allocation14_spill]] %s1440_s24  ;;  %s1442_s25 = smov (!%p36_p2, %s38_s25), %s1095_s20 }
  0x12   : > { %s71_s28 = ssub.s32 %s1091_s19, %s1440_s24  ;;  %p1199_p6 = por %p85_p3, %p84_p1 }
  0x13   : > { %p40_p7 = scmp.ge.s32.totalorder %s1442_s25, 2  ;;  %p1203_p8 = por %p91_p5, %p90_p4 }
  0x14   : > { %p846_p9 = scmp.lt.s32.totalorder %s1099_s21, 8  ;;  %s1211_s4 = sand.u32 1, %s1071_s14  }
  0x15   : > { %s1418_s30 = scalar_select %p1203_p8, 1, 0 }
  0x16   : > { %s1444_s25 = smov (%p40_p7, %s1442_s25), 0  ;;  %s776_s5 = sshll.u32 %s1087_s18, 1 }
  0x17   : > { %s70_s6 = ssub.s32 %s1095_s20, %s1444_s25  ;;  %s775_s8 = sshll.u32 %s1211_s4, 3 }
  0x18   : > { %s72_s7 = sor.u32 %s71_s28, %s70_s6  ;;  %s777_s10 = sshll.u32 %s1091_s19, 2 }
  0x19   : > { %s74_s9 = sor.u32 %s73_s27, %s72_s7  ;;  %s195_s11 = sadd.s32 %s777_s10, %s776_s5 }
  0x1a   : > { %p75_p10 = scmp.eq.s32.totalorder %s74_s9, 0  ;;  %s778_s12 = sshll.u32 %s1095_s20, 3 }
  0x1b   : > { %s1222_s24 = sadd.s32 %s778_s12, %s195_s11  ;;  %s189_s23 = scalar_lea.vmem [#allocation5], %s775_s8 }
  0x1c   : > { %s1220_s22 = scalar_select %p75_p10, %s1071_s14, %s77_s26  }
  0x1d   : > { %s200_s18 = sshll.u32 %s189_s23, 4  ;;  %s779_s15 = sshll.u32 %s1222_s24, 6  ;;  %s1227_s18 = int_to_ptr.vmem [resolvable:$true] %s200_s18 }
  0x1e   : > { %s1234_s27 = scalar_lea.hbm %s1405_s1, %s779_s15  ;;  %p1240_p11 = pnand %p846_p9, %p1199_p6 }
  0x1f   : > { %s186_s23 = scalar_lea.sflag [#allocation6], %s1211_s4  ;;  %s953_s5 = scalar_lea.hbm %s1234_s27, 128 }
  0x20   : > { %p954_p13 = scmp.ne.s32.totalorder %s1234_s27, %s953_s5  ;;  %p955_p0 = pneg %p1240_p11 }
  0x21   : > { %s958_s9 = scalar_lea.hbm %s1405_s1, 1024  ;;  %p959_p3 = scmp.lt.u32.totalorder %s1234_s27, %s1405_s1 }
  0x22   : > { %p956_p1 = pnand %p955_p0, %p954_p13  ;;  %p960_p4 = scmp.lt.u32.totalorder %s958_s9, %s953_s5 }
  0x23   : > { %p962_p6 = scmp.lt.u32.totalorder %s953_s5, %s1234_s27 }
  0x24   : > { %p957_p2 = pneg %p956_p1  ;;  %p961_p5 = por %p960_p4, %p959_p3 }
  0x26   : > { %p963_p7 = por %p962_p6, %p961_p5 }
  0x28   : > { %p964_p9 = pnand %p963_p7, %p957_p2 }
  0x2a   : > { %967 = shalt.err (!%p964_p9)
}
  0x2b   : > { %s968_s12 = scalar_lea.vmem %s1227_s18, 128  ;;  %s1101_s28 = smov [#allocation5]  }
  0x2c   : > { %p969_p10 = scmp.ne.s32.totalorder %s1227_s18, %s968_s12  ;;  %s973_s6 = sshll.u32 %s1101_s28, 4  ;;  %s974_s6 = int_to_ptr.vmem [resolvable:$false] %s973_s6 }
  0x2d   : > { %s975_s29 = scalar_lea.vmem %s974_s6, 256  ;;  %p976_p12 = scmp.lt.s32.totalorder %s1227_s18, %s974_s6 }
  0x2e   : > { %p971_p13 = pnand %p969_p10, %p955_p0  ;;  %p977_p3 = scmp.lt.s32.totalorder %s975_s29, %s968_s12 }
  0x30   : > { %p972_p1 = pneg %p971_p13  ;;  %p978_p4 = por %p977_p3, %p976_p12 }
  0x32   : > { %p979_p5 = pnand %p978_p4, %p972_p1 }
  0x34   : > { %982 = shalt.err (!%p979_p5)
}
  0x35   : > { %s1102_s5 = smov 64   ;;  %s1103_s7 = smov 4  }
  0x36   : > { %842 = dma.hbm_to_vmem [thread:$0]  (!%p1240_p11), %s1234_s27, 128, %s1227_s18, %s186_s23, %s1102_s5, %s1102_s5, %s1103_s7  }
  0x37   : > { %p233_p12 = scmp.lt.s32.totalorder %s1099_s21, 9  ;;  %s1282_s11 = scalar_lea.hbm %s1406_s2, %s779_s15 }
  0x38   : > { %p1420_p2 = scmp.ge.s32.totalorder %s1099_s21, 1  ;;  %s214_s28 = scalar_lea.vmem [#allocation7], %s775_s8 }
  0x39   : > { %s225_s6 = sshll.u32 %s214_s28, 4  ;;  %s211_s18 = scalar_lea.sflag [#allocation8], %s1211_s4  ;;  %s1292_s6 = int_to_ptr.vmem [resolvable:$true] %s225_s6 }
  0x3a   : > { %p1286_p6 = pnand %p1420_p2, %p233_p12  ;;  %s983_s24 = scalar_lea.hbm %s1282_s11, 128 }
  0x3b   : > { %p984_p7 = scmp.ne.s32.totalorder %s1282_s11, %s983_s24  ;;  %s988_s23 = scalar_lea.hbm %s1406_s2, 1024 }
  0x3c   : > { %p989_p13 = scmp.lt.u32.totalorder %s1282_s11, %s1406_s2  ;;  %p990_p1 = scmp.lt.u32.totalorder %s988_s23, %s983_s24 }
  0x3d   : > { %p986_p9 = pnand %p984_p7, %p955_p0  ;;  %p992_p4 = scmp.lt.u32.totalorder %s983_s24, %s1282_s11 }
  0x3e   : > { %p991_p3 = por %p990_p1, %p989_p13 }
  0x3f   : > { %p987_p10 = pneg %p986_p9 }
  0x40   : > { %p993_p5 = por %p992_p4, %p991_p3 }
  0x42   : > { %p994_p12 = pnand %p993_p5, %p987_p10 }
  0x44   : > { %997 = shalt.err (!%p994_p12)
}
  0x45   : > { %s998_s8 = scalar_lea.vmem %s1292_s6, 128  ;;  %s1104_s10 = smov [#allocation7]  }
  0x46   : > { %p999_p2 = scmp.ne.s32.totalorder %s1292_s6, %s998_s8  ;;  %s1003_s28 = sshll.u32 %s1104_s10, 4  ;;  %s1004_s28 = int_to_ptr.vmem [resolvable:$false] %s1003_s28 }
  0x47   : > { %s1005_s15 = scalar_lea.vmem %s1004_s28, 256  ;;  %p1006_p8 = scmp.lt.s32.totalorder %s1292_s6, %s1004_s28 }
  0x48   : > { %p1001_p7 = pnand %p999_p2, %p955_p0  ;;  %p1007_p13 = scmp.lt.s32.totalorder %s1005_s15, %s998_s8 }
  0x4a   : > { %p1002_p9 = pneg %p1001_p7  ;;  %p1008_p1 = por %p1007_p13, %p1006_p8 }
  0x4c   : > { %p1009_p3 = pnand %p1008_p1, %p1002_p9 }
  0x4e   : > { %1012 = shalt.err (!%p1009_p3)
}
  0x4f   : > { %845 = dma.hbm_to_vmem [thread:$0]  (!%p1240_p11), %s1282_s11, 128, %s1292_s6, %s211_s18, %s1102_s5, %s1102_s5, %s1103_s7  }
  0x50   : > { %237 = sbr.rel (%p1286_p6) target bundleno = 1427 (0x593), region = 32  ;;  %s239_s24 = sand.u32 (!%p1286_p6), 1, %s1067_s13  }
  0x51   : > { %s786_s27 = sshll.u32 (!%p1286_p6), %s239_s24, 3  ;;  %s240_s23 = scalar_lea.sflag (!%p1286_p6), [#allocation6], %s239_s24 }
  0x52   : > { %s1326_s29 = scalar_lea.vmem (!%p1286_p6), [#allocation5], %s786_s27  ;;  %p1422_p8 = scmp.ne.s32.totalorder (!%p1286_p6), %s1418_s30, 0 }
  0x57   : > { %1054 = dma.done.wait (%p1422_p8), %s240_s23, 128  }
  0x58   : > { %1056 = vsyncadd (%p1422_p8), %s240_s23, 4294967168  ;;  %s249_s4 = scalar_lea.sflag [#allocation8], %s239_s24  ;;  %s1332_s26 = scalar_lea.vmem [#allocation7], %s786_s27 }
  0x59   : > { %1058 = dma.done.wait (%p1422_p8), %s249_s4, 128  }
  0x5a   : > { %1060 = vsyncadd (%p1422_p8), %s249_s4, 4294967168  ;;  %s788_s5 = sshll.u32 %s1079_s16, 1  ;;  %p294_p11 = scmp.lt.s32.totalorder %s1083_s17, 1 }
  0x5b   : > { %p296_p0 = scmp.lt.s32.totalorder %s788_s5, 7  ;;  %p308_p6 = scmp.lt.s32.totalorder %s788_s5, 3 }
  0x5c   : > { %s1446_s17 = smov (!%p294_p11, %s1083_s17), 1  ;;  %s1423_s27 = sld [smem:[#allocation11_spill]] }
  0x5d   : > { %s297_s7 = scalar_select %p296_p0, %s788_s5, 7 }
  0x5e   : > { %s789_s11 = sshll.u32 %s1446_s17, 3  ;;  %s792_s10 = sshll.u32 %s1446_s17, 2 }
  0x5f   : > { %s299_s12 = sadd.s32 %s789_s11, %s297_s7  ;;  %s1448_s5 = smov (!%p308_p6, %s788_s5), 3 }
  0x60   : > { %s790_s6 = sshll.u32 %s299_s12, 2  ;;  %s311_s30 = sadd.s32 %s792_s10, %s1448_s5 }
  0x61   : > { %s1344_s8 = scalar_lea.vmem %s1404_s0, %s790_s6  ;;  %s793_s28 = sshll.u32 %s311_s30, 2 }
  0x62   : > { %s1349_s16 = scalar_lea.vmem %s1407_s3, %s793_s28  ;;  %p794_p10 = scmp.ne.s32.totalorder %s1423_s27, 0 }
  0x63   : > { %vm320_vm0 = vcmask (!%p794_p10), 7168   ;;  %v1105_v0 = vmov (!%p794_p10), -inf   ;;  %v1106_v1 = vmov (!%p794_p10), 0.0  }
  0x64   : > { %319 = sbr.rel (%p794_p10) target bundleno = 107 (0x6b), region = 44  ;;  %321 = vst.msk [vmem:[#allocation2] sm:$0xff] (!%p794_p10), %vm320_vm0, %v1105_v0  ;;  %322 = vst.msk [vmem:[#allocation2 + $0x8] sm:$0xff] (!%p794_p10), %vm320_vm0, %v1105_v0 }
  0x65   : > { %323 = vst.msk [vmem:[#allocation3] sm:$0xff] (!%p794_p10), %vm320_vm0, %v1106_v1  ;;  %324 = vst.msk [vmem:[#allocation3 + $0x8] sm:$0xff] (!%p794_p10), %vm320_vm0, %v1106_v1 }
  0x66   : > { %325 = vst [vmem:[#allocation4] sm:$0xff] (!%p794_p10), %v1106_v1  ;;  %326 = vst [vmem:[#allocation4 + $0x8] sm:$0xff] (!%p794_p10), %v1106_v1 }
  0x6b PF: > { %s1424_s17 = sld [smem:[#allocation11_spill]]  ;;  %v938_v2 = vld [vmem:[%s1326_s29] sm:$0xff]   ;;  %v1107_v3 = vmov 0.0   ;;  %vm1108_vm1 = vmmov 0   ;;  %v341_v4 = vld [vmem:[%s1344_s8] sm:$0xf]  ;;  %v331_v5 = vlaneseq }
  0x6c   : > { %811 = vmatprep.subr.bf16.mxu0 %v1107_v3  ;;  %817 = vmatprep.subr.bf16.mxu1 %v1107_v3  ;;  %v1109_v11 = vmov -1e+30   ;;  %vm389_vm3 = vcmask 130048   ;;  %v1110_v19 = vmov 0   ;;  %v388_v20 = vld [vmem:[#allocation2] sm:$0xff]  ;;  %vm411_vm4 = vcmask 7168  }
  0x6d   : > { %812 = vmatpush3.bf16.xpose.msra.mxu0 %v938_v2  ;;  %813 = vmatprep.mubr.msk.bf16.mxu0 %vm1108_vm1, %v1107_v3  ;;  %v332_v6 = vshrl.u32 %v331_v5, 7  ;;  %v336_v7 = vand.u32 127, %v331_v5  ;;  %v939_v24 = vld [vmem:[%s1332_s26] sm:$0xff]   ;;  %v405_v56 = vld [vmem:[#allocation3] sm:$0xff]  ;;  %v532_v0 = vld [vmem:[#allocation3 + $0x8] sm:$0xff] }
  0x6e   : > { %819 = vmatprep.mubr.msk.bf16.mxu1 %vm1108_vm1, %v1107_v3  ;;  %829 = vmatprep.subr.bf16.mxu0 %v1107_v3  ;;  %v473_v30 = vld [vmem:[%s1344_s8 + $0x4] sm:$0xf]  ;;  %v515_v41 = vld [vmem:[#allocation2 + $0x8] sm:$0xff] }
  0x6f   : > { %v333_v9 = vadd.s32 24, %v332_v6  ;;  %936 = vset.pattern.permute.xlu0 %v1110_v19  ;;  %937 = vset.pattern.permute.xlu1 %v1110_v19  ;;  %v413_v60 = vld [vmem:[#allocation4] sm:$0xff] }
  0x70   : > { %818 = vmatpush3.bf16.msra.mxu1 %v939_v24 }
  0x71   : > { %s795_s23 = sshll.u32 %s1424_s17, 4  ;;  %823 = vmatprep.subr.bf16.mxu1 %v1107_v3  ;;  %p800_p4 = scmp.ne.s32.totalorder %s1424_s17, 1 }
  0x72   : > { %v337_v8 = vstv %s795_s23 }
  0x73   : > { %v338_v10 = vadd.s32 %v337_v8, %v336_v7 }
  0x74   : > { %814 = vmatmul.mubr.bf16.vlgmr.msra.gmra.mrb[0].mxu0 %v341_v4  ;;  %v539_v4 = vld [vmem:[#allocation4 + $0x8] sm:$0xff] }
  0x75   : > { %831 = vmatprep.mubr.msk.bf16.mxu0 %vm1108_vm1, %v1107_v3  ;;  %vm339_vm2 = vcmp.le.s32.totalorder %v338_v10, %v333_v9  ;;  %830 = vmatpush3.bf16.msra.mxu0 %v939_v24 }
  0x76   : > { %v340_v12 = vsel %vm339_vm2, 0.0, %v1109_v11 }
 0x147   : > { %v382_v13 = vpop.f32.mrb[0].mxu0 }
 0x148   : > { %v383_v14 = vadd.f32 %v382_v13, %v340_v12  ;;  %v815_v15 = vpop.f32.mrb[1].mxu0 }
 0x149   : > { %v385_v16 = vpop.f32.mrb[2].mxu0 }
 0x14a   : > { %v816_v17 = vpop.f32.mrb[3].mxu0  ;;  %v390_v18 = vsel %vm389_vm3, %v383_v14, -inf }
 0x14b   : > { %391 = vmax.xlane.f32.xlu0 %v390_v18 }
 0x1d8   : > { %v392_v21 = vpop.xlane.xlu0 %391 }
 0x1d9   : > { %v393_v22 = vmax.f32 %v388_v20, %v392_v21 }
 0x1db   : > { %v394_v23 = vsub.f32 %v388_v20, %v393_v22  ;;  %472 = vst.msk [vmem:[#allocation2] sm:$0xff] %vm411_vm4, %v393_v22  ;;  %399 = vperm.xlu0 %936, %v393_v22  }
 0x1dd   : > { %v395_v45 = vmul.f32 1.442695, %v394_v23 }
 0x25a   : > { %v400_v25 = vpop.permute.xlu0 %399 }
 0x25b   : > { %v402_v26 = vsub.f32 %v383_v14, %v400_v25  ;;  %v1111_v14 = vmov (!%p800_p4), 0  }
 0x25c   : > { %948 = vset.pattern.permute.xlu0 (!%p800_p4), %v1111_v14 }
 0x25d   : > { %v403_v27 = vmul.f32 1.442695, %v402_v26 }
 0x25f   : > { %940 = vpow2.f32 %v403_v27 }
 0x260   : > { %942 = vpow2.f32 %v395_v45 }
 0x269   : > { %v941_v28 = vpop.eup %940 }
 0x26a   : > { %v420_v29 = vpack.c.bf16 %v941_v28, %v941_v28  ;;  %v407_v44 = vsel %vm389_vm3, %v941_v28, 0.0  ;;  %v943_v48 = vpop.eup %942 }
 0x26b   : > { %v406_v57 = vmul.f32 %v943_v48, %v405_v56 }
 0x26c   : > { %820 = vmatmul.mubr.msk.bf16.vlgmr.msra.gmra.mrb[0].mxu1 %vm389_vm3, %v420_v29 }
 0x26d   : > { %824 = vmatpush3.bf16.xpose.msra.mxu1 %v938_v2  ;;  %825 = vmatprep.mubr.msk.bf16.mxu1 %vm1108_vm1, %v1107_v3 }
 0x274   : > { %826 = vmatmul.mubr.bf16.vlgmr.msra.gmra.mrb[4].mxu1 %v473_v30 }
 0x33f   : > { %v464_v31 = vpop.f32.mrb[0].mxu1 }
 0x340   : > { %v821_v32 = vpop.f32.mrb[1].mxu1 }
 0x341   : > { %v467_v33 = vpop.f32.mrb[2].mxu1 }
 0x342   : > { %v822_v34 = vpop.f32.mrb[3].mxu1 }
 0x347   : > { %v508_v35 = vpop.f32.mrb[4].mxu1 }
 0x348   : > { %v509_v36 = vadd.f32 %v508_v35, %v340_v12  ;;  %v827_v37 = vpop.f32.mrb[5].mxu1 }
 0x349   : > { %v511_v38 = vpop.f32.mrb[6].mxu1 }
 0x34a   : > { %v828_v39 = vpop.f32.mrb[7].mxu1  ;;  %v516_v40 = vsel %vm389_vm3, %v509_v36, -inf }
 0x34b   : > { %517 = vmax.xlane.f32.xlu1 %v516_v40 }
 0x3d8   : > { %v518_v42 = vpop.xlane.xlu1 %517 }
 0x3d9   : > { %v519_v43 = vmax.f32 %v515_v41, %v518_v42 }
 0x3db   : > { %592 = vst.msk [vmem:[#allocation2 + $0x8] sm:$0xff] %vm411_vm4, %v519_v43  ;;  %525 = vperm.xlu1 %937, %v519_v43   ;;  %v520_v46 = vsub.f32 %v515_v41, %v519_v43 }
 0x3dd   : > { %v521_v47 = vmul.f32 1.442695, %v520_v46 }
 0x3df   : > { %944 = vpow2.f32 %v521_v47 }
 0x3e9   : > { %v945_v49 = vpop.eup %944 }
 0x3ea   : > { %v533_v1 = vmul.f32 %v945_v49, %v532_v0 }
 0x3ff   : > { %408 = vadd.xlane.f32.xlu1 %v407_v44 }
 0x410   : > { %416 = vperm.xlu1 %937, %v943_v48  }
 0x414   : > { %542 = vperm.xlu1 %937, %v945_v49  }
 0x45a   : > { %v526_v50 = vpop.permute.xlu1 %525 }
 0x45b   : > { %v528_v51 = vsub.f32 %v509_v36, %v526_v50 }
 0x45d   : > { %v529_v52 = vmul.f32 1.442695, %v528_v51 }
 0x45f   : > { %946 = vpow2.f32 %v529_v52 }
 0x469   : > { %v947_v53 = vpop.eup %946 }
 0x46a   : > { %v534_v54 = vsel %vm389_vm3, %v947_v53, 0.0  ;;  %v546_v55 = vpack.c.bf16 %v947_v53, %v947_v53 }
 0x46b   : > { %535 = vadd.xlane.f32.xlu0 %v534_v54 }
 0x46c   : > { %832 = vmatmul.mubr.msk.bf16.vlgmr.msra.gmra.mrb[4].mxu0 %vm389_vm3, %v546_v55 }
 0x48c   : > { %v409_v58 = vpop.xlane.xlu1 %408 }
 0x48d   : > { %v410_v59 = vadd.f32 %v409_v58, %v406_v57 }
 0x48f   : > { %412 = vst.msk [vmem:[#allocation3] sm:$0xff] %vm411_vm4, %v410_v59 }
 0x490   : > { %v417_v61 = vpop.permute.xlu1 %416 }
 0x491   : > { %v419_v62 = vmul.f32 %v417_v61, %v413_v60 }
 0x493   : > { %v470_v63 = vadd.f32 %v464_v31, %v419_v62 }
 0x494   : > { %v543_v5 = vpop.permute.xlu1 %542 }
 0x495   : > { %471 = vst [vmem:[#allocation4] sm:$0xff] %v470_v63  ;;  %v545_v6 = vmul.f32 %v543_v5, %v539_v4 }
 0x496   : > { %v597_v12 = vld [vmem:[#allocation3] sm:$0xff] (!%p800_p4) }
 0x497   : > { %949 = vrcp.f32 (!%p800_p4), %v597_v12 }
 0x49c   : > { %v599_v17 = vld [vmem:[#allocation4] sm:$0xff] (!%p800_p4) }
 0x4a1   : > { %v950_v15 = vpop.eup (!%p800_p4), %949 }
 0x4a2   : > { %602 = vperm.xlu0 (!%p800_p4), %948, %v950_v15  }
 0x4f8   : > { %v536_v2 = vpop.xlane.xlu0 %535 }
 0x4f9   : > { %v537_v3 = vadd.f32 %v536_v2, %v533_v1 }
 0x4fb   : > { %538 = vst.msk [vmem:[#allocation3 + $0x8] sm:$0xff] %vm411_vm4, %v537_v3 }
 0x502   : > { %v608_v13 = vld [vmem:[#allocation3 + $0x8] sm:$0xff] (!%p800_p4) }
 0x503   : > { %951 = vrcp.f32 (!%p800_p4), %v608_v13 }
 0x50d   : > { %v952_v16 = vpop.eup (!%p800_p4), %951 }
 0x50e   : > { %613 = vperm.xlu0 (!%p800_p4), %948, %v952_v16  }
 0x521   : > { %v603_v18 = vpop.permute.xlu0 (!%p800_p4), %602 }
 0x522   : > { %v605_v19 = vmul.f32 (!%p800_p4), %v603_v18, %v599_v17 }
 0x524   : > { %v606_v21 = vpack.c.bf16 (!%p800_p4), %v605_v19, %v605_v19 }
 0x526   : > { %607 = vst [vmem:[%s1349_s16] sm:$0xf] (!%p800_p4), %v606_v21 }
 0x53c   : > { %596 = sbr.rel (%p800_p4) target bundleno = 1427 (0x593), region = 48 }
 0x53f   : > { %v584_v7 = vpop.f32.mrb[4].mxu0 }
 0x540   : > { %v590_v8 = vadd.f32 %v584_v7, %v545_v6  ;;  %v833_v9 = vpop.f32.mrb[5].mxu0 }
 0x541   : > { %v587_v10 = vpop.f32.mrb[6].mxu0 }
 0x542   : > { %591 = vst [vmem:[#allocation4 + $0x8] sm:$0xff] %v590_v8  ;;  %v834_v11 = vpop.f32.mrb[7].mxu0 }
 0x549   : > { %v610_v20 = vld [vmem:[#allocation4 + $0x8] sm:$0xff] }
 0x58d   : > { %v614_v22 = vpop.permute.xlu0 %613 }
 0x58e   : > { %v616_v23 = vmul.f32 %v614_v22, %v610_v20 }
 0x590   : > { %v617_v24 = vpack.c.bf16 %v616_v23, %v616_v23 }
 0x592   : > { %618 = vst [vmem:[%s1349_s16 + $0x4] sm:$0xf] %v617_v24 }
 0x593 PF: > { %s19_s21 = sadd.s32 1, %s1099_s21   ;;  %s1425_s15 = sld [smem:[#allocation12_spill]] }
 0x594   : > { %p16_p5 = scmp.ge.s32.totalorder %s19_s21, 10   ;;  %s1426_s18 = sld [smem:[#allocation13_spill]] }
 0x595   : > { %s1427_s29 = sld [smem:[#allocation14_spill]]  ;;  %s1428_s12 = smov %s1067_s13 }
 0x596   : > { %s1429_s13 = smov %s1071_s14  ;;  %s1430_s14 = smov %s1220_s22 }
 0x597   : > { %s1431_s16 = smov %s1091_s19  ;;  %s1432_s17 = smov %s1095_s20 }
 0x598   : > { %s1434_s20 = smov %s1444_s25  ;;  %18 = sbr.rel (!%p16_p5) target bundleno = 8 (0x8), region = 98 }
 0x59b   : > { %s1433_s19 = smov %s1427_s29 }
 0x59f   :  { %649 = vsyncpa [#allocation6], 1 }
 0x5a0   :  { %651 = vsyncpa [#allocation6 + $0x1], 1 }
 0x5a1   :  { %652 = vsyncpa [#allocation8], 1 }
 0x5a2   :  { %654 = vsyncpa [#allocation8 + $0x1], 1 }

// kernel: _transformer_block_impl.5
= control target key start
LH: loop header
LB: loop body
LE: loop exit
PB: predicated region body
PF: predicated region fallthrough
CT: control target
= control target key end

     0   :  { %s2035_s0 = inlined_call_operand.hbm [shape: f32[16,512], index: 0, kind: input, shape index: {}]   ;;  %s2036_s1 = inlined_call_operand.hbm [shape: f32[1,512], index: 1, kind: input, shape index: {}]   ;;  %s2037_s2 = inlined_call_operand.hbm [shape: bf16[512,1024], index: 2, kind: input, shape index: {}]   ;;  %s2038_s3 = inlined_call_operand.hbm [shape: f32[16,128], index: 3, kind: input, shape index: {}]   ;;  %s2039_s4 = inlined_call_operand.hbm [shape: f32[16,128], index: 4, kind: input, shape index: {}]   ;;  %s2040_s5 = inlined_call_operand.vmem [shape: bf16[16,1024], index: 5, kind: output, shape index: {}]  }
   0x1   :  { %2046 = sst [smem:[#allocation18_spill]] %s2040_s5 }
   0x2   :  { %10 = vsyncpa [#allocation4], 0 }
   0x3   :  { %11 = vsyncpa [#allocation6], 0 }
   0x4   :  { %12 = vsyncpa [#allocation10], 0  ;;  %s1686_s18 = smov 0   ;;  %s1688_s19 = smov 0  }
   0x5   :  { %s1690_s20 = smov 0   ;;  %s1692_s21 = smov 0  }
   0x6   :  { %s1694_s22 = smov 0   ;;  %s1696_s23 = smov 0  }
   0x7 LB: > { %s1715_s24 = sadd.s32 4294967295, %s1644_s23   ;;  %p91_p0 = scmp.ne.s32.totalorder %s1632_s20, %s1628_s19  ;;  %s1644_s23 = sphi %s1696_s23, %s18_s23   ;;  %s1640_s22 = sphi %s1694_s22, %s2073_s22   ;;  %s1636_s21 = sphi %s1692_s21, %s2072_s21   ;;  %s1632_s20 = sphi %s1690_s20, %s2071_s20   ;;  %s1628_s19 = sphi %s1688_s19, %s2070_s19   ;;  %s1624_s18 = sphi %s1686_s18, %s2069_s18  }
   0x8   : > { %p92_p1 = scmp.eq.s32.totalorder %s1644_s23, 0  ;;  %p97_p2 = scmp.ne.s32.totalorder %s1628_s19, %s1624_s18 }
   0x9   : > { %p2041_p3 = scmp.eq.s32.totalorder %s1715_s24, 0  ;;  %p175_p4 = scmp.eq.s32.totalorder %s1715_s24, 3 }
   0xa   : > { %p1723_p5 = por %p92_p1, %p91_p0  ;;  %p1129_p6 = scmp.ge.s32.totalorder %s1644_s23, 1 }
   0xb   : > { %p1730_p7 = por %p2041_p3, %p97_p2  ;;  %p1734_p8 = por %p175_p4, %p91_p0 }
   0xc   : > { %p188_p9 = scmp.lt.s32.totalorder %s1644_s23, 5  ;;  %s1646_s29 = smov [#allocation3]  }
   0xd   : > { %s2048_s26 = scalar_select %p1730_p7, 1, 0 }
   0xe   : > { %s2049_s27 = scalar_select %p1734_p8, 1, 0 }
   0xf   : > { %p1739_p10 = pnand %p1129_p6, %p188_p9  ;;  %s204_s30 = sshll.u32 %s1646_s29, 4  ;;  %s1743_s30 = int_to_ptr.vmem [resolvable:$true] %s204_s30 }
  0x10   : > { %2050 = sst [smem:[#allocation17_spill]] %s2049_s27  ;;  %p1274_p12 = scmp.lt.s32.totalorder %s1644_s23, 4 }
  0x11   : > { %s2051_s28 = scalar_select %p1739_p10, 1, 0 }
  0x12   : > { %p1253_p11 = pneg %p1739_p10  ;;  %s1647_s7 = smov [#allocation5]  }
  0x13   : > { %s218_s8 = sshll.u32 %s1647_s7, 4  ;;  %p1756_p0 = pnand %p1274_p12, %p1723_p5  ;;  %s1760_s8 = int_to_ptr.vmem [resolvable:$true] %s218_s8 }
  0x14   : > { %p1750_p13 = pnand %p1253_p11, %p2041_p3  ;;  %s1436_s12 = scalar_lea.hbm %s2035_s0, 1024 }
  0x15   : > { %s2053_s9 = scalar_select %p1756_p0, 1, 0 }
  0x16   : > { %p1437_p1 = scmp.ne.s32.totalorder %s2035_s0, %s1436_s12  ;;  %p1770_p2 = pneg %p1750_p13 }
  0x17   : > { %p1443_p6 = scmp.lt.u32.totalorder %s1436_s12, %s2035_s0 }
  0x18   : > { %p1439_p4 = pnand %p1770_p2, %p1437_p1 }
  0x1a   : > { %p1440_p5 = pneg %p1439_p4 }
  0x1c   : > { %p1445_p9 = pnand %p1443_p6, %p1440_p5 }
  0x1e   : > { %1448 = shalt.err (!%p1445_p9)
}
  0x1f   : > { %s1449_s18 = scalar_lea.vmem %s1743_s30, 1024  ;;  %p1457_p8 = scmp.lt.s32.totalorder %s1743_s30, %s1743_s30 }
  0x20   : > { %p1450_p11 = scmp.ne.s32.totalorder %s1743_s30, %s1449_s18  ;;  %p1458_p7 = scmp.lt.s32.totalorder %s1449_s18, %s1449_s18 }
  0x22   : > { %p1452_p12 = pnand %p1450_p11, %p1770_p2  ;;  %p1459_p1 = por %p1458_p7, %p1457_p8 }
  0x24   : > { %p1453_p3 = pneg %p1452_p12 }
  0x26   : > { %p1460_p4 = pnand %p1459_p1, %p1453_p3 }
  0x28   : > { %1463 = shalt.err (!%p1460_p4)
}
  0x29   : > { %s1648_s25 = smov 512   ;;  %s1649_s29 = smov 32  }
  0x2a   : > { %1256 = dma.hbm_to_vmem [thread:$0]  (!%p1750_p13), %s2035_s0, 1024, %s1743_s30, [#allocation4], %s1648_s25, %s1648_s25, %s1649_s29  }
  0x2b   : > { %s1650_s11 = smov [#allocation8]   ;;  %s1464_s16 = scalar_lea.hbm %s2036_s1, 64 }
  0x2c   : > { %s231_s12 = sshll.u32 %s1650_s11, 4  ;;  %p1465_p3 = scmp.ne.s32.totalorder %s2036_s1, %s1464_s16  ;;  %s232_s12 = int_to_ptr.vmem [resolvable:$true] %s231_s12 }
  0x2d   : > { %p1471_p5 = scmp.lt.u32.totalorder %s1464_s16, %s2036_s1 }
  0x2e   : > { %p1467_p7 = pnand %p1465_p3, %p1770_p2 }
  0x30   : > { %p1468_p8 = pneg %p1467_p7 }
  0x32   : > { %p1473_p6 = pnand %p1471_p5, %p1468_p8 }
  0x34   : > { %1476 = shalt.err (!%p1473_p6)
}
  0x35   : > { %s1477_s30 = scalar_lea.vmem %s1760_s8, 64  ;;  %p1485_p1 = scmp.lt.s32.totalorder %s1760_s8, %s1760_s8 }
  0x36   : > { %p1478_p9 = scmp.ne.s32.totalorder %s1760_s8, %s1477_s30  ;;  %p1486_p4 = scmp.lt.s32.totalorder %s1477_s30, %s1477_s30 }
  0x38   : > { %p1480_p11 = pnand %p1478_p9, %p1770_p2  ;;  %p1487_p3 = por %p1486_p4, %p1485_p1 }
  0x3a   : > { %p1481_p12 = pneg %p1480_p11 }
  0x3c   : > { %p1488_p7 = pnand %p1487_p3, %p1481_p12 }
  0x3e   : > { %1491 = shalt.err (!%p1488_p7)
}
  0x3f   : > { %1259 = dma.hbm_to_vmem [thread:$0]  (!%p1750_p13), %s2036_s1, 64, %s1760_s8, [#allocation6]  }
  0x40   : > { %s1492_s10 = scalar_lea.hbm %s2038_s3, 256 }
  0x41   : > { %p1493_p8 = scmp.ne.s32.totalorder %s2038_s3, %s1492_s10  ;;  %p1499_p9 = scmp.lt.u32.totalorder %s1492_s10, %s2038_s3 }
  0x43   : > { %p1495_p5 = pnand %p1493_p8, %p1770_p2 }
  0x45   : > { %p1496_p6 = pneg %p1495_p5 }
  0x47   : > { %p1501_p11 = pnand %p1499_p9, %p1496_p6 }
  0x49   : > { %1504 = shalt.err (!%p1501_p11)
}
  0x4a   : > { %s1505_s17 = scalar_lea.vmem %s232_s12, 256  ;;  %p1513_p3 = scmp.lt.s32.totalorder %s232_s12, %s232_s12 }
  0x4b   : > { %p1506_p12 = scmp.ne.s32.totalorder %s232_s12, %s1505_s17  ;;  %p1514_p7 = scmp.lt.s32.totalorder %s1505_s17, %s1505_s17 }
  0x4d   : > { %p1508_p1 = pnand %p1506_p12, %p1770_p2  ;;  %p1515_p10 = por %p1514_p7, %p1513_p3 }
  0x4f   : > { %p1509_p4 = pneg %p1508_p1 }
  0x51   : > { %p1516_p0 = pnand %p1515_p10, %p1509_p4 }
  0x53   : > { %1519 = shalt.err (!%p1516_p0)
}
  0x54   : > { %s1651_s8 = smov 128   ;;  %s1652_s18 = smov 8  }
  0x55   : > { %1262 = dma.hbm_to_vmem [thread:$0]  (!%p1750_p13), %s2038_s3, 256, %s232_s12, [#allocation6], %s1651_s8, %s1651_s8, %s1652_s18  }
  0x56   : > { %s1653_s27 = smov [#allocation9]   ;;  %s1520_s11 = scalar_lea.hbm %s2039_s4, 256 }
  0x57   : > { %s247_s29 = sshll.u32 %s1653_s27, 4  ;;  %p1521_p10 = scmp.ne.s32.totalorder %s2039_s4, %s1520_s11  ;;  %s248_s29 = int_to_ptr.vmem [resolvable:$true] %s247_s29 }
  0x58   : > { %p1527_p5 = scmp.lt.u32.totalorder %s1520_s11, %s2039_s4 }
  0x59   : > { %p1523_p0 = pnand %p1521_p10, %p1770_p2 }
  0x5b   : > { %p1524_p8 = pneg %p1523_p0 }
  0x5d   : > { %p1529_p6 = pnand %p1527_p5, %p1524_p8 }
  0x5f   : > { %1532 = shalt.err (!%p1529_p6)
}
  0x60   : > { %s1533_s12 = scalar_lea.vmem %s248_s29, 256  ;;  %p1541_p1 = scmp.lt.s32.totalorder %s248_s29, %s248_s29 }
  0x61   : > { %p1534_p9 = scmp.ne.s32.totalorder %s248_s29, %s1533_s12  ;;  %p1542_p4 = scmp.lt.s32.totalorder %s1533_s12, %s1533_s12 }
  0x63   : > { %p1536_p11 = pnand %p1534_p9, %p1770_p2  ;;  %p1543_p3 = por %p1542_p4, %p1541_p1 }
  0x65   : > { %p1537_p12 = pneg %p1536_p11 }
  0x67   : > { %p1544_p7 = pnand %p1543_p3, %p1537_p12 }
  0x69   : > { %1547 = shalt.err (!%p1544_p7)
}
  0x6a   : > { %1265 = dma.hbm_to_vmem [thread:$0]  (!%p1750_p13), %s2039_s4, 256, %s248_s29, [#allocation10], %s1651_s8, %s1651_s8, %s1652_s18  }
  0x6b   : > { %s27_s15 = sadd.s32 1, %s1640_s22  ;;  %s84_s27 = sadd.s32 1, %s1632_s20 }
  0x6c   : > { %p28_p2 = scmp.ge.s32.totalorder %s27_s15, 4  ;;  %s261_s7 = sand.u32 1, %s1644_s23  }
  0x6d   : > { %s263_s6 = sand.u32 1, %s1632_s20   ;;  %s1223_s11 = sshll.u32 %s1640_s22, 7 }
  0x6e   : > { %s2075_s15 = smov (%p28_p2, %s27_s15), 0  ;;  %s1135_s10 = sshll.u32 %s263_s6, 9 }
  0x6f   : > { %s81_s13 = ssub.s32 %s1640_s22, %s2075_s15  ;;  %s1870_s17 = scalar_lea.hbm %s2037_s2, %s1223_s11 }
  0x70   : > { %p82_p10 = scmp.eq.s32.totalorder %s81_s13, 0  ;;  %s265_s29 = scalar_lea.vmem [#allocation7], %s1135_s10 }
  0x71   : > { %s272_s12 = sshll.u32 %s265_s29, 4  ;;  %s1877_s5 = scalar_lea.sflag [#allocation4], %s261_s7  ;;  %s1875_s12 = int_to_ptr.vmem [resolvable:$true] %s272_s12 }
  0x72   : > { %s1873_s30 = scalar_select %p82_p10, %s1632_s20, %s84_s27  }
  0x73   : > { %s1548_s6 = scalar_lea.hbm %s1870_s17, 8192  ;;  %p2055_p0 = scmp.ne.s32.totalorder %s2053_s9, 0 }
  0x74   : > { %p1549_p13 = scmp.ne.s32.totalorder %s1870_s17, %s1548_s6  ;;  %s1553_s14 = scalar_lea.hbm %s2037_s2, 32768 }
  0x75   : > { %p1550_p8 = pneg %p2055_p0  ;;  %p1554_p9 = scmp.lt.u32.totalorder %s1870_s17, %s2037_s2 }
  0x76   : > { %p1555_p11 = scmp.lt.u32.totalorder %s1553_s14, %s1548_s6  ;;  %p1557_p1 = scmp.lt.u32.totalorder %s1548_s6, %s1870_s17 }
  0x77   : > { %p1551_p5 = pnand %p1550_p8, %p1549_p13 }
  0x78   : > { %p1556_p12 = por %p1555_p11, %p1554_p9 }
  0x79   : > { %p1552_p6 = pneg %p1551_p5 }
  0x7a   : > { %p1558_p4 = por %p1557_p1, %p1556_p12 }
  0x7c   : > { %p1559_p3 = pnand %p1558_p4, %p1552_p6 }
  0x7e   : > { %1562 = shalt.err (!%p1559_p3)
}
  0x7f   : > { %s1563_s27 = scalar_lea.vmem %s1875_s12, 8192  ;;  %s1654_s7 = smov [#allocation7]  }
  0x80   : > { %p1564_p7 = scmp.ne.s32.totalorder %s1875_s12, %s1563_s27  ;;  %s1568_s29 = sshll.u32 %s1654_s7, 4  ;;  %s1569_s29 = int_to_ptr.vmem [resolvable:$false] %s1568_s29 }
  0x81   : > { %s1570_s11 = scalar_lea.vmem %s1569_s29, 16384  ;;  %p1571_p13 = scmp.lt.s32.totalorder %s1875_s12, %s1569_s29 }
  0x82   : > { %p1566_p2 = pnand %p1564_p7, %p1550_p8  ;;  %p1572_p5 = scmp.lt.s32.totalorder %s1570_s11, %s1563_s27 }
  0x84   : > { %p1567_p10 = pneg %p1566_p2  ;;  %p1573_p9 = por %p1572_p5, %p1571_p13 }
  0x86   : > { %p1574_p11 = pnand %p1573_p9, %p1567_p10 }
  0x88   : > { %1577 = shalt.err (!%p1574_p11)
}
  0x89   : > { %1269 = dma.hbm_to_vmem [thread:$0]  (!%p2055_p0), %s1870_s17, 8192, %s1875_s12, %s1877_s5, %s1648_s25, %s1651_s8, %s1652_s18  }
  0x8a   : > { %p2056_p8 = scmp.ne.s32.totalorder %s2051_s28, 0 }
  0x8b   : > { %p2057_p6 = scmp.eq.s32.totalorder (!%p2056_p8), %s1715_s24, 0 }
  0x8c   : > { %284 = sbr.rel (%p2056_p8) target bundleno = 772 (0x304), region = 40 }
  0x93   : > { %1603 = dma.done.wait (%p2057_p6), [#allocation4], 1024   ;;  %p2058_p12 = pmov %p2057_p6 }
  0x94   : > { %p2059_p1 = pmov %p2057_p6 }
  0x95   : > { %1605 = vsyncadd (%p2058_p12), [#allocation4], 4294966272 }
  0x96   : > { %1607 = dma.done.wait (%p2059_p1), [#allocation6], 64   ;;  %p2060_p4 = pmov %p2059_p1 }
  0x97   : > { %s294_s9 = sand.u32 1, %s1715_s24   ;;  %s296_s25 = sand.u32 1, %s1628_s19  }
  0x98   : > { %1609 = vsyncadd (%p2060_p4), [#allocation6], 4294967232  ;;  %s1141_s8 = sshll.u32 %s296_s25, 9  ;;  %s295_s28 = scalar_lea.sflag [#allocation4], %s294_s9 }
  0x99   : > { %s1920_s18 = scalar_lea.vmem [#allocation7], %s1141_s8  ;;  %p2061_p0 = scmp.ne.s32.totalorder %s2048_s26, 0 }
  0x9b   : > { %1611 = dma.done.wait (%p2061_p0), %s295_s28, 8192  }
  0x9c   : > { %1613 = vsyncadd (%p2061_p0), %s295_s28, 4294959104  ;;  %p2062_p3 = pmov %p2059_p1 }
  0x9d   : > { %p2063_p7 = pmov %p2059_p1 }
  0x9e   : > { %1615 = dma.done.wait (%p2062_p3), [#allocation6], 256  }
  0x9f   : > { %1617 = vsyncadd (%p2063_p7), [#allocation6], 4294967040  ;;  %p2064_p2 = pmov %p2059_p1 }
  0xa0   : > { %p2065_p10 = pmov %p2059_p1 }
  0xa1   : > { %1619 = dma.done.wait (%p2064_p2), [#allocation10], 256  }
  0xa2   : > { %1621 = vsyncadd (%p2065_p10), [#allocation10], 4294967040  ;;  %s1144_s17 = sshll.u32 %s296_s25, 4  ;;  %p1145_p13 = scmp.ne.s32.totalorder %s1636_s21, 0 }
  0xa3   : > { %s1934_s12 = scalar_lea.vmem [#allocation11], %s1144_s17  ;;  %v342_v0 = vld [vmem:[#allocation3] sm:$0xff] (!%p1145_p13)  ;;  %v343_v1 = vld [vmem:[#allocation3 + $0x8] sm:$0xff] (!%p1145_p13)  ;;  %v344_v2 = vld [vmem:[#allocation3 + $0x10] sm:$0xff] (!%p1145_p13)  ;;  %v385_v25 = vlaneseq (!%p1145_p13) }
  0xa4   : > { %341 = sbr.rel (%p1145_p13) target bundleno = 341 (0x155), region = 64  ;;  %v345_v3 = vld [vmem:[#allocation3 + $0x18] sm:$0xff] (!%p1145_p13)  ;;  %v350_v4 = vmul.f32 (!%p1145_p13), %v342_v0, %v342_v0  ;;  %v351_v5 = vmul.f32 (!%p1145_p13), %v343_v1, %v343_v1  ;;  %v352_v6 = vmul.f32 (!%p1145_p13), %v344_v2, %v344_v2  ;;  %v346_v7 = vld [vmem:[#allocation3 + $0x20] sm:$0xff] (!%p1145_p13)  ;;  %v347_v8 = vld [vmem:[#allocation3 + $0x28] sm:$0xff] (!%p1145_p13) }
  0xa5   : > { %v348_v9 = vld [vmem:[#allocation3 + $0x30] sm:$0xff] (!%p1145_p13)  ;;  %v349_v10 = vld [vmem:[#allocation3 + $0x38] sm:$0xff] (!%p1145_p13)  ;;  %v354_v11 = vmul.f32 (!%p1145_p13), %v346_v7, %v346_v7  ;;  %v355_v12 = vmul.f32 (!%p1145_p13), %v347_v8, %v347_v8  ;;  %v353_v13 = vmul.f32 (!%p1145_p13), %v345_v3, %v345_v3  ;;  %v386_v29 = vshrl.u32 (!%p1145_p13), %v385_v25, 7  ;;  %v383_v34 = vld [vmem:[#allocation5] sm:$0xf] (!%p1145_p13) }
  0xa6   : > { %v358_v14 = vadd.f32 (!%p1145_p13), %v351_v5, %v350_v4  ;;  %v356_v15 = vmul.f32 (!%p1145_p13), %v348_v9, %v348_v9  ;;  %v357_v18 = vmul.f32 (!%p1145_p13), %v349_v10, %v349_v10 }
  0xa7   : > { %v363_v16 = vadd.f32 (!%p1145_p13), %v355_v12, %v354_v11  ;;  %v387_v30 = vsub.s32 (!%p1145_p13), 0, %v386_v29  ;;  %v391_v31 = vsub.s32 (!%p1145_p13), 1, %v386_v29  ;;  %v395_v32 = vsub.s32 (!%p1145_p13), 2, %v386_v29 }
  0xa8   : > { %v359_v17 = vadd.f32 (!%p1145_p13), %v358_v14, %v352_v6  ;;  %v399_v33 = vsub.s32 (!%p1145_p13), 3, %v386_v29 }
  0xa9   : > { %v364_v19 = vadd.f32 (!%p1145_p13), %v363_v16, %v356_v15  ;;  %v388_v36 = vrot.slane (!%p1145_p13), %v383_v34, %v387_v30  ;;  %v392_v37 = vrot.slane (!%p1145_p13), %v383_v34, %v391_v31  ;;  %v396_v38 = vrot.slane (!%p1145_p13), %v383_v34, %v395_v32 }
  0xaa   : > { %v360_v20 = vadd.f32 (!%p1145_p13), %v359_v17, %v353_v13  ;;  %v400_v39 = vrot.slane (!%p1145_p13), %v383_v34, %v399_v33 }
  0xab   : > { %v365_v21 = vadd.f32 %v364_v19, %v357_v18 }
  0xac   : > { %361 = vadd.xlane.f32.xlu0 %v360_v20 }
  0xb0   : > { %366 = vadd.xlane.f32.xlu0 %v365_v21 }
 0x139   : > { %v362_v22 = vpop.xlane.xlu0 %361 }
 0x13a   : > { %v369_v23 = vmul.f32 0.001953125, %v362_v22 }
 0x13c   : > { %v371_v24 = vadd.f32 1e-05, %v369_v23 }
 0x13d   : > { %v367_v26 = vpop.xlane.xlu0 %366 }
 0x13e   : > { %1336 = vrsqrt.f32 %v371_v24  ;;  %v370_v27 = vmul.f32 0.001953125, %v367_v26 }
 0x140   : > { %v372_v28 = vadd.f32 1e-05, %v370_v27 }
 0x142   : > { %1338 = vrsqrt.f32 %v372_v28 }
 0x148   : > { %v1337_v35 = vpop.eup %1336 }
 0x149   : > { %v375_v40 = vmul.f32 %v1337_v35, %v342_v0  ;;  %v376_v41 = vmul.f32 %v1337_v35, %v343_v1  ;;  %v377_v42 = vmul.f32 %v1337_v35, %v344_v2  ;;  %v378_v43 = vmul.f32 %v1337_v35, %v345_v3 }
 0x14b   : > { %v405_v49 = vmul.f32 %v388_v36, %v375_v40  ;;  %v406_v50 = vmul.f32 %v392_v37, %v376_v41  ;;  %v407_v51 = vmul.f32 %v396_v38, %v377_v42  ;;  %v408_v52 = vmul.f32 %v400_v39, %v378_v43 }
 0x14c   : > { %v1339_v44 = vpop.eup %1338 }
 0x14d   : > { %v379_v45 = vmul.f32 %v1339_v44, %v346_v7  ;;  %v380_v46 = vmul.f32 %v1339_v44, %v347_v8  ;;  %v381_v47 = vmul.f32 %v1339_v44, %v348_v9  ;;  %v382_v48 = vmul.f32 %v1339_v44, %v349_v10 }
 0x14f   : > { %v409_v53 = vmul.f32 %v388_v36, %v379_v45  ;;  %v410_v54 = vmul.f32 %v392_v37, %v380_v46  ;;  %v411_v55 = vmul.f32 %v396_v38, %v381_v47  ;;  %v412_v56 = vmul.f32 %v400_v39, %v382_v48 }
 0x151   : > { %v413_v57 = vpack.c.bf16 %v409_v53, %v405_v49  ;;  %v414_v58 = vpack.c.bf16 %v410_v54, %v406_v50  ;;  %v415_v59 = vpack.c.bf16 %v411_v55, %v407_v51  ;;  %v416_v60 = vpack.c.bf16 %v412_v56, %v408_v52 }
 0x153   : > { %417 = vst [vmem:[#allocation2] sm:$0xff] %v413_v57  ;;  %418 = vst [vmem:[#allocation2 + $0x8] sm:$0xff] %v414_v58 }
 0x154   : > { %419 = vst [vmem:[#allocation2 + $0x10] sm:$0xff] %v415_v59  ;;  %420 = vst [vmem:[#allocation2 + $0x18] sm:$0xff] %v416_v60 }
 0x155 PF: > { %v1340_v61 = vld [vmem:[%s1920_s18 + $0x4] ss:$8 sps:$4 sm:$0xff]   ;;  %v1344_v63 = vld [vmem:[%s1920_s18] ss:$8 sps:$4 sm:$0xff]   ;;  %v1346_v1 = vld [vmem:[%s1920_s18 + $0x14] ss:$8 sps:$4 sm:$0xff]  }
 0x156   : > { %v1342_v62 = vld [vmem:[%s1920_s18 + $0x104] ss:$8 sps:$4 sm:$0xff]   ;;  %809 = vmatprep.subr.bf16.mxu1 %v1340_v61  ;;  %v1345_v0 = vld [vmem:[%s1920_s18 + $0x100] ss:$8 sps:$4 sm:$0xff]   ;;  %v1348_v2 = vld [vmem:[%s1920_s18 + $0x114] ss:$8 sps:$4 sm:$0xff]  }
 0x157   : > { %852 = vmatprep.subr.bf16.mxu0 %v1342_v62  ;;  %810 = vmatpush1.bf16.msra.mxu1 %v1344_v63  ;;  %v1350_v3 = vld [vmem:[%s1920_s18 + $0x10] ss:$8 sps:$4 sm:$0xff]   ;;  %v1352_v5 = vld [vmem:[%s1920_s18 + $0x24] ss:$8 sps:$4 sm:$0xff]   ;;  %v1356_v7 = vld [vmem:[%s1920_s18 + $0x20] ss:$8 sps:$4 sm:$0xff]  }
 0x158   : > { %853 = vmatpush1.bf16.msra.mxu0 %v1345_v0  ;;  %811 = vmatprep.subr.bf16.mxu1 %v1346_v1  ;;  %v1351_v4 = vld [vmem:[%s1920_s18 + $0x110] ss:$8 sps:$4 sm:$0xff]   ;;  %v1354_v6 = vld [vmem:[%s1920_s18 + $0x124] ss:$8 sps:$4 sm:$0xff]   ;;  %v1357_v8 = vld [vmem:[%s1920_s18 + $0x120] ss:$8 sps:$4 sm:$0xff]  }
 0x159   : > { %854 = vmatprep.subr.bf16.mxu0 %v1348_v2  ;;  %v1358_v9 = vld [vmem:[%s1920_s18 + $0x34] ss:$8 sps:$4 sm:$0xff]   ;;  %v1362_v11 = vld [vmem:[%s1920_s18 + $0x30] ss:$8 sps:$4 sm:$0xff]   ;;  %v1364_v13 = vld [vmem:[%s1920_s18 + $0x44] ss:$8 sps:$4 sm:$0xff]  }
 0x15a   : > { %v1360_v10 = vld [vmem:[%s1920_s18 + $0x134] ss:$8 sps:$4 sm:$0xff]   ;;  %v1363_v12 = vld [vmem:[%s1920_s18 + $0x130] ss:$8 sps:$4 sm:$0xff]   ;;  %v1366_v14 = vld [vmem:[%s1920_s18 + $0x144] ss:$8 sps:$4 sm:$0xff]  }
 0x15b   : > { %812 = vmatpush1.bf16.msra.mxu1 %v1350_v3  ;;  %v1368_v15 = vld [vmem:[%s1920_s18 + $0x40] ss:$8 sps:$4 sm:$0xff]   ;;  %v1370_v17 = vld [vmem:[%s1920_s18 + $0x54] ss:$8 sps:$4 sm:$0xff]   ;;  %v1374_v19 = vld [vmem:[%s1920_s18 + $0x50] ss:$8 sps:$4 sm:$0xff]  }
 0x15c   : > { %855 = vmatpush1.bf16.msra.mxu0 %v1351_v4  ;;  %813 = vmatprep.subr.bf16.mxu1 %v1352_v5  ;;  %v1369_v16 = vld [vmem:[%s1920_s18 + $0x140] ss:$8 sps:$4 sm:$0xff]   ;;  %v1372_v18 = vld [vmem:[%s1920_s18 + $0x154] ss:$8 sps:$4 sm:$0xff]   ;;  %v1375_v20 = vld [vmem:[%s1920_s18 + $0x150] ss:$8 sps:$4 sm:$0xff]  }
 0x15d   : > { %856 = vmatprep.subr.bf16.mxu0 %v1354_v6  ;;  %v1376_v21 = vld [vmem:[%s1920_s18 + $0x64] ss:$8 sps:$4 sm:$0xff]   ;;  %v1380_v23 = vld [vmem:[%s1920_s18 + $0x60] ss:$8 sps:$4 sm:$0xff]   ;;  %v1382_v25 = vld [vmem:[%s1920_s18 + $0x74] ss:$8 sps:$4 sm:$0xff]  }
 0x15e   : > { %v1378_v22 = vld [vmem:[%s1920_s18 + $0x164] ss:$8 sps:$4 sm:$0xff]   ;;  %v1381_v24 = vld [vmem:[%s1920_s18 + $0x160] ss:$8 sps:$4 sm:$0xff]   ;;  %v1384_v26 = vld [vmem:[%s1920_s18 + $0x174] ss:$8 sps:$4 sm:$0xff]  }
 0x15f   : > { %814 = vmatpush1.bf16.msra.mxu1 %v1356_v7  ;;  %v1386_v27 = vld [vmem:[%s1920_s18 + $0x70] ss:$8 sps:$4 sm:$0xff]   ;;  %v1388_v29 = vld [vmem:[%s1920_s18 + $0x84] ss:$8 sps:$4 sm:$0xff]   ;;  %v1392_v31 = vld [vmem:[%s1920_s18 + $0x80] ss:$8 sps:$4 sm:$0xff]  }
 0x160   : > { %857 = vmatpush1.bf16.msra.mxu0 %v1357_v8  ;;  %815 = vmatprep.subr.bf16.mxu1 %v1358_v9  ;;  %v1387_v28 = vld [vmem:[%s1920_s18 + $0x170] ss:$8 sps:$4 sm:$0xff]   ;;  %v1390_v30 = vld [vmem:[%s1920_s18 + $0x184] ss:$8 sps:$4 sm:$0xff]   ;;  %v1393_v32 = vld [vmem:[%s1920_s18 + $0x180] ss:$8 sps:$4 sm:$0xff]  }
 0x161   : > { %858 = vmatprep.subr.bf16.mxu0 %v1360_v10  ;;  %v1394_v33 = vld [vmem:[%s1920_s18 + $0x94] ss:$8 sps:$4 sm:$0xff]   ;;  %v1398_v35 = vld [vmem:[%s1920_s18 + $0x90] ss:$8 sps:$4 sm:$0xff]   ;;  %v1400_v37 = vld [vmem:[%s1920_s18 + $0xa4] ss:$8 sps:$4 sm:$0xff]  }
 0x162   : > { %v1396_v34 = vld [vmem:[%s1920_s18 + $0x194] ss:$8 sps:$4 sm:$0xff]   ;;  %v1399_v36 = vld [vmem:[%s1920_s18 + $0x190] ss:$8 sps:$4 sm:$0xff]   ;;  %v1402_v38 = vld [vmem:[%s1920_s18 + $0x1a4] ss:$8 sps:$4 sm:$0xff]  }
 0x163   : > { %816 = vmatpush1.bf16.msra.mxu1 %v1362_v11  ;;  %v1404_v39 = vld [vmem:[%s1920_s18 + $0xa0] ss:$8 sps:$4 sm:$0xff]   ;;  %v1406_v41 = vld [vmem:[%s1920_s18 + $0xb4] ss:$8 sps:$4 sm:$0xff]   ;;  %v1410_v45 = vld [vmem:[%s1920_s18 + $0xb0] ss:$8 sps:$4 sm:$0xff]  }
 0x164   : > { %859 = vmatpush1.bf16.msra.mxu0 %v1363_v12  ;;  %817 = vmatprep.subr.bf16.mxu1 %v1364_v13  ;;  %v1405_v40 = vld [vmem:[%s1920_s18 + $0x1a0] ss:$8 sps:$4 sm:$0xff]   ;;  %v1408_v42 = vld [vmem:[%s1920_s18 + $0x1b4] ss:$8 sps:$4 sm:$0xff]   ;;  %v1411_v46 = vld [vmem:[%s1920_s18 + $0x1b0] ss:$8 sps:$4 sm:$0xff]  }
 0x165   : > { %860 = vmatprep.subr.bf16.mxu0 %v1366_v14  ;;  %v422_v43 = vld [vmem:[#allocation2 + $0x8] sm:$0xff]  ;;  %v424_v44 = vld [vmem:[#allocation2 + $0x18] sm:$0xff]  ;;  %v421_v63 = vld [vmem:[#allocation2] sm:$0xff]  ;;  %p1210_p5 = scmp.ge.s32.totalorder %s1636_s21, 3 }
 0x166   : > { %841 = vmatprep.mubr.bf16.mxu1 %v422_v43  ;;  %v1412_v47 = vld [vmem:[%s1920_s18 + $0xc4] ss:$8 sps:$4 sm:$0xff]   ;;  %884 = vmatprep.mubr.bf16.mxu0 %v424_v44  ;;  %v1416_v49 = vld [vmem:[%s1920_s18 + $0xc0] ss:$8 sps:$4 sm:$0xff]   ;;  %v1418_v51 = vld [vmem:[%s1920_s18 + $0xd4] ss:$8 sps:$4 sm:$0xff]  }
 0x167   : > { %818 = vmatpush1.bf16.msra.mxu1 %v1368_v15  ;;  %v1414_v48 = vld [vmem:[%s1920_s18 + $0x1c4] ss:$8 sps:$4 sm:$0xff]   ;;  %v1417_v50 = vld [vmem:[%s1920_s18 + $0x1c0] ss:$8 sps:$4 sm:$0xff]   ;;  %v1420_v52 = vld [vmem:[%s1920_s18 + $0x1d4] ss:$8 sps:$4 sm:$0xff]  }
 0x168   : > { %861 = vmatpush1.bf16.msra.mxu0 %v1369_v16  ;;  %819 = vmatprep.subr.bf16.mxu1 %v1370_v17  ;;  %v1422_v53 = vld [vmem:[%s1920_s18 + $0xd0] ss:$8 sps:$4 sm:$0xff]   ;;  %v1424_v55 = vld [vmem:[%s1920_s18 + $0xe4] ss:$8 sps:$4 sm:$0xff]   ;;  %v1428_v57 = vld [vmem:[%s1920_s18 + $0xe0] ss:$8 sps:$4 sm:$0xff]  }
 0x169   : > { %862 = vmatprep.subr.bf16.mxu0 %v1372_v18  ;;  %v1423_v54 = vld [vmem:[%s1920_s18 + $0x1d0] ss:$8 sps:$4 sm:$0xff]   ;;  %v1426_v56 = vld [vmem:[%s1920_s18 + $0x1e4] ss:$8 sps:$4 sm:$0xff]   ;;  %v1429_v58 = vld [vmem:[%s1920_s18 + $0x1e0] ss:$8 sps:$4 sm:$0xff]  }
 0x16a   : > { %v1430_v59 = vld [vmem:[%s1920_s18 + $0xf4] ss:$8 sps:$4 sm:$0xff]   ;;  %v1434_v61 = vld [vmem:[%s1920_s18 + $0xf0] ss:$8 sps:$4 sm:$0xff]   ;;  %s1655_s24 = smov (!%p1210_p5), 64   ;;  %v899_v13 = vld [vmem:[#allocation8] sm:$0xff] (!%p1210_p5) }
 0x16b   : > { %820 = vmatpush1.bf16.msra.mxu1 %v1374_v19  ;;  %v1432_v60 = vld [vmem:[%s1920_s18 + $0x1f4] ss:$8 sps:$4 sm:$0xff]   ;;  %v1435_v62 = vld [vmem:[%s1920_s18 + $0x1f0] ss:$8 sps:$4 sm:$0xff]   ;;  %v900_v19 = vld [vmem:[#allocation8 + $0x8] sm:$0xff] (!%p1210_p5) }
 0x16c   : > { %863 = vmatpush1.bf16.msra.mxu0 %v1375_v20  ;;  %821 = vmatprep.subr.bf16.mxu1 %v1376_v21  ;;  %v423_v0 = vld [vmem:[#allocation2 + $0x10] sm:$0xff] }
 0x16d   : > { %864 = vmatprep.subr.bf16.mxu0 %v1378_v22  ;;  %v901_v14 = vld [vmem:[#allocation9] sm:$0xff] (!%p1210_p5)  ;;  %v902_v22 = vld [vmem:[#allocation9 + $0x8] sm:$0xff] (!%p1210_p5) }
 0x16f   : > { %822 = vmatpush1.bf16.msra.mxu1 %v1380_v23 }
 0x170   : > { %865 = vmatpush1.bf16.msra.mxu0 %v1381_v24  ;;  %823 = vmatprep.subr.bf16.mxu1 %v1382_v25 }
 0x171   : > { %866 = vmatprep.subr.bf16.mxu0 %v1384_v26 }
 0x173   : > { %824 = vmatpush1.bf16.msra.mxu1 %v1386_v27 }
 0x174   : > { %867 = vmatpush1.bf16.msra.mxu0 %v1387_v28  ;;  %825 = vmatprep.subr.bf16.mxu1 %v1388_v29 }
 0x175   : > { %868 = vmatprep.subr.bf16.mxu0 %v1390_v30 }
 0x177   : > { %826 = vmatpush1.bf16.msra.mxu1 %v1392_v31 }
 0x178   : > { %869 = vmatpush1.bf16.msra.mxu0 %v1393_v32  ;;  %827 = vmatprep.subr.bf16.mxu1 %v1394_v33 }
 0x179   : > { %870 = vmatprep.subr.bf16.mxu0 %v1396_v34 }
 0x17b   : > { %828 = vmatpush1.bf16.msra.mxu1 %v1398_v35 }
 0x17c   : > { %871 = vmatpush1.bf16.msra.mxu0 %v1399_v36  ;;  %829 = vmatprep.subr.bf16.mxu1 %v1400_v37 }
 0x17d   : > { %872 = vmatprep.subr.bf16.mxu0 %v1402_v38 }
 0x17f   : > { %830 = vmatpush1.bf16.msra.mxu1 %v1404_v39 }
 0x180   : > { %873 = vmatpush1.bf16.msra.mxu0 %v1405_v40  ;;  %831 = vmatprep.subr.bf16.mxu1 %v1406_v41 }
 0x181   : > { %874 = vmatprep.subr.bf16.mxu0 %v1408_v42 }
 0x183   : > { %832 = vmatpush1.bf16.msra.mxu1 %v1410_v45 }
 0x184   : > { %875 = vmatpush1.bf16.msra.mxu0 %v1411_v46  ;;  %833 = vmatprep.subr.bf16.mxu1 %v1412_v47 }
 0x185   : > { %876 = vmatprep.subr.bf16.mxu0 %v1414_v48 }
 0x187   : > { %834 = vmatpush1.bf16.msra.mxu1 %v1416_v49 }
 0x188   : > { %877 = vmatpush1.bf16.msra.mxu0 %v1417_v50  ;;  %835 = vmatprep.subr.bf16.mxu1 %v1418_v51 }
 0x189   : > { %878 = vmatprep.subr.bf16.mxu0 %v1420_v52 }
 0x18b   : > { %836 = vmatpush1.bf16.msra.mxu1 %v1422_v53 }
 0x18c   : > { %879 = vmatpush1.bf16.msra.mxu0 %v1423_v54  ;;  %837 = vmatprep.subr.bf16.mxu1 %v1424_v55 }
 0x18d   : > { %880 = vmatprep.subr.bf16.mxu0 %v1426_v56 }
 0x18f   : > { %838 = vmatpush1.bf16.msra.mxu1 %v1428_v57 }
 0x190   : > { %881 = vmatpush1.bf16.msra.mxu0 %v1429_v58  ;;  %839 = vmatprep.subr.bf16.mxu1 %v1430_v59 }
 0x191   : > { %882 = vmatprep.subr.bf16.mxu0 %v1432_v60 }
 0x193   : > { %840 = vmatpush1.bf16.msra.mxu1 %v1434_v61 }
 0x194   : > { %883 = vmatpush1.bf16.msra.mxu0 %v1435_v62 }
 0x196   : > { %842 = vmatmul.mubr.bf16.vlgmr.msra.gmra.mrb[0].mxu1 %v421_v63 }
 0x197   : > { %885 = vmatmul.mubr.bf16.vlgmr.msra.gmra.mrb[0].mxu0 %v423_v0 }
 0x268   : > { %898 = sbr.rel (%p1210_p5) target bundleno = 748 (0x2ec), region = 68 }
 0x269   : > { %v843_v1 = vpop.f32.mrb[0].mxu1 }
 0x26a   : > { %v886_v2 = vpop.f32.mrb[0].mxu0  ;;  %v845_v4 = vpop.f32.mrb[1].mxu1 }
 0x26b   : > { %v887_v3 = vadd.f32 %v886_v2, %v843_v1  ;;  %v888_v5 = vpop.f32.mrb[1].mxu0  ;;  %v847_v7 = vpop.f32.mrb[2].mxu1 }
 0x26c   : > { %v889_v6 = vadd.f32 %v888_v5, %v845_v4  ;;  %v890_v8 = vpop.f32.mrb[2].mxu0  ;;  %v849_v10 = vpop.f32.mrb[3].mxu1 }
 0x26d   : > { %v891_v9 = vadd.f32 %v890_v8, %v847_v7  ;;  %v892_v11 = vpop.f32.mrb[3].mxu0  ;;  %903 = vrot.lane.b32.xlu0 (!%p1210_p5), %v887_v3, %s1655_s24  ;;  %v907_v16 = vmul.f32 (!%p1210_p5), %v899_v13, %v887_v3 }
 0x26e   : > { %v893_v12 = vadd.f32 %v892_v11, %v849_v10  ;;  %923 = vrot.lane.b32.xlu1 (!%p1210_p5), %v889_v6, %s1655_s24  ;;  %v927_v15 = vmul.f32 (!%p1210_p5), %v899_v13, %v889_v6 }
 0x26f   : > { %v908_v26 = vmul.f32 %v900_v19, %v891_v9 }
 0x270   : > { %v928_v25 = vmul.f32 %v900_v19, %v893_v12 }
 0x271   : > { %905 = vrot.lane.b32.xlu0 %v891_v9, %s1655_s24 }
 0x272   : > { %925 = vrot.lane.b32.xlu1 %v893_v12, %s1655_s24 }
 0x2df   : > { %v904_v18 = vpop.permute.xlu0 %903 }
 0x2e0   : > { %v924_v17 = vpop.permute.xlu1 %923  ;;  %v909_v21 = vmul.f32 %v904_v18, %v901_v14 }
 0x2e1   : > { %v929_v20 = vmul.f32 %v924_v17, %v901_v14 }
 0x2e2   : > { %v911_v24 = vadd.f32 %v909_v21, %v907_v16 }
 0x2e3   : > { %v931_v23 = vadd.f32 %v929_v20, %v927_v15  ;;  %v906_v28 = vpop.permute.xlu0 %905 }
 0x2e4   : > { %v926_v27 = vpop.permute.xlu1 %925  ;;  %v1224_v30 = vpack.c.bf16 %v911_v24, %v911_v24  ;;  %v910_v32 = vmul.f32 %v906_v28, %v902_v22 }
 0x2e5   : > { %v1226_v29 = vpack.c.bf16 %v931_v23, %v931_v23  ;;  %v930_v31 = vmul.f32 %v926_v27, %v902_v22 }
 0x2e6   : > { %921 = vst [vmem:[%s1934_s12] sm:$0xf] %v1224_v30  ;;  %v912_v34 = vadd.f32 %v910_v32, %v908_v26 }
 0x2e7   : > { %941 = vst [vmem:[%s1934_s12 + $0x4] sm:$0xf] %v1226_v29  ;;  %v932_v33 = vadd.f32 %v930_v31, %v928_v25 }
 0x2e8   : > { %v1225_v36 = vpack.c.bf16 %v912_v34, %v912_v34 }
 0x2e9   : > { %v1227_v35 = vpack.c.bf16 %v932_v33, %v932_v33 }
 0x2ea   : > { %922 = vst [vmem:[%s1934_s12 + $0x8] sm:$0xf] %v1225_v36 }
 0x2eb   : > { %942 = vst [vmem:[%s1934_s12 + $0xc] sm:$0xf] %v1227_v35 }
 0x2ec PF: > { %p1215_p9 = scmp.lt.s32.totalorder %s1636_s21, 3 }
 0x2ed   : > { %v1228_v37 = vpack.c.bf16 (!%p1215_p9), %v889_v6, %v887_v3  ;;  %v1229_v38 = vpack.c.bf16 (!%p1215_p9), %v893_v12, %v891_v9 }
 0x2ee   : > { %946 = sbr.rel (%p1215_p9) target bundleno = 757 (0x2f5), region = 72 }
 0x2ef   : > { %959 = vst [vmem:[%s1934_s12] sm:$0xff] (!%p1215_p9), %v1228_v37  ;;  %960 = vst [vmem:[%s1934_s12 + $0x8] sm:$0xff] (!%p1215_p9), %v1229_v38 }
 0x2f5 PF: > { %s2066_s26 = sld [smem:[#allocation17_spill]] }
 0x2fb   : > { %p2067_p11 = scmp.ne.s32.totalorder %s2066_s26, 0 }
 0x2fc   : > { %s1230_s5 = sshll.u32 (%p2067_p11), %s1636_s21, 3  ;;  %v1003_v39 = vld [vmem:[%s1934_s12] sm:$0xff] (%p2067_p11)  ;;  %v1005_v40 = vld [vmem:[%s1934_s12 + $0x8] sm:$0xff] (%p2067_p11)  ;;  %s2068_s14 = sld [smem:[#allocation18_spill]] (%p2067_p11) }
 0x2fd   : > { %967 = sbr.rel (!%p2067_p11) target bundleno = 772 (0x304), region = 76 }
 0x302   : > { %s973_s10 = scalar_lea.vmem (%p2067_p11), %s2068_s14, %s1230_s5 }
 0x303   : > { %1004 = vst [vmem:[%s973_s10] sm:$0xff] (%p2067_p11), %v1003_v39  ;;  %1006 = vst [vmem:[%s973_s10 + $0x20] sm:$0xff] (%p2067_p11), %v1005_v40 }
 0x304 PF: > { %s18_s23 = sadd.s32 1, %s1644_s23   ;;  %s2069_s18 = smov %s1628_s19 }
 0x305   : > { %p15_p8 = scmp.ge.s32.totalorder %s18_s23, 6   ;;  %s2070_s19 = smov %s1632_s20 }
 0x306   : > { %s2071_s20 = smov %s1873_s30  ;;  %s2072_s21 = smov %s1640_s22 }
 0x307   : > { %s2073_s22 = smov %s2075_s15  ;;  %17 = sbr.rel (!%p15_p8) target bundleno = 7 (0x7), region = 148 }
 0x30e   :  { %1022 = vsyncpa [#allocation4], 1 }
 0x30f   :  { %1024 = vsyncpa [#allocation4 + $0x1], 1 }
 0x310   :  { %1025 = vsyncpa [#allocation6], 1 }
 0x311   :  { %1026 = vsyncpa [#allocation10], 1 }

// kernel: _transformer_block_impl.9
= control target key start
LH: loop header
LB: loop body
LE: loop exit
PB: predicated region body
PF: predicated region fallthrough
CT: control target
= control target key end

     0   :  { %s5727_s0 = inlined_call_operand.vmem [shape: f32[16,512], index: 0, kind: input, shape index: {}]   ;;  %s5728_s1 = inlined_call_operand.hbm [shape: f32[1,512], index: 1, kind: input, shape index: {}]   ;;  %s5729_s2 = inlined_call_operand.hbm [shape: bf16[512,2048], index: 2, kind: input, shape index: {}]   ;;  %s5730_s3 = inlined_call_operand.hbm [shape: bf16[512,2048], index: 3, kind: input, shape index: {}]   ;;  %s5731_s4 = inlined_call_operand.hbm [shape: bf16[2048,512], index: 4, kind: input, shape index: {}]   ;;  %s5732_s5 = inlined_call_operand.hbm [shape: f32[16,512], index: 5, kind: output, shape index: {}]  }
   0x1   :  { %5747 = sst [smem:[#allocation18_spill]] %s5729_s2 }
   0x2   :  { %5748 = sst [smem:[#allocation19_spill]] %s5730_s3 }
   0x3   :  { %10 = vsyncpa [#allocation5], 0 }
   0x4   :  { %11 = vsyncpa [#allocation8], 0 }
   0x5   :  { %13 = vsyncpa [#allocation8 + $0x1], 0 }
   0x6   :  { %14 = vsyncpa [#allocation11], 0 }
   0x7   :  { %16 = vsyncpa [#allocation11 + $0x1], 0 }
   0x8   :  { %17 = vsyncpa [#allocation6], 0  ;;  %s4951_s18 = smov 0   ;;  %s4953_s19 = smov 0  }
   0x9   :  { %s4955_s20 = smov 0   ;;  %s4957_s21 = smov 0  }
   0xa   :  { %s4959_s22 = smov 0   ;;  %s4961_s23 = smov 0  }
   0xb LB: > { %s32_s24 = sadd.s32 1, %s4904_s22  ;;  %s89_s25 = sadd.s32 1, %s4896_s20  ;;  %s4908_s23 = sphi %s4961_s23, %s23_s23   ;;  %s4904_s22 = sphi %s4959_s22, %s5773_s22   ;;  %s4900_s21 = sphi %s4957_s21, %s5772_s21   ;;  %s4896_s20 = sphi %s4955_s20, %s5771_s20   ;;  %s4892_s19 = sphi %s4953_s19, %s5770_s19   ;;  %s4888_s18 = sphi %s4951_s18, %s5769_s18  }
   0xc   : > { %p33_p0 = scmp.ge.s32.totalorder %s32_s24, 4  ;;  %p96_p1 = scmp.ne.s32.totalorder %s4896_s20, %s4892_s19 }
   0xd   : > { %p97_p2 = scmp.eq.s32.totalorder %s4908_s23, 0  ;;  %p4030_p4 = scmp.lt.s32.totalorder %s4908_s23, 4 }
   0xe   : > { %s5775_s24 = smov (%p33_p0, %s32_s24), 0  ;;  %s225_s27 = sand.u32 1, %s4908_s23  }
   0xf   : > { %5749 = sst [smem:[#allocation17_spill]] %s5775_s24  ;;  %p98_p3 = por %p97_p2, %p96_p1 }
  0x10   : > { %s86_s26 = ssub.s32 %s4904_s22, %s5775_s24  ;;  %s5733_s28 = sand.u32 1, %s4896_s20  }
  0x11   : > { %p87_p5 = scmp.eq.s32.totalorder %s86_s26, 0  ;;  %s3973_s29 = sshll.u32 %s4904_s22, 8 }
  0x12   : > { %s4999_s6 = sshll.u32 %s5733_s28, 10  ;;  %s5750_s2 = sld [smem:[#allocation18_spill]] }
  0x13   : > { %s4995_s30 = scalar_select %p87_p5, %s4896_s20, %s89_s25  }
  0x14   : > { %p5008_p6 = pnand %p4030_p4, %p98_p3  ;;  %s229_s11 = scalar_lea.vmem [#allocation7], %s4999_s6 }
  0x15   : > { %s236_s12 = sshll.u32 %s229_s11, 4  ;;  %s5015_s13 = scalar_lea.sflag [#allocation8], %s225_s27  ;;  %s5013_s12 = int_to_ptr.vmem [resolvable:$true] %s236_s12 }
  0x16   : > { %s5751_s10 = scalar_select %p5008_p6, 1, 0 }
  0x17   : > { %p5021_p8 = pneg %p5008_p6 }
  0x18   : > { %s5006_s9 = scalar_lea.hbm %s5750_s2, %s3973_s29  ;;  %s4707_s25 = scalar_lea.hbm %s5750_s2, 65536 }
  0x19   : > { %s4702_s14 = scalar_lea.hbm %s5006_s9, 16384  ;;  %p4708_p11 = scmp.lt.u32.totalorder %s5006_s9, %s5750_s2 }
  0x1a   : > { %p4703_p7 = scmp.ne.s32.totalorder %s5006_s9, %s4702_s14  ;;  %p4709_p12 = scmp.lt.u32.totalorder %s4707_s25, %s4702_s14 }
  0x1b   : > { %s5752_s15 = scalar_select %p5021_p8, 1, 0 }
  0x1c   : > { %p4705_p9 = pnand %p5021_p8, %p4703_p7  ;;  %p4710_p13 = por %p4709_p12, %p4708_p11 }
  0x1d   : > { %p4711_p0 = scmp.lt.u32.totalorder %s4702_s14, %s5006_s9 }
  0x1e   : > { %p4706_p10 = pneg %p4705_p9 }
  0x1f   : > { %p4712_p1 = por %p4711_p0, %p4710_p13 }
  0x21   : > { %p4713_p2 = pnand %p4712_p1, %p4706_p10 }
  0x23   : > { %4716 = shalt.err (!%p4713_p2)
}
  0x24   : > { %s4717_s27 = scalar_lea.vmem %s5013_s12, 16384  ;;  %s4910_s8 = smov [#allocation7]  }
  0x25   : > { %p4718_p3 = scmp.ne.s32.totalorder %s5013_s12, %s4717_s27  ;;  %s4722_s11 = sshll.u32 %s4910_s8, 4  ;;  %s4723_s11 = int_to_ptr.vmem [resolvable:$false] %s4722_s11 }
  0x26   : > { %s4724_s16 = scalar_lea.vmem %s4723_s11, 32768  ;;  %p4725_p7 = scmp.lt.s32.totalorder %s5013_s12, %s4723_s11 }
  0x27   : > { %p4720_p4 = pnand %p4718_p3, %p5021_p8  ;;  %p4726_p9 = scmp.lt.s32.totalorder %s4724_s16, %s4717_s27 }
  0x29   : > { %p4721_p5 = pneg %p4720_p4  ;;  %p4727_p11 = por %p4726_p9, %p4725_p7 }
  0x2b   : > { %p4728_p12 = pnand %p4727_p11, %p4721_p5 }
  0x2d   : > { %4731 = shalt.err (!%p4728_p12)
}
  0x2e   : > { %s5734_s14 = smov 1024   ;;  %s5735_s17 = smov 256  }
  0x2f   : > { %s5737_s25 = smov 16   ;;  %s5753_s3 = sld [smem:[#allocation19_spill]] }
  0x30   : > { %4022 = dma.hbm_to_vmem [thread:$0]  (!%p5008_p6), %s5006_s9, 16384, %s5013_s12, %s5015_s13, %s5734_s14, %s5735_s17, %s5737_s25  }
  0x31   : > { %s5056_s8 = sadd.s32 4294967295, %s4908_s23   ;;  %p102_p10 = scmp.ne.s32.totalorder %s4892_s19, %s4888_s18 }
  0x32   : > { %p5739_p13 = scmp.eq.s32.totalorder %s5056_s8, 0  ;;  %p3556_p0 = scmp.ge.s32.totalorder %s4908_s23, 1 }
  0x33   : > { %p191_p1 = scmp.lt.s32.totalorder %s4908_s23, 5  ;;  %s4914_s12 = smov [#allocation4]  }
  0x34   : > { %p5065_p2 = por %p5739_p13, %p102_p10  ;;  %s214_s11 = sshll.u32 %s4914_s12, 4  ;;  %s5075_s11 = int_to_ptr.vmem [resolvable:$true] %s214_s11 }
  0x35   : > { %s5053_s27 = scalar_lea.hbm %s5753_s3, %s3973_s29  ;;  %p5069_p3 = pnand %p3556_p0, %p191_p1 }
  0x36   : > { %s5754_s9 = scalar_select %p5065_p2, 1, 0 }
  0x37   : > { %s5755_s29 = scalar_select %p5069_p3, 1, 0 }
  0x38   : > { %p4015_p4 = pneg %p5069_p3  ;;  %s250_s18 = scalar_lea.vmem [#allocation9], %s4999_s6 }
  0x39   : > { %s257_s16 = sshll.u32 %s250_s18, 4  ;;  %s4732_s7 = scalar_lea.hbm %s5053_s27, 16384  ;;  %s5084_s16 = int_to_ptr.vmem [resolvable:$true] %s257_s16 }
  0x3a   : > { %p5080_p5 = pnand %p4015_p4, %p5739_p13  ;;  %p4733_p7 = scmp.ne.s32.totalorder %s5053_s27, %s4732_s7 }
  0x3b   : > { %s4737_s14 = scalar_lea.hbm %s5753_s3, 65536  ;;  %p4738_p12 = scmp.lt.u32.totalorder %s5053_s27, %s5753_s3 }
  0x3c   : > { %s5756_s26 = scalar_select %p5080_p5, 1, 0 }
  0x3d   : > { %p4735_p9 = pnand %p4733_p7, %p5021_p8  ;;  %p4739_p10 = scmp.lt.u32.totalorder %s4737_s14, %s4732_s7 }
  0x3e   : > { %p4741_p1 = scmp.lt.u32.totalorder %s4732_s7, %s5053_s27 }
  0x3f   : > { %p4736_p11 = pneg %p4735_p9  ;;  %p4740_p0 = por %p4739_p10, %p4738_p12 }
  0x41   : > { %p4742_p4 = por %p4741_p1, %p4740_p0 }
  0x43   : > { %p4743_p13 = pnand %p4742_p4, %p4736_p11 }
  0x45   : > { %4746 = shalt.err (!%p4743_p13)
}
  0x46   : > { %s4747_s18 = scalar_lea.vmem %s5084_s16, 16384  ;;  %s4915_s28 = smov [#allocation9]  }
  0x47   : > { %p4748_p7 = scmp.ne.s32.totalorder %s5084_s16, %s4747_s18  ;;  %s4752_s12 = sshll.u32 %s4915_s28, 4  ;;  %s4753_s12 = int_to_ptr.vmem [resolvable:$false] %s4752_s12 }
  0x48   : > { %s4754_s17 = scalar_lea.vmem %s4753_s12, 32768  ;;  %p4755_p3 = scmp.lt.s32.totalorder %s5084_s16, %s4753_s12 }
  0x49   : > { %p4750_p9 = pnand %p4748_p7, %p5021_p8  ;;  %p4756_p5 = scmp.lt.s32.totalorder %s4754_s17, %s4747_s18 }
  0x4b   : > { %p4751_p2 = pneg %p4750_p9  ;;  %p4757_p12 = por %p4756_p5, %p4755_p3 }
  0x4d   : > { %p4758_p10 = pnand %p4757_p12, %p4751_p2 }
  0x4f   : > { %4761 = shalt.err (!%p4758_p10)
}
  0x50   : > { %s5757_s14 = smov 16   ;;  %s5758_s25 = smov 256  }
  0x51   : > { %s5759_s7 = smov 1024   ;;  %s4762_s28 = scalar_lea.hbm %s5728_s1, 64 }
  0x52   : > { %4025 = dma.hbm_to_vmem [thread:$0]  (!%p5008_p6), %s5053_s27, 16384, %s5084_s16, %s5015_s13, %s5759_s7, %s5758_s25, %s5757_s14  }
  0x53   : > { %p4763_p13 = scmp.ne.s32.totalorder %s5728_s1, %s4762_s28  ;;  %p5760_p2 = scmp.ne.s32.totalorder %s5756_s26, 0 }
  0x54   : > { %p4769_p0 = scmp.lt.u32.totalorder %s4762_s28, %s5728_s1 }
  0x55   : > { %p4764_p3 = pneg %p5760_p2 }
  0x57   : > { %p4765_p5 = pnand %p4764_p3, %p4763_p13 }
  0x59   : > { %p4766_p11 = pneg %p4765_p5 }
  0x5b   : > { %p4771_p1 = pnand %p4769_p0, %p4766_p11 }
  0x5d   : > { %4774 = shalt.err (!%p4771_p1)
}
  0x5e   : > { %s4775_s13 = scalar_lea.vmem %s5075_s11, 64  ;;  %p4783_p12 = scmp.lt.s32.totalorder %s5075_s11, %s5075_s11 }
  0x5f   : > { %p4776_p4 = scmp.ne.s32.totalorder %s5075_s11, %s4775_s13  ;;  %p4784_p10 = scmp.lt.s32.totalorder %s4775_s13, %s4775_s13 }
  0x61   : > { %p4778_p7 = pnand %p4776_p4, %p4764_p3  ;;  %p4785_p6 = por %p4784_p10, %p4783_p12 }
  0x63   : > { %p4779_p9 = pneg %p4778_p7 }
  0x65   : > { %p4786_p8 = pnand %p4785_p6, %p4779_p9 }
  0x67   : > { %4789 = shalt.err (!%p4786_p8)
}
  0x68   : > { %4018 = dma.hbm_to_vmem [thread:$0]  (!%p5760_p2), %s5728_s1, 64, %s5075_s11, [#allocation5]  }
  0x69   : > { %s3976_s24 = sshll.u32 %s4904_s22, 14  ;;  %s271_s27 = scalar_lea.vmem [#allocation10], %s4999_s6 }
  0x6a   : > { %s279_s16 = sshll.u32 %s271_s27, 4  ;;  %s5137_s12 = scalar_lea.hbm %s5731_s4, %s3976_s24  ;;  %s5139_s16 = int_to_ptr.vmem [resolvable:$true] %s279_s16 }
  0x6b   : > { %s5761_s26 = sand.u32 1, %s4896_s20   ;;  %s4790_s17 = scalar_lea.hbm %s5137_s12, 16384 }
  0x6c   : > { %s5143_s18 = scalar_lea.sflag [#allocation11], %s5761_s26  ;;  %p4791_p6 = scmp.ne.s32.totalorder %s5137_s12, %s4790_s17 }
  0x6d   : > { %p5762_p8 = scmp.ne.s32.totalorder %s5752_s15, 0  ;;  %s4795_s13 = scalar_lea.hbm %s5731_s4, 65536 }
  0x6e   : > { %p4796_p3 = scmp.lt.u32.totalorder %s5137_s12, %s5731_s4  ;;  %p4797_p5 = scmp.lt.u32.totalorder %s4795_s13, %s4790_s17 }
  0x6f   : > { %p4793_p13 = pnand %p4791_p6, %p5762_p8  ;;  %p4799_p0 = scmp.lt.u32.totalorder %s4790_s17, %s5137_s12 }
  0x70   : > { %p4798_p11 = por %p4797_p5, %p4796_p3 }
  0x71   : > { %p4794_p2 = pneg %p4793_p13 }
  0x72   : > { %p4800_p1 = por %p4799_p0, %p4798_p11 }
  0x74   : > { %p4801_p4 = pnand %p4800_p1, %p4794_p2 }
  0x76   : > { %4804 = shalt.err (!%p4801_p4)
}
  0x77   : > { %s4805_s24 = scalar_lea.vmem %s5139_s16, 16384  ;;  %s4916_s27 = smov [#allocation10]  }
  0x78   : > { %p4806_p7 = scmp.ne.s32.totalorder %s5139_s16, %s4805_s24  ;;  %s4810_s7 = sshll.u32 %s4916_s27, 4  ;;  %s4811_s7 = int_to_ptr.vmem [resolvable:$false] %s4810_s7 }
  0x79   : > { %s4812_s28 = scalar_lea.vmem %s4811_s7, 32768  ;;  %p4813_p10 = scmp.lt.s32.totalorder %s5139_s16, %s4811_s7 }
  0x7a   : > { %p4808_p9 = pnand %p4806_p7, %p5762_p8  ;;  %p4814_p6 = scmp.lt.s32.totalorder %s4812_s28, %s4805_s24 }
  0x7c   : > { %p4809_p12 = pneg %p4808_p9  ;;  %p4815_p13 = por %p4814_p6, %p4813_p10 }
  0x7e   : > { %p4816_p3 = pnand %p4815_p13, %p4809_p12 }
  0x80   : > { %4819 = shalt.err (!%p4816_p3)
}
  0x81   : > { %p5763_p2 = scmp.ne.s32.totalorder %s5751_s10, 0  ;;  %p5764_p8 = scmp.ne.s32.totalorder %s5755_s29, 0 }
  0x82   : > { %p5765_p5 = scmp.eq.s32.totalorder (!%p5764_p8), %s5056_s8, 0 }
  0x83   : > { %4028 = dma.hbm_to_vmem [thread:$0]  (!%p5763_p2), %s5137_s12, 16384, %s5139_s16, %s5143_s18, %s5758_s25, %s5758_s25, %s5757_s14  }
  0x84   : > { %291 = sbr.rel (%p5764_p8) target bundleno = 1122 (0x462), region = 40 }
  0x8b   : > { %4871 = dma.done.wait (%p5765_p5), [#allocation5], 64   ;;  %p5766_p11 = pmov %p5765_p5 }
  0x8c   : > { %s297_s10 = sand.u32 1, %s5056_s8   ;;  %s299_s15 = sand.u32 1, %s4892_s19  }
  0x8d   : > { %4873 = vsyncadd (%p5766_p11), [#allocation5], 4294967232  ;;  %s3572_s26 = sshll.u32 %s299_s15, 10  ;;  %s298_s17 = scalar_lea.sflag [#allocation8], %s297_s10 }
  0x8e   : > { %s5178_s6 = scalar_lea.vmem [#allocation7], %s3572_s26  ;;  %p5767_p0 = scmp.ne.s32.totalorder %s5754_s9, 0 }
  0x90   : > { %4875 = dma.done.wait (%p5767_p0), %s298_s17, 32768  }
  0x91   : > { %4877 = vsyncadd (%p5767_p0), %s298_s17, 4294934528  ;;  %s5184_s29 = scalar_lea.vmem [#allocation9], %s3572_s26  ;;  %s316_s14 = scalar_lea.sflag [#allocation11], %s299_s15 }
  0x92   : > { %s5186_s25 = scalar_lea.vmem [#allocation10], %s3572_s26 }
  0x93   : > { %4879 = dma.done.wait (%p5767_p0), %s316_s14, 16384  }
  0x94   : > { %4881 = vsyncadd (%p5767_p0), %s316_s14, 4294950912  ;;  %p3575_p1 = scmp.ne.s32.totalorder %s4900_s21, 0 }
  0x95   : > { %v372_v0 = vld [vmem:[%s5727_s0] sm:$0xff] (!%p3575_p1)  ;;  %v373_v1 = vld [vmem:[%s5727_s0 + $0x8] sm:$0xff] (!%p3575_p1)  ;;  %v374_v2 = vld [vmem:[%s5727_s0 + $0x10] sm:$0xff] (!%p3575_p1)  ;;  %v4917_v22 = vmov (!%p3575_p1), 0.0   ;;  %v415_v26 = vlaneseq (!%p3575_p1) }
  0x96   : > { %371 = sbr.rel (%p3575_p1) target bundleno = 327 (0x147), region = 60  ;;  %v375_v3 = vld [vmem:[%s5727_s0 + $0x18] sm:$0xff] (!%p3575_p1)  ;;  %v380_v4 = vmul.f32 (!%p3575_p1), %v372_v0, %v372_v0  ;;  %v381_v5 = vmul.f32 (!%p3575_p1), %v373_v1, %v373_v1  ;;  %v382_v6 = vmul.f32 (!%p3575_p1), %v374_v2, %v374_v2  ;;  %v376_v7 = vld [vmem:[%s5727_s0 + $0x20] sm:$0xff] (!%p3575_p1)  ;;  %v377_v8 = vld [vmem:[%s5727_s0 + $0x28] sm:$0xff] (!%p3575_p1)  ;;  %451 = vst [vmem:[#allocation3] sm:$0xff] (!%p3575_p1), %v4917_v22 }
  0x97   : > { %v378_v9 = vld [vmem:[%s5727_s0 + $0x30] sm:$0xff] (!%p3575_p1)  ;;  %v379_v10 = vld [vmem:[%s5727_s0 + $0x38] sm:$0xff] (!%p3575_p1)  ;;  %v384_v11 = vmul.f32 (!%p3575_p1), %v376_v7, %v376_v7  ;;  %v385_v12 = vmul.f32 (!%p3575_p1), %v377_v8, %v377_v8  ;;  %v383_v13 = vmul.f32 (!%p3575_p1), %v375_v3, %v375_v3  ;;  %452 = vst [vmem:[#allocation3 + $0x8] sm:$0xff] (!%p3575_p1), %v4917_v22  ;;  %453 = vst [vmem:[#allocation3 + $0x10] sm:$0xff] (!%p3575_p1), %v4917_v22  ;;  %v416_v30 = vshrl.u32 (!%p3575_p1), %v415_v26, 7 }
  0x98   : > { %v388_v14 = vadd.f32 (!%p3575_p1), %v381_v5, %v380_v4  ;;  %v386_v15 = vmul.f32 (!%p3575_p1), %v378_v9, %v378_v9  ;;  %v387_v18 = vmul.f32 (!%p3575_p1), %v379_v10, %v379_v10  ;;  %454 = vst [vmem:[#allocation3 + $0x18] sm:$0xff] (!%p3575_p1), %v4917_v22  ;;  %455 = vst [vmem:[#allocation3 + $0x20] sm:$0xff] (!%p3575_p1), %v4917_v22  ;;  %v413_v35 = vld [vmem:[#allocation4] sm:$0xf] (!%p3575_p1) }
  0x99   : > { %v393_v16 = vadd.f32 (!%p3575_p1), %v385_v12, %v384_v11  ;;  %456 = vst [vmem:[#allocation3 + $0x28] sm:$0xff] (!%p3575_p1), %v4917_v22  ;;  %457 = vst [vmem:[#allocation3 + $0x30] sm:$0xff] (!%p3575_p1), %v4917_v22  ;;  %v417_v31 = vsub.s32 (!%p3575_p1), 0, %v416_v30  ;;  %v421_v32 = vsub.s32 (!%p3575_p1), 1, %v416_v30  ;;  %v425_v33 = vsub.s32 (!%p3575_p1), 2, %v416_v30 }
  0x9a   : > { %v389_v17 = vadd.f32 (!%p3575_p1), %v388_v14, %v382_v6  ;;  %458 = vst [vmem:[#allocation3 + $0x38] sm:$0xff] (!%p3575_p1), %v4917_v22  ;;  %v429_v34 = vsub.s32 (!%p3575_p1), 3, %v416_v30 }
  0x9b   : > { %v394_v19 = vadd.f32 (!%p3575_p1), %v393_v16, %v386_v15  ;;  %v418_v37 = vrot.slane (!%p3575_p1), %v413_v35, %v417_v31  ;;  %v422_v38 = vrot.slane (!%p3575_p1), %v413_v35, %v421_v32  ;;  %v426_v39 = vrot.slane (!%p3575_p1), %v413_v35, %v425_v33 }
  0x9c   : > { %v390_v20 = vadd.f32 (!%p3575_p1), %v389_v17, %v383_v13  ;;  %v430_v40 = vrot.slane (!%p3575_p1), %v413_v35, %v429_v34 }
  0x9d   : > { %v395_v21 = vadd.f32 %v394_v19, %v387_v18 }
  0x9e   : > { %391 = vadd.xlane.f32.xlu0 %v390_v20 }
  0xa2   : > { %396 = vadd.xlane.f32.xlu0 %v395_v21 }
 0x12b   : > { %v392_v23 = vpop.xlane.xlu0 %391 }
 0x12c   : > { %v399_v24 = vmul.f32 0.001953125, %v392_v23 }
 0x12e   : > { %v401_v25 = vadd.f32 1e-05, %v399_v24 }
 0x12f   : > { %v397_v27 = vpop.xlane.xlu0 %396 }
 0x130   : > { %4090 = vrsqrt.f32 %v401_v25  ;;  %v400_v28 = vmul.f32 0.001953125, %v397_v27 }
 0x132   : > { %v402_v29 = vadd.f32 1e-05, %v400_v28 }
 0x134   : > { %4092 = vrsqrt.f32 %v402_v29 }
 0x13a   : > { %v4091_v36 = vpop.eup %4090 }
 0x13b   : > { %v405_v41 = vmul.f32 %v4091_v36, %v372_v0  ;;  %v406_v42 = vmul.f32 %v4091_v36, %v373_v1  ;;  %v407_v43 = vmul.f32 %v4091_v36, %v374_v2  ;;  %v408_v44 = vmul.f32 %v4091_v36, %v375_v3 }
 0x13d   : > { %v435_v50 = vmul.f32 %v418_v37, %v405_v41  ;;  %v436_v51 = vmul.f32 %v422_v38, %v406_v42  ;;  %v437_v52 = vmul.f32 %v426_v39, %v407_v43  ;;  %v438_v53 = vmul.f32 %v430_v40, %v408_v44 }
 0x13e   : > { %v4093_v45 = vpop.eup %4092 }
 0x13f   : > { %v409_v46 = vmul.f32 %v4093_v45, %v376_v7  ;;  %v410_v47 = vmul.f32 %v4093_v45, %v377_v8  ;;  %v411_v48 = vmul.f32 %v4093_v45, %v378_v9  ;;  %v412_v49 = vmul.f32 %v4093_v45, %v379_v10 }
 0x141   : > { %v439_v54 = vmul.f32 %v418_v37, %v409_v46  ;;  %v440_v55 = vmul.f32 %v422_v38, %v410_v47  ;;  %v441_v56 = vmul.f32 %v426_v39, %v411_v48  ;;  %v442_v57 = vmul.f32 %v430_v40, %v412_v49 }
 0x143   : > { %v443_v58 = vpack.c.bf16 %v439_v54, %v435_v50  ;;  %v444_v59 = vpack.c.bf16 %v440_v55, %v436_v51  ;;  %v445_v60 = vpack.c.bf16 %v441_v56, %v437_v52  ;;  %v446_v61 = vpack.c.bf16 %v442_v57, %v438_v53 }
 0x145   : > { %447 = vst [vmem:[#allocation2] sm:$0xff] %v443_v58  ;;  %448 = vst [vmem:[#allocation2 + $0x8] sm:$0xff] %v444_v59 }
 0x146   : > { %449 = vst [vmem:[#allocation2 + $0x10] sm:$0xff] %v445_v60  ;;  %450 = vst [vmem:[#allocation2 + $0x18] sm:$0xff] %v446_v61 }
 0x147 PF: > { %v4094_v62 = vld [vmem:[%s5178_s6 + $0x4] ss:$16 sps:$4 sm:$0xff]   ;;  %v4096_v63 = vld [vmem:[%s5178_s6 + $0xc] ss:$16 sps:$4 sm:$0xff]   ;;  %v4098_v0 = vld [vmem:[%s5178_s6] ss:$16 sps:$4 sm:$0xff]  }
 0x148   : > { %1231 = vmatprep.subr.bf16.mxu0 %v4094_v62  ;;  %v4099_v1 = vld [vmem:[%s5178_s6 + $0x8] ss:$16 sps:$4 sm:$0xff]   ;;  %1317 = vmatprep.subr.bf16.mxu1 %v4096_v63  ;;  %v4100_v2 = vld [vmem:[%s5178_s6 + $0x24] ss:$16 sps:$4 sm:$0xff]   ;;  %v4102_v3 = vld [vmem:[%s5178_s6 + $0x2c] ss:$16 sps:$4 sm:$0xff]  }
 0x149   : > { %1232 = vmatpush1.bf16.msra.mxu0 %v4098_v0  ;;  %1318 = vmatpush1.bf16.msra.mxu1 %v4099_v1  ;;  %v4104_v4 = vld [vmem:[%s5178_s6 + $0x20] ss:$16 sps:$4 sm:$0xff]   ;;  %v4105_v5 = vld [vmem:[%s5178_s6 + $0x28] ss:$16 sps:$4 sm:$0xff]   ;;  %v4106_v6 = vld [vmem:[%s5178_s6 + $0x44] ss:$16 sps:$4 sm:$0xff]  }
 0x14a   : > { %1233 = vmatprep.subr.bf16.mxu0 %v4100_v2  ;;  %1319 = vmatprep.subr.bf16.mxu1 %v4102_v3  ;;  %v4108_v7 = vld [vmem:[%s5178_s6 + $0x4c] ss:$16 sps:$4 sm:$0xff]   ;;  %v4110_v8 = vld [vmem:[%s5178_s6 + $0x40] ss:$16 sps:$4 sm:$0xff]   ;;  %v4111_v9 = vld [vmem:[%s5178_s6 + $0x48] ss:$16 sps:$4 sm:$0xff]  }
 0x14b   : > { %v4112_v10 = vld [vmem:[%s5178_s6 + $0x64] ss:$16 sps:$4 sm:$0xff]   ;;  %v4114_v11 = vld [vmem:[%s5178_s6 + $0x6c] ss:$16 sps:$4 sm:$0xff]   ;;  %v4116_v12 = vld [vmem:[%s5178_s6 + $0x60] ss:$16 sps:$4 sm:$0xff]  }
 0x14c   : > { %v4117_v13 = vld [vmem:[%s5178_s6 + $0x68] ss:$16 sps:$4 sm:$0xff]   ;;  %v4118_v14 = vld [vmem:[%s5178_s6 + $0x84] ss:$16 sps:$4 sm:$0xff]   ;;  %v4120_v15 = vld [vmem:[%s5178_s6 + $0x8c] ss:$16 sps:$4 sm:$0xff]  }
 0x14d   : > { %1234 = vmatpush1.bf16.msra.mxu0 %v4104_v4  ;;  %1320 = vmatpush1.bf16.msra.mxu1 %v4105_v5  ;;  %v4122_v16 = vld [vmem:[%s5178_s6 + $0x80] ss:$16 sps:$4 sm:$0xff]   ;;  %v4123_v17 = vld [vmem:[%s5178_s6 + $0x88] ss:$16 sps:$4 sm:$0xff]   ;;  %v4124_v18 = vld [vmem:[%s5178_s6 + $0xa4] ss:$16 sps:$4 sm:$0xff]  }
 0x14e   : > { %1235 = vmatprep.subr.bf16.mxu0 %v4106_v6  ;;  %1321 = vmatprep.subr.bf16.mxu1 %v4108_v7  ;;  %v4126_v19 = vld [vmem:[%s5178_s6 + $0xac] ss:$16 sps:$4 sm:$0xff]   ;;  %v4128_v20 = vld [vmem:[%s5178_s6 + $0xa0] ss:$16 sps:$4 sm:$0xff]   ;;  %v4129_v21 = vld [vmem:[%s5178_s6 + $0xa8] ss:$16 sps:$4 sm:$0xff]  }
 0x14f   : > { %v4130_v22 = vld [vmem:[%s5178_s6 + $0xc4] ss:$16 sps:$4 sm:$0xff]   ;;  %v4132_v23 = vld [vmem:[%s5178_s6 + $0xcc] ss:$16 sps:$4 sm:$0xff]   ;;  %v4134_v24 = vld [vmem:[%s5178_s6 + $0xc0] ss:$16 sps:$4 sm:$0xff]  }
 0x150   : > { %v4135_v25 = vld [vmem:[%s5178_s6 + $0xc8] ss:$16 sps:$4 sm:$0xff]   ;;  %v4136_v26 = vld [vmem:[%s5178_s6 + $0xe4] ss:$16 sps:$4 sm:$0xff]   ;;  %v4138_v27 = vld [vmem:[%s5178_s6 + $0xec] ss:$16 sps:$4 sm:$0xff]  }
 0x151   : > { %1236 = vmatpush1.bf16.msra.mxu0 %v4110_v8  ;;  %1322 = vmatpush1.bf16.msra.mxu1 %v4111_v9  ;;  %v4140_v28 = vld [vmem:[%s5178_s6 + $0xe0] ss:$16 sps:$4 sm:$0xff]   ;;  %v4141_v29 = vld [vmem:[%s5178_s6 + $0xe8] ss:$16 sps:$4 sm:$0xff]   ;;  %v4142_v30 = vld [vmem:[%s5178_s6 + $0x104] ss:$16 sps:$4 sm:$0xff]  }
 0x152   : > { %1237 = vmatprep.subr.bf16.mxu0 %v4112_v10  ;;  %1323 = vmatprep.subr.bf16.mxu1 %v4114_v11  ;;  %v4144_v31 = vld [vmem:[%s5178_s6 + $0x10c] ss:$16 sps:$4 sm:$0xff]   ;;  %v4146_v32 = vld [vmem:[%s5178_s6 + $0x100] ss:$16 sps:$4 sm:$0xff]   ;;  %v4147_v33 = vld [vmem:[%s5178_s6 + $0x108] ss:$16 sps:$4 sm:$0xff]  }
 0x153   : > { %v4148_v34 = vld [vmem:[%s5178_s6 + $0x124] ss:$16 sps:$4 sm:$0xff]   ;;  %v4150_v35 = vld [vmem:[%s5178_s6 + $0x12c] ss:$16 sps:$4 sm:$0xff]   ;;  %v4152_v36 = vld [vmem:[%s5178_s6 + $0x120] ss:$16 sps:$4 sm:$0xff]  }
 0x154   : > { %v4153_v37 = vld [vmem:[%s5178_s6 + $0x128] ss:$16 sps:$4 sm:$0xff]   ;;  %v4154_v38 = vld [vmem:[%s5178_s6 + $0x144] ss:$16 sps:$4 sm:$0xff]   ;;  %v4156_v39 = vld [vmem:[%s5178_s6 + $0x14c] ss:$16 sps:$4 sm:$0xff]  }
 0x155   : > { %1238 = vmatpush1.bf16.msra.mxu0 %v4116_v12  ;;  %1324 = vmatpush1.bf16.msra.mxu1 %v4117_v13  ;;  %v4158_v40 = vld [vmem:[%s5178_s6 + $0x140] ss:$16 sps:$4 sm:$0xff]   ;;  %v4159_v41 = vld [vmem:[%s5178_s6 + $0x148] ss:$16 sps:$4 sm:$0xff]   ;;  %v4160_v42 = vld [vmem:[%s5178_s6 + $0x164] ss:$16 sps:$4 sm:$0xff]  }
 0x156   : > { %1239 = vmatprep.subr.bf16.mxu0 %v4118_v14  ;;  %1325 = vmatprep.subr.bf16.mxu1 %v4120_v15  ;;  %v4162_v43 = vld [vmem:[%s5178_s6 + $0x16c] ss:$16 sps:$4 sm:$0xff]   ;;  %v5263_v44 = vld [vmem:[#allocation2 + $0x8] sm:$0xff]  ;;  %v4164_v45 = vld [vmem:[%s5178_s6 + $0x160] ss:$16 sps:$4 sm:$0xff]   ;;  %p3968_p4 = scmp.ne.s32.totalorder %s4900_s21, 3 }
 0x157   : > { %1263 = vmatprep.mubr.bf16.mxu0 %v5263_v44  ;;  %1349 = vmatprep.mubr.bf16.mxu1 %v5263_v44  ;;  %v4165_v46 = vld [vmem:[%s5178_s6 + $0x168] ss:$16 sps:$4 sm:$0xff]   ;;  %v4166_v47 = vld [vmem:[%s5178_s6 + $0x184] ss:$16 sps:$4 sm:$0xff]   ;;  %v4168_v48 = vld [vmem:[%s5178_s6 + $0x18c] ss:$16 sps:$4 sm:$0xff]  }
 0x158   : > { %v4170_v49 = vld [vmem:[%s5178_s6 + $0x180] ss:$16 sps:$4 sm:$0xff]   ;;  %v4171_v50 = vld [vmem:[%s5178_s6 + $0x188] ss:$16 sps:$4 sm:$0xff]   ;;  %v4172_v51 = vld [vmem:[%s5178_s6 + $0x1a4] ss:$16 sps:$4 sm:$0xff]  }
 0x159   : > { %1240 = vmatpush1.bf16.msra.mxu0 %v4122_v16  ;;  %1326 = vmatpush1.bf16.msra.mxu1 %v4123_v17  ;;  %v4174_v52 = vld [vmem:[%s5178_s6 + $0x1ac] ss:$16 sps:$4 sm:$0xff]   ;;  %v4176_v53 = vld [vmem:[%s5178_s6 + $0x1a0] ss:$16 sps:$4 sm:$0xff]   ;;  %v4177_v54 = vld [vmem:[%s5178_s6 + $0x1a8] ss:$16 sps:$4 sm:$0xff]  }
 0x15a   : > { %1241 = vmatprep.subr.bf16.mxu0 %v4124_v18  ;;  %1327 = vmatprep.subr.bf16.mxu1 %v4126_v19  ;;  %v4178_v55 = vld [vmem:[%s5178_s6 + $0x1c4] ss:$16 sps:$4 sm:$0xff]   ;;  %v4180_v56 = vld [vmem:[%s5178_s6 + $0x1cc] ss:$16 sps:$4 sm:$0xff]   ;;  %v4182_v57 = vld [vmem:[%s5178_s6 + $0x1c0] ss:$16 sps:$4 sm:$0xff]  }
 0x15b   : > { %v4183_v58 = vld [vmem:[%s5178_s6 + $0x1c8] ss:$16 sps:$4 sm:$0xff]   ;;  %v4184_v59 = vld [vmem:[%s5178_s6 + $0x1e4] ss:$16 sps:$4 sm:$0xff]   ;;  %v4186_v60 = vld [vmem:[%s5178_s6 + $0x1ec] ss:$16 sps:$4 sm:$0xff]  }
 0x15c   : > { %v4188_v61 = vld [vmem:[%s5178_s6 + $0x1e0] ss:$16 sps:$4 sm:$0xff]   ;;  %v4189_v62 = vld [vmem:[%s5178_s6 + $0x1e8] ss:$16 sps:$4 sm:$0xff]   ;;  %v4192_v63 = vld [vmem:[%s5178_s6 + $0x204] ss:$16 sps:$4 sm:$0xff]  }
 0x15d   : > { %1242 = vmatpush1.bf16.msra.mxu0 %v4128_v20  ;;  %1328 = vmatpush1.bf16.msra.mxu1 %v4129_v21  ;;  %v4195_v0 = vld [vmem:[%s5178_s6 + $0x20c] ss:$16 sps:$4 sm:$0xff]   ;;  %v4190_v1 = vld [vmem:[%s5178_s6 + $0x200] ss:$16 sps:$4 sm:$0xff]   ;;  %v4193_v2 = vld [vmem:[%s5178_s6 + $0x208] ss:$16 sps:$4 sm:$0xff]  }
 0x15e   : > { %1243 = vmatprep.subr.bf16.mxu0 %v4130_v22  ;;  %1329 = vmatprep.subr.bf16.mxu1 %v4132_v23  ;;  %v5289_v3 = vld [vmem:[#allocation2] sm:$0xff]  ;;  %v4198_v4 = vld [vmem:[%s5178_s6 + $0x224] ss:$16 sps:$4 sm:$0xff]   ;;  %v4199_v7 = vld [vmem:[%s5178_s6 + $0x228] ss:$16 sps:$4 sm:$0xff]  }
 0x15f   : > { %v4201_v5 = vld [vmem:[%s5178_s6 + $0x22c] ss:$16 sps:$4 sm:$0xff]   ;;  %v4196_v6 = vld [vmem:[%s5178_s6 + $0x220] ss:$16 sps:$4 sm:$0xff]   ;;  %v4204_v8 = vld [vmem:[%s5178_s6 + $0x244] ss:$16 sps:$4 sm:$0xff]  }
 0x160   : > { %v4207_v9 = vld [vmem:[%s5178_s6 + $0x24c] ss:$16 sps:$4 sm:$0xff]   ;;  %v4202_v10 = vld [vmem:[%s5178_s6 + $0x240] ss:$16 sps:$4 sm:$0xff]   ;;  %v4205_v11 = vld [vmem:[%s5178_s6 + $0x248] ss:$16 sps:$4 sm:$0xff]  }
 0x161   : > { %1244 = vmatpush1.bf16.msra.mxu0 %v4134_v24  ;;  %1330 = vmatpush1.bf16.msra.mxu1 %v4135_v25  ;;  %v4210_v12 = vld [vmem:[%s5178_s6 + $0x264] ss:$16 sps:$4 sm:$0xff]   ;;  %v4213_v13 = vld [vmem:[%s5178_s6 + $0x26c] ss:$16 sps:$4 sm:$0xff]   ;;  %v4208_v14 = vld [vmem:[%s5178_s6 + $0x260] ss:$16 sps:$4 sm:$0xff]  }
 0x162   : > { %1245 = vmatprep.subr.bf16.mxu0 %v4136_v26  ;;  %1331 = vmatprep.subr.bf16.mxu1 %v4138_v27  ;;  %v4211_v15 = vld [vmem:[%s5178_s6 + $0x268] ss:$16 sps:$4 sm:$0xff]   ;;  %v4216_v16 = vld [vmem:[%s5178_s6 + $0x284] ss:$16 sps:$4 sm:$0xff]   ;;  %v4219_v17 = vld [vmem:[%s5178_s6 + $0x28c] ss:$16 sps:$4 sm:$0xff]  }
 0x163   : > { %v4214_v18 = vld [vmem:[%s5178_s6 + $0x280] ss:$16 sps:$4 sm:$0xff]   ;;  %v4217_v19 = vld [vmem:[%s5178_s6 + $0x288] ss:$16 sps:$4 sm:$0xff]   ;;  %v4222_v20 = vld [vmem:[%s5178_s6 + $0x2a4] ss:$16 sps:$4 sm:$0xff]  }
 0x164   : > { %v4225_v21 = vld [vmem:[%s5178_s6 + $0x2ac] ss:$16 sps:$4 sm:$0xff]   ;;  %v4220_v22 = vld [vmem:[%s5178_s6 + $0x2a0] ss:$16 sps:$4 sm:$0xff]   ;;  %v4223_v23 = vld [vmem:[%s5178_s6 + $0x2a8] ss:$16 sps:$4 sm:$0xff]  }
 0x165   : > { %1246 = vmatpush1.bf16.msra.mxu0 %v4140_v28  ;;  %1332 = vmatpush1.bf16.msra.mxu1 %v4141_v29  ;;  %v4228_v24 = vld [vmem:[%s5178_s6 + $0x2c4] ss:$16 sps:$4 sm:$0xff]   ;;  %v4231_v25 = vld [vmem:[%s5178_s6 + $0x2cc] ss:$16 sps:$4 sm:$0xff]   ;;  %v4226_v27 = vld [vmem:[%s5178_s6 + $0x2c0] ss:$16 sps:$4 sm:$0xff]  }
 0x166   : > { %1247 = vmatprep.subr.bf16.mxu0 %v4142_v30  ;;  %1333 = vmatprep.subr.bf16.mxu1 %v4144_v31  ;;  %v5315_v26 = vld [vmem:[#allocation2 + $0x18] sm:$0xff]  ;;  %v4237_v30 = vld [vmem:[%s5178_s6 + $0x2ec] ss:$16 sps:$4 sm:$0xff]   ;;  %v4232_v31 = vld [vmem:[%s5178_s6 + $0x2e0] ss:$16 sps:$4 sm:$0xff]  }
 0x167   : > { %v4229_v28 = vld [vmem:[%s5178_s6 + $0x2c8] ss:$16 sps:$4 sm:$0xff]   ;;  %v4234_v29 = vld [vmem:[%s5178_s6 + $0x2e4] ss:$16 sps:$4 sm:$0xff]  }
 0x169   : > { %1248 = vmatpush1.bf16.msra.mxu0 %v4146_v32  ;;  %1334 = vmatpush1.bf16.msra.mxu1 %v4147_v33  ;;  %v4235_v32 = vld [vmem:[%s5178_s6 + $0x2e8] ss:$16 sps:$4 sm:$0xff]   ;;  %v4240_v33 = vld [vmem:[%s5178_s6 + $0x304] ss:$16 sps:$4 sm:$0xff]  }
 0x16a   : > { %1249 = vmatprep.subr.bf16.mxu0 %v4148_v34  ;;  %1335 = vmatprep.subr.bf16.mxu1 %v4150_v35  ;;  %v4243_v34 = vld [vmem:[%s5178_s6 + $0x30c] ss:$16 sps:$4 sm:$0xff]   ;;  %v4238_v35 = vld [vmem:[%s5178_s6 + $0x300] ss:$16 sps:$4 sm:$0xff]  }
 0x16d   : > { %1250 = vmatpush1.bf16.msra.mxu0 %v4152_v36  ;;  %1336 = vmatpush1.bf16.msra.mxu1 %v4153_v37  ;;  %v4241_v36 = vld [vmem:[%s5178_s6 + $0x308] ss:$16 sps:$4 sm:$0xff]   ;;  %v4246_v37 = vld [vmem:[%s5178_s6 + $0x324] ss:$16 sps:$4 sm:$0xff]  }
 0x16e   : > { %1251 = vmatprep.subr.bf16.mxu0 %v4154_v38  ;;  %1337 = vmatprep.subr.bf16.mxu1 %v4156_v39  ;;  %v4249_v38 = vld [vmem:[%s5178_s6 + $0x32c] ss:$16 sps:$4 sm:$0xff]   ;;  %v4244_v39 = vld [vmem:[%s5178_s6 + $0x320] ss:$16 sps:$4 sm:$0xff]  }
 0x171   : > { %1252 = vmatpush1.bf16.msra.mxu0 %v4158_v40  ;;  %1338 = vmatpush1.bf16.msra.mxu1 %v4159_v41  ;;  %v4247_v40 = vld [vmem:[%s5178_s6 + $0x328] ss:$16 sps:$4 sm:$0xff]   ;;  %v4252_v41 = vld [vmem:[%s5178_s6 + $0x344] ss:$16 sps:$4 sm:$0xff]  }
 0x172   : > { %1253 = vmatprep.subr.bf16.mxu0 %v4160_v42  ;;  %1339 = vmatprep.subr.bf16.mxu1 %v4162_v43  ;;  %v4255_v42 = vld [vmem:[%s5178_s6 + $0x34c] ss:$16 sps:$4 sm:$0xff]   ;;  %v4250_v43 = vld [vmem:[%s5178_s6 + $0x340] ss:$16 sps:$4 sm:$0xff]  }
 0x175   : > { %1254 = vmatpush1.bf16.msra.mxu0 %v4164_v45  ;;  %1340 = vmatpush1.bf16.msra.mxu1 %v4165_v46  ;;  %v4253_v45 = vld [vmem:[%s5178_s6 + $0x348] ss:$16 sps:$4 sm:$0xff]   ;;  %v4258_v46 = vld [vmem:[%s5178_s6 + $0x364] ss:$16 sps:$4 sm:$0xff]  }
 0x176   : > { %1255 = vmatprep.subr.bf16.mxu0 %v4166_v47  ;;  %1341 = vmatprep.subr.bf16.mxu1 %v4168_v48  ;;  %v4261_v47 = vld [vmem:[%s5178_s6 + $0x36c] ss:$16 sps:$4 sm:$0xff]   ;;  %v4256_v48 = vld [vmem:[%s5178_s6 + $0x360] ss:$16 sps:$4 sm:$0xff]  }
 0x179   : > { %1256 = vmatpush1.bf16.msra.mxu0 %v4170_v49  ;;  %1342 = vmatpush1.bf16.msra.mxu1 %v4171_v50  ;;  %v4259_v49 = vld [vmem:[%s5178_s6 + $0x368] ss:$16 sps:$4 sm:$0xff]   ;;  %v4264_v50 = vld [vmem:[%s5178_s6 + $0x384] ss:$16 sps:$4 sm:$0xff]  }
 0x17a   : > { %1257 = vmatprep.subr.bf16.mxu0 %v4172_v51  ;;  %1343 = vmatprep.subr.bf16.mxu1 %v4174_v52  ;;  %v4267_v51 = vld [vmem:[%s5178_s6 + $0x38c] ss:$16 sps:$4 sm:$0xff]   ;;  %v4262_v52 = vld [vmem:[%s5178_s6 + $0x380] ss:$16 sps:$4 sm:$0xff]  }
 0x17d   : > { %1258 = vmatpush1.bf16.msra.mxu0 %v4176_v53  ;;  %1344 = vmatpush1.bf16.msra.mxu1 %v4177_v54  ;;  %v4265_v53 = vld [vmem:[%s5178_s6 + $0x388] ss:$16 sps:$4 sm:$0xff]   ;;  %v4270_v54 = vld [vmem:[%s5178_s6 + $0x3a4] ss:$16 sps:$4 sm:$0xff]  }
 0x17e   : > { %1259 = vmatprep.subr.bf16.mxu0 %v4178_v55  ;;  %1345 = vmatprep.subr.bf16.mxu1 %v4180_v56  ;;  %v4273_v55 = vld [vmem:[%s5178_s6 + $0x3ac] ss:$16 sps:$4 sm:$0xff]   ;;  %v4268_v56 = vld [vmem:[%s5178_s6 + $0x3a0] ss:$16 sps:$4 sm:$0xff]  }
 0x181   : > { %1260 = vmatpush1.bf16.msra.mxu0 %v4182_v57  ;;  %1346 = vmatpush1.bf16.msra.mxu1 %v4183_v58  ;;  %v4271_v57 = vld [vmem:[%s5178_s6 + $0x3a8] ss:$16 sps:$4 sm:$0xff]   ;;  %v4276_v58 = vld [vmem:[%s5178_s6 + $0x3c4] ss:$16 sps:$4 sm:$0xff]  }
 0x182   : > { %1261 = vmatprep.subr.bf16.mxu0 %v4184_v59  ;;  %1347 = vmatprep.subr.bf16.mxu1 %v4186_v60  ;;  %v4279_v59 = vld [vmem:[%s5178_s6 + $0x3cc] ss:$16 sps:$4 sm:$0xff]   ;;  %v4274_v60 = vld [vmem:[%s5178_s6 + $0x3c0] ss:$16 sps:$4 sm:$0xff]  }
 0x185   : > { %1262 = vmatpush1.bf16.msra.mxu0 %v4188_v61  ;;  %1348 = vmatpush1.bf16.msra.mxu1 %v4189_v62  ;;  %v4277_v61 = vld [vmem:[%s5178_s6 + $0x3c8] ss:$16 sps:$4 sm:$0xff]   ;;  %v4282_v62 = vld [vmem:[%s5178_s6 + $0x3e4] ss:$16 sps:$4 sm:$0xff]  }
 0x186   : > { %1274 = vmatprep.subr.bf16.mxu0 %v4192_v63  ;;  %1360 = vmatprep.subr.bf16.mxu1 %v4195_v0  ;;  %v4285_v63 = vld [vmem:[%s5178_s6 + $0x3ec] ss:$16 sps:$4 sm:$0xff]   ;;  %v4280_v0 = vld [vmem:[%s5178_s6 + $0x3e0] ss:$16 sps:$4 sm:$0xff]  }
 0x188   : > { %1264 = vmatmul.mubr.bf16.vlgmr.msra.gmra.mrb[0].mxu0 %v5289_v3  ;;  %1350 = vmatmul.mubr.bf16.vlgmr.msra.gmra.mrb[0].mxu1 %v5289_v3 }
 0x189   : > { %1275 = vmatpush1.bf16.msra.mxu0 %v4190_v1  ;;  %1361 = vmatpush1.bf16.msra.mxu1 %v4193_v2  ;;  %v4283_v1 = vld [vmem:[%s5178_s6 + $0x3e8] ss:$16 sps:$4 sm:$0xff]   ;;  %v4288_v2 = vld [vmem:[%s5184_s29 + $0x4] ss:$16 sps:$4 sm:$0xff]  }
 0x18a   : > { %1276 = vmatprep.subr.bf16.mxu0 %v4198_v4  ;;  %1362 = vmatprep.subr.bf16.mxu1 %v4201_v5  ;;  %v4291_v4 = vld [vmem:[%s5184_s29 + $0xc] ss:$16 sps:$4 sm:$0xff]  }
 0x18b   : > { %1306 = vmatprep.mubr.bf16.mxu0 %v5315_v26  ;;  %1392 = vmatprep.mubr.bf16.mxu1 %v5315_v26  ;;  %v5359_v5 = vld [vmem:[#allocation2 + $0x10] sm:$0xff] }
 0x18d   : > { %1277 = vmatpush1.bf16.msra.mxu0 %v4196_v6  ;;  %1363 = vmatpush1.bf16.msra.mxu1 %v4199_v7  ;;  %v4286_v6 = vld [vmem:[%s5184_s29] ss:$16 sps:$4 sm:$0xff]   ;;  %v4289_v7 = vld [vmem:[%s5184_s29 + $0x8] ss:$16 sps:$4 sm:$0xff]  }
 0x18e   : > { %1278 = vmatprep.subr.bf16.mxu0 %v4204_v8  ;;  %1364 = vmatprep.subr.bf16.mxu1 %v4207_v9  ;;  %v4294_v8 = vld [vmem:[%s5184_s29 + $0x24] ss:$16 sps:$4 sm:$0xff]   ;;  %v4297_v9 = vld [vmem:[%s5184_s29 + $0x2c] ss:$16 sps:$4 sm:$0xff]  }
 0x191   : > { %1279 = vmatpush1.bf16.msra.mxu0 %v4202_v10  ;;  %1365 = vmatpush1.bf16.msra.mxu1 %v4205_v11  ;;  %v4292_v10 = vld [vmem:[%s5184_s29 + $0x20] ss:$16 sps:$4 sm:$0xff]   ;;  %v4295_v11 = vld [vmem:[%s5184_s29 + $0x28] ss:$16 sps:$4 sm:$0xff]  }
 0x192   : > { %1280 = vmatprep.subr.bf16.mxu0 %v4210_v12  ;;  %1366 = vmatprep.subr.bf16.mxu1 %v4213_v13  ;;  %v4300_v12 = vld [vmem:[%s5184_s29 + $0x44] ss:$16 sps:$4 sm:$0xff]   ;;  %v4303_v13 = vld [vmem:[%s5184_s29 + $0x4c] ss:$16 sps:$4 sm:$0xff]  }
 0x195   : > { %1281 = vmatpush1.bf16.msra.mxu0 %v4208_v14  ;;  %1367 = vmatpush1.bf16.msra.mxu1 %v4211_v15  ;;  %v4298_v14 = vld [vmem:[%s5184_s29 + $0x40] ss:$16 sps:$4 sm:$0xff]   ;;  %v4301_v15 = vld [vmem:[%s5184_s29 + $0x48] ss:$16 sps:$4 sm:$0xff]  }
 0x196   : > { %1282 = vmatprep.subr.bf16.mxu0 %v4216_v16  ;;  %1368 = vmatprep.subr.bf16.mxu1 %v4219_v17  ;;  %v4306_v16 = vld [vmem:[%s5184_s29 + $0x64] ss:$16 sps:$4 sm:$0xff]   ;;  %v4309_v17 = vld [vmem:[%s5184_s29 + $0x6c] ss:$16 sps:$4 sm:$0xff]  }
 0x199   : > { %1283 = vmatpush1.bf16.msra.mxu0 %v4214_v18  ;;  %1369 = vmatpush1.bf16.msra.mxu1 %v4217_v19  ;;  %v4304_v18 = vld [vmem:[%s5184_s29 + $0x60] ss:$16 sps:$4 sm:$0xff]   ;;  %v4307_v19 = vld [vmem:[%s5184_s29 + $0x68] ss:$16 sps:$4 sm:$0xff]  }
 0x19a   : > { %1284 = vmatprep.subr.bf16.mxu0 %v4222_v20  ;;  %1370 = vmatprep.subr.bf16.mxu1 %v4225_v21  ;;  %v4315_v20 = vld [vmem:[%s5184_s29 + $0x8c] ss:$16 sps:$4 sm:$0xff]   ;;  %v4310_v21 = vld [vmem:[%s5184_s29 + $0x80] ss:$16 sps:$4 sm:$0xff]  }
 0x19d   : > { %1285 = vmatpush1.bf16.msra.mxu0 %v4220_v22  ;;  %1371 = vmatpush1.bf16.msra.mxu1 %v4223_v23  ;;  %v4313_v22 = vld [vmem:[%s5184_s29 + $0x88] ss:$16 sps:$4 sm:$0xff]   ;;  %v4318_v23 = vld [vmem:[%s5184_s29 + $0xa4] ss:$16 sps:$4 sm:$0xff]  }
 0x19e   : > { %1286 = vmatprep.subr.bf16.mxu0 %v4228_v24  ;;  %1372 = vmatprep.subr.bf16.mxu1 %v4231_v25  ;;  %v4321_v24 = vld [vmem:[%s5184_s29 + $0xac] ss:$16 sps:$4 sm:$0xff]   ;;  %v4316_v25 = vld [vmem:[%s5184_s29 + $0xa0] ss:$16 sps:$4 sm:$0xff]  }
 0x1a1   : > { %1287 = vmatpush1.bf16.msra.mxu0 %v4226_v27  ;;  %1373 = vmatpush1.bf16.msra.mxu1 %v4229_v28  ;;  %v4319_v27 = vld [vmem:[%s5184_s29 + $0xa8] ss:$16 sps:$4 sm:$0xff]   ;;  %v4324_v28 = vld [vmem:[%s5184_s29 + $0xc4] ss:$16 sps:$4 sm:$0xff]  }
 0x1a2   : > { %1288 = vmatprep.subr.bf16.mxu0 %v4234_v29  ;;  %1374 = vmatprep.subr.bf16.mxu1 %v4237_v30  ;;  %v4327_v29 = vld [vmem:[%s5184_s29 + $0xcc] ss:$16 sps:$4 sm:$0xff]   ;;  %v4322_v30 = vld [vmem:[%s5184_s29 + $0xc0] ss:$16 sps:$4 sm:$0xff]  }
 0x1a5   : > { %1289 = vmatpush1.bf16.msra.mxu0 %v4232_v31  ;;  %1375 = vmatpush1.bf16.msra.mxu1 %v4235_v32  ;;  %v4325_v31 = vld [vmem:[%s5184_s29 + $0xc8] ss:$16 sps:$4 sm:$0xff]   ;;  %v4330_v32 = vld [vmem:[%s5184_s29 + $0xe4] ss:$16 sps:$4 sm:$0xff]  }
 0x1a6   : > { %1290 = vmatprep.subr.bf16.mxu0 %v4240_v33  ;;  %1376 = vmatprep.subr.bf16.mxu1 %v4243_v34  ;;  %v4333_v33 = vld [vmem:[%s5184_s29 + $0xec] ss:$16 sps:$4 sm:$0xff]   ;;  %v4328_v34 = vld [vmem:[%s5184_s29 + $0xe0] ss:$16 sps:$4 sm:$0xff]  }
 0x1a9   : > { %1291 = vmatpush1.bf16.msra.mxu0 %v4238_v35  ;;  %1377 = vmatpush1.bf16.msra.mxu1 %v4241_v36  ;;  %v4331_v35 = vld [vmem:[%s5184_s29 + $0xe8] ss:$16 sps:$4 sm:$0xff]   ;;  %v4336_v36 = vld [vmem:[%s5184_s29 + $0x104] ss:$16 sps:$4 sm:$0xff]  }
 0x1aa   : > { %1292 = vmatprep.subr.bf16.mxu0 %v4246_v37  ;;  %1378 = vmatprep.subr.bf16.mxu1 %v4249_v38  ;;  %v4339_v37 = vld [vmem:[%s5184_s29 + $0x10c] ss:$16 sps:$4 sm:$0xff]   ;;  %v4334_v38 = vld [vmem:[%s5184_s29 + $0x100] ss:$16 sps:$4 sm:$0xff]  }
 0x1ad   : > { %1293 = vmatpush1.bf16.msra.mxu0 %v4244_v39  ;;  %1379 = vmatpush1.bf16.msra.mxu1 %v4247_v40  ;;  %v4337_v39 = vld [vmem:[%s5184_s29 + $0x108] ss:$16 sps:$4 sm:$0xff]   ;;  %v4342_v40 = vld [vmem:[%s5184_s29 + $0x124] ss:$16 sps:$4 sm:$0xff]  }
 0x1ae   : > { %1294 = vmatprep.subr.bf16.mxu0 %v4252_v41  ;;  %1380 = vmatprep.subr.bf16.mxu1 %v4255_v42  ;;  %v4345_v41 = vld [vmem:[%s5184_s29 + $0x12c] ss:$16 sps:$4 sm:$0xff]   ;;  %v4340_v42 = vld [vmem:[%s5184_s29 + $0x120] ss:$16 sps:$4 sm:$0xff]  }
 0x1b1   : > { %1295 = vmatpush1.bf16.msra.mxu0 %v4250_v43  ;;  %1381 = vmatpush1.bf16.msra.mxu1 %v4253_v45  ;;  %v4343_v43 = vld [vmem:[%s5184_s29 + $0x128] ss:$16 sps:$4 sm:$0xff]   ;;  %v4348_v45 = vld [vmem:[%s5184_s29 + $0x144] ss:$16 sps:$4 sm:$0xff]  }
 0x1b2   : > { %1296 = vmatprep.subr.bf16.mxu0 %v4258_v46  ;;  %1382 = vmatprep.subr.bf16.mxu1 %v4261_v47  ;;  %v4351_v46 = vld [vmem:[%s5184_s29 + $0x14c] ss:$16 sps:$4 sm:$0xff]   ;;  %v4346_v47 = vld [vmem:[%s5184_s29 + $0x140] ss:$16 sps:$4 sm:$0xff]  }
 0x1b5   : > { %1297 = vmatpush1.bf16.msra.mxu0 %v4256_v48  ;;  %1383 = vmatpush1.bf16.msra.mxu1 %v4259_v49  ;;  %v4349_v48 = vld [vmem:[%s5184_s29 + $0x148] ss:$16 sps:$4 sm:$0xff]   ;;  %v4354_v49 = vld [vmem:[%s5184_s29 + $0x164] ss:$16 sps:$4 sm:$0xff]  }
 0x1b6   : > { %1298 = vmatprep.subr.bf16.mxu0 %v4264_v50  ;;  %1384 = vmatprep.subr.bf16.mxu1 %v4267_v51  ;;  %v4357_v50 = vld [vmem:[%s5184_s29 + $0x16c] ss:$16 sps:$4 sm:$0xff]   ;;  %v4352_v51 = vld [vmem:[%s5184_s29 + $0x160] ss:$16 sps:$4 sm:$0xff]  }
 0x1b9   : > { %1299 = vmatpush1.bf16.msra.mxu0 %v4262_v52  ;;  %1385 = vmatpush1.bf16.msra.mxu1 %v4265_v53  ;;  %v4355_v52 = vld [vmem:[%s5184_s29 + $0x168] ss:$16 sps:$4 sm:$0xff]   ;;  %v4360_v53 = vld [vmem:[%s5184_s29 + $0x184] ss:$16 sps:$4 sm:$0xff]  }
 0x1ba   : > { %1300 = vmatprep.subr.bf16.mxu0 %v4270_v54  ;;  %1386 = vmatprep.subr.bf16.mxu1 %v4273_v55  ;;  %v4363_v54 = vld [vmem:[%s5184_s29 + $0x18c] ss:$16 sps:$4 sm:$0xff]   ;;  %v4358_v55 = vld [vmem:[%s5184_s29 + $0x180] ss:$16 sps:$4 sm:$0xff]  }
 0x1bd   : > { %1301 = vmatpush1.bf16.msra.mxu0 %v4268_v56  ;;  %1387 = vmatpush1.bf16.msra.mxu1 %v4271_v57  ;;  %v4361_v56 = vld [vmem:[%s5184_s29 + $0x188] ss:$16 sps:$4 sm:$0xff]   ;;  %v4366_v57 = vld [vmem:[%s5184_s29 + $0x1a4] ss:$16 sps:$4 sm:$0xff]  }
 0x1be   : > { %1302 = vmatprep.subr.bf16.mxu0 %v4276_v58  ;;  %1388 = vmatprep.subr.bf16.mxu1 %v4279_v59  ;;  %v4369_v58 = vld [vmem:[%s5184_s29 + $0x1ac] ss:$16 sps:$4 sm:$0xff]   ;;  %v4364_v59 = vld [vmem:[%s5184_s29 + $0x1a0] ss:$16 sps:$4 sm:$0xff]  }
 0x1c1   : > { %1303 = vmatpush1.bf16.msra.mxu0 %v4274_v60  ;;  %1389 = vmatpush1.bf16.msra.mxu1 %v4277_v61  ;;  %v4367_v60 = vld [vmem:[%s5184_s29 + $0x1a8] ss:$16 sps:$4 sm:$0xff]   ;;  %v4372_v61 = vld [vmem:[%s5184_s29 + $0x1c4] ss:$16 sps:$4 sm:$0xff]  }
 0x1c2   : > { %1304 = vmatprep.subr.bf16.mxu0 %v4282_v62  ;;  %1390 = vmatprep.subr.bf16.mxu1 %v4285_v63  ;;  %v4375_v62 = vld [vmem:[%s5184_s29 + $0x1cc] ss:$16 sps:$4 sm:$0xff]   ;;  %v4370_v63 = vld [vmem:[%s5184_s29 + $0x1c0] ss:$16 sps:$4 sm:$0xff]  }
 0x1c5   : > { %1305 = vmatpush1.bf16.msra.mxu0 %v4280_v0  ;;  %1391 = vmatpush1.bf16.msra.mxu1 %v4283_v1  ;;  %v4373_v0 = vld [vmem:[%s5184_s29 + $0x1c8] ss:$16 sps:$4 sm:$0xff]   ;;  %v4378_v1 = vld [vmem:[%s5184_s29 + $0x1e4] ss:$16 sps:$4 sm:$0xff]  }
 0x1c6   : > { %2171 = vmatprep.subr.bf16.mxu0 %v4288_v2  ;;  %2257 = vmatprep.subr.bf16.mxu1 %v4291_v4  ;;  %v4381_v2 = vld [vmem:[%s5184_s29 + $0x1ec] ss:$16 sps:$4 sm:$0xff]   ;;  %v4376_v4 = vld [vmem:[%s5184_s29 + $0x1e0] ss:$16 sps:$4 sm:$0xff]  }
 0x1c8   : > { %1307 = vmatmul.mubr.bf16.vlgmr.msra.gmra.mrb[0].mxu0 %v5359_v5  ;;  %1393 = vmatmul.mubr.bf16.vlgmr.msra.gmra.mrb[0].mxu1 %v5359_v5 }
 0x1c9   : > { %2172 = vmatpush1.bf16.msra.mxu0 %v4286_v6  ;;  %2258 = vmatpush1.bf16.msra.mxu1 %v4289_v7  ;;  %v4379_v6 = vld [vmem:[%s5184_s29 + $0x1e8] ss:$16 sps:$4 sm:$0xff]   ;;  %v4384_v7 = vld [vmem:[%s5184_s29 + $0x204] ss:$16 sps:$4 sm:$0xff]  }
 0x1ca   : > { %2173 = vmatprep.subr.bf16.mxu0 %v4294_v8  ;;  %2259 = vmatprep.subr.bf16.mxu1 %v4297_v9  ;;  %v4387_v8 = vld [vmem:[%s5184_s29 + $0x20c] ss:$16 sps:$4 sm:$0xff]   ;;  %v4382_v9 = vld [vmem:[%s5184_s29 + $0x200] ss:$16 sps:$4 sm:$0xff]  }
 0x1cb   : > { %2203 = vmatprep.mubr.bf16.mxu0 %v5263_v44  ;;  %2289 = vmatprep.mubr.bf16.mxu1 %v5263_v44  ;;  %v4312_v44 = vld [vmem:[%s5184_s29 + $0x84] ss:$16 sps:$4 sm:$0xff]  }
 0x1cd   : > { %2174 = vmatpush1.bf16.msra.mxu0 %v4292_v10  ;;  %2260 = vmatpush1.bf16.msra.mxu1 %v4295_v11  ;;  %v4385_v10 = vld [vmem:[%s5184_s29 + $0x208] ss:$16 sps:$4 sm:$0xff]   ;;  %v4390_v11 = vld [vmem:[%s5184_s29 + $0x224] ss:$16 sps:$4 sm:$0xff]  }
 0x1ce   : > { %2175 = vmatprep.subr.bf16.mxu0 %v4300_v12  ;;  %2261 = vmatprep.subr.bf16.mxu1 %v4303_v13  ;;  %v4393_v12 = vld [vmem:[%s5184_s29 + $0x22c] ss:$16 sps:$4 sm:$0xff]   ;;  %v4388_v13 = vld [vmem:[%s5184_s29 + $0x220] ss:$16 sps:$4 sm:$0xff]  }
 0x1d1   : > { %2176 = vmatpush1.bf16.msra.mxu0 %v4298_v14  ;;  %2262 = vmatpush1.bf16.msra.mxu1 %v4301_v15  ;;  %v4391_v14 = vld [vmem:[%s5184_s29 + $0x228] ss:$16 sps:$4 sm:$0xff]   ;;  %v4396_v15 = vld [vmem:[%s5184_s29 + $0x244] ss:$16 sps:$4 sm:$0xff]  }
 0x1d2   : > { %2177 = vmatprep.subr.bf16.mxu0 %v4306_v16  ;;  %2263 = vmatprep.subr.bf16.mxu1 %v4309_v17  ;;  %v4399_v16 = vld [vmem:[%s5184_s29 + $0x24c] ss:$16 sps:$4 sm:$0xff]   ;;  %v4394_v17 = vld [vmem:[%s5184_s29 + $0x240] ss:$16 sps:$4 sm:$0xff]  }
 0x1d5   : > { %2178 = vmatpush1.bf16.msra.mxu0 %v4304_v18  ;;  %2264 = vmatpush1.bf16.msra.mxu1 %v4307_v19  ;;  %v4397_v18 = vld [vmem:[%s5184_s29 + $0x248] ss:$16 sps:$4 sm:$0xff]   ;;  %v4402_v19 = vld [vmem:[%s5184_s29 + $0x264] ss:$16 sps:$4 sm:$0xff]  }
 0x1d6   : > { %2179 = vmatprep.subr.bf16.mxu0 %v4312_v44  ;;  %2265 = vmatprep.subr.bf16.mxu1 %v4315_v20  ;;  %v4400_v44 = vld [vmem:[%s5184_s29 + $0x260] ss:$16 sps:$4 sm:$0xff]   ;;  %v4403_v20 = vld [vmem:[%s5184_s29 + $0x268] ss:$16 sps:$4 sm:$0xff]  }
 0x1d9   : > { %2180 = vmatpush1.bf16.msra.mxu0 %v4310_v21  ;;  %2266 = vmatpush1.bf16.msra.mxu1 %v4313_v22  ;;  %v4408_v21 = vld [vmem:[%s5184_s29 + $0x284] ss:$16 sps:$4 sm:$0xff]   ;;  %v4411_v22 = vld [vmem:[%s5184_s29 + $0x28c] ss:$16 sps:$4 sm:$0xff]  }
 0x1da   : > { %2181 = vmatprep.subr.bf16.mxu0 %v4318_v23  ;;  %2267 = vmatprep.subr.bf16.mxu1 %v4321_v24  ;;  %v4409_v23 = vld [vmem:[%s5184_s29 + $0x288] ss:$16 sps:$4 sm:$0xff]   ;;  %v4414_v24 = vld [vmem:[%s5184_s29 + $0x2a4] ss:$16 sps:$4 sm:$0xff]  }
 0x1dd   : > { %2182 = vmatpush1.bf16.msra.mxu0 %v4316_v25  ;;  %2268 = vmatpush1.bf16.msra.mxu1 %v4319_v27  ;;  %v4417_v25 = vld [vmem:[%s5184_s29 + $0x2ac] ss:$16 sps:$4 sm:$0xff]   ;;  %v4412_v27 = vld [vmem:[%s5184_s29 + $0x2a0] ss:$16 sps:$4 sm:$0xff]  }
 0x1de   : > { %2183 = vmatprep.subr.bf16.mxu0 %v4324_v28  ;;  %2269 = vmatprep.subr.bf16.mxu1 %v4327_v29  ;;  %v4415_v28 = vld [vmem:[%s5184_s29 + $0x2a8] ss:$16 sps:$4 sm:$0xff]   ;;  %v4420_v29 = vld [vmem:[%s5184_s29 + $0x2c4] ss:$16 sps:$4 sm:$0xff]  }
 0x1e1   : > { %2184 = vmatpush1.bf16.msra.mxu0 %v4322_v30  ;;  %2270 = vmatpush1.bf16.msra.mxu1 %v4325_v31  ;;  %v4423_v30 = vld [vmem:[%s5184_s29 + $0x2cc] ss:$16 sps:$4 sm:$0xff]   ;;  %v4418_v31 = vld [vmem:[%s5184_s29 + $0x2c0] ss:$16 sps:$4 sm:$0xff]  }
 0x1e2   : > { %2185 = vmatprep.subr.bf16.mxu0 %v4330_v32  ;;  %2271 = vmatprep.subr.bf16.mxu1 %v4333_v33  ;;  %v4421_v32 = vld [vmem:[%s5184_s29 + $0x2c8] ss:$16 sps:$4 sm:$0xff]   ;;  %v4426_v33 = vld [vmem:[%s5184_s29 + $0x2e4] ss:$16 sps:$4 sm:$0xff]  }
 0x1e5   : > { %2186 = vmatpush1.bf16.msra.mxu0 %v4328_v34  ;;  %2272 = vmatpush1.bf16.msra.mxu1 %v4331_v35  ;;  %v4429_v34 = vld [vmem:[%s5184_s29 + $0x2ec] ss:$16 sps:$4 sm:$0xff]   ;;  %v4424_v35 = vld [vmem:[%s5184_s29 + $0x2e0] ss:$16 sps:$4 sm:$0xff]  }
 0x1e6   : > { %2187 = vmatprep.subr.bf16.mxu0 %v4336_v36  ;;  %2273 = vmatprep.subr.bf16.mxu1 %v4339_v37  ;;  %v4427_v36 = vld [vmem:[%s5184_s29 + $0x2e8] ss:$16 sps:$4 sm:$0xff]   ;;  %v4432_v37 = vld [vmem:[%s5184_s29 + $0x304] ss:$16 sps:$4 sm:$0xff]  }
 0x1e9   : > { %2188 = vmatpush1.bf16.msra.mxu0 %v4334_v38  ;;  %2274 = vmatpush1.bf16.msra.mxu1 %v4337_v39  ;;  %v4435_v38 = vld [vmem:[%s5184_s29 + $0x30c] ss:$16 sps:$4 sm:$0xff]   ;;  %v4430_v39 = vld [vmem:[%s5184_s29 + $0x300] ss:$16 sps:$4 sm:$0xff]  }
 0x1ea   : > { %2189 = vmatprep.subr.bf16.mxu0 %v4342_v40  ;;  %2275 = vmatprep.subr.bf16.mxu1 %v4345_v41  ;;  %v4433_v40 = vld [vmem:[%s5184_s29 + $0x308] ss:$16 sps:$4 sm:$0xff]   ;;  %v4438_v41 = vld [vmem:[%s5184_s29 + $0x324] ss:$16 sps:$4 sm:$0xff]  }
 0x1ed   : > { %2190 = vmatpush1.bf16.msra.mxu0 %v4340_v42  ;;  %2276 = vmatpush1.bf16.msra.mxu1 %v4343_v43  ;;  %v4441_v42 = vld [vmem:[%s5184_s29 + $0x32c] ss:$16 sps:$4 sm:$0xff]   ;;  %v4436_v43 = vld [vmem:[%s5184_s29 + $0x320] ss:$16 sps:$4 sm:$0xff]  }
 0x1ee   : > { %2191 = vmatprep.subr.bf16.mxu0 %v4348_v45  ;;  %2277 = vmatprep.subr.bf16.mxu1 %v4351_v46  ;;  %v4439_v45 = vld [vmem:[%s5184_s29 + $0x328] ss:$16 sps:$4 sm:$0xff]   ;;  %v4444_v46 = vld [vmem:[%s5184_s29 + $0x344] ss:$16 sps:$4 sm:$0xff]  }
 0x1f1   : > { %2192 = vmatpush1.bf16.msra.mxu0 %v4346_v47  ;;  %2278 = vmatpush1.bf16.msra.mxu1 %v4349_v48  ;;  %v4447_v47 = vld [vmem:[%s5184_s29 + $0x34c] ss:$16 sps:$4 sm:$0xff]   ;;  %v4442_v48 = vld [vmem:[%s5184_s29 + $0x340] ss:$16 sps:$4 sm:$0xff]  }
 0x1f2   : > { %2193 = vmatprep.subr.bf16.mxu0 %v4354_v49  ;;  %2279 = vmatprep.subr.bf16.mxu1 %v4357_v50  ;;  %v4445_v49 = vld [vmem:[%s5184_s29 + $0x348] ss:$16 sps:$4 sm:$0xff]   ;;  %v4450_v50 = vld [vmem:[%s5184_s29 + $0x364] ss:$16 sps:$4 sm:$0xff]  }
 0x1f5   : > { %2194 = vmatpush1.bf16.msra.mxu0 %v4352_v51  ;;  %2280 = vmatpush1.bf16.msra.mxu1 %v4355_v52  ;;  %v4453_v51 = vld [vmem:[%s5184_s29 + $0x36c] ss:$16 sps:$4 sm:$0xff]   ;;  %v4448_v52 = vld [vmem:[%s5184_s29 + $0x360] ss:$16 sps:$4 sm:$0xff]  }
 0x1f6   : > { %2195 = vmatprep.subr.bf16.mxu0 %v4360_v53  ;;  %2281 = vmatprep.subr.bf16.mxu1 %v4363_v54  ;;  %v4451_v53 = vld [vmem:[%s5184_s29 + $0x368] ss:$16 sps:$4 sm:$0xff]   ;;  %v4456_v54 = vld [vmem:[%s5184_s29 + $0x384] ss:$16 sps:$4 sm:$0xff]  }
 0x1f9   : > { %2196 = vmatpush1.bf16.msra.mxu0 %v4358_v55  ;;  %2282 = vmatpush1.bf16.msra.mxu1 %v4361_v56  ;;  %v4459_v55 = vld [vmem:[%s5184_s29 + $0x38c] ss:$16 sps:$4 sm:$0xff]   ;;  %v4454_v56 = vld [vmem:[%s5184_s29 + $0x380] ss:$16 sps:$4 sm:$0xff]  }
 0x1fa   : > { %2197 = vmatprep.subr.bf16.mxu0 %v4366_v57  ;;  %2283 = vmatprep.subr.bf16.mxu1 %v4369_v58  ;;  %v4457_v57 = vld [vmem:[%s5184_s29 + $0x388] ss:$16 sps:$4 sm:$0xff]   ;;  %v4462_v58 = vld [vmem:[%s5184_s29 + $0x3a4] ss:$16 sps:$4 sm:$0xff]  }
 0x1fd   : > { %2198 = vmatpush1.bf16.msra.mxu0 %v4364_v59  ;;  %2284 = vmatpush1.bf16.msra.mxu1 %v4367_v60  ;;  %v4465_v59 = vld [vmem:[%s5184_s29 + $0x3ac] ss:$16 sps:$4 sm:$0xff]   ;;  %v4460_v60 = vld [vmem:[%s5184_s29 + $0x3a0] ss:$16 sps:$4 sm:$0xff]  }
 0x1fe   : > { %2199 = vmatprep.subr.bf16.mxu0 %v4372_v61  ;;  %2285 = vmatprep.subr.bf16.mxu1 %v4375_v62  ;;  %v4463_v61 = vld [vmem:[%s5184_s29 + $0x3a8] ss:$16 sps:$4 sm:$0xff]   ;;  %v4468_v62 = vld [vmem:[%s5184_s29 + $0x3c4] ss:$16 sps:$4 sm:$0xff]  }
 0x201   : > { %2200 = vmatpush1.bf16.msra.mxu0 %v4370_v63  ;;  %2286 = vmatpush1.bf16.msra.mxu1 %v4373_v0  ;;  %v4471_v63 = vld [vmem:[%s5184_s29 + $0x3cc] ss:$16 sps:$4 sm:$0xff]   ;;  %v4466_v0 = vld [vmem:[%s5184_s29 + $0x3c0] ss:$16 sps:$4 sm:$0xff]  }
 0x202   : > { %2201 = vmatprep.subr.bf16.mxu0 %v4378_v1  ;;  %2287 = vmatprep.subr.bf16.mxu1 %v4381_v2  ;;  %v4469_v1 = vld [vmem:[%s5184_s29 + $0x3c8] ss:$16 sps:$4 sm:$0xff]   ;;  %v4474_v2 = vld [vmem:[%s5184_s29 + $0x3e4] ss:$16 sps:$4 sm:$0xff]  }
 0x205   : > { %2202 = vmatpush1.bf16.msra.mxu0 %v4376_v4  ;;  %2288 = vmatpush1.bf16.msra.mxu1 %v4379_v6  ;;  %v4477_v4 = vld [vmem:[%s5184_s29 + $0x3ec] ss:$16 sps:$4 sm:$0xff]   ;;  %v4472_v6 = vld [vmem:[%s5184_s29 + $0x3e0] ss:$16 sps:$4 sm:$0xff]  }
 0x206   : > { %2214 = vmatprep.subr.bf16.mxu0 %v4384_v7  ;;  %2300 = vmatprep.subr.bf16.mxu1 %v4387_v8  ;;  %v4475_v7 = vld [vmem:[%s5184_s29 + $0x3e8] ss:$16 sps:$4 sm:$0xff]   ;;  %v4480_v8 = vld [vmem:[%s5186_s25 + $0x4] ss:$16 sps:$4 sm:$0xff]  }
 0x208   : > { %2204 = vmatmul.mubr.bf16.vlgmr.msra.gmra.mrb[4].mxu0 %v5289_v3  ;;  %2290 = vmatmul.mubr.bf16.vlgmr.msra.gmra.mrb[4].mxu1 %v5289_v3  ;;  %v4405_v3 = vld [vmem:[%s5184_s29 + $0x26c] ss:$16 sps:$4 sm:$0xff]  }
 0x209   : > { %2215 = vmatpush1.bf16.msra.mxu0 %v4382_v9  ;;  %2301 = vmatpush1.bf16.msra.mxu1 %v4385_v10  ;;  %v4483_v9 = vld [vmem:[%s5186_s25 + $0xc] ss:$16 sps:$4 sm:$0xff]   ;;  %v4478_v10 = vld [vmem:[%s5186_s25] ss:$16 sps:$4 sm:$0xff]  }
 0x20a   : > { %2216 = vmatprep.subr.bf16.mxu0 %v4390_v11  ;;  %2302 = vmatprep.subr.bf16.mxu1 %v4393_v12  ;;  %v4481_v11 = vld [vmem:[%s5186_s25 + $0x8] ss:$16 sps:$4 sm:$0xff]   ;;  %v4486_v12 = vld [vmem:[%s5186_s25 + $0x24] ss:$16 sps:$4 sm:$0xff]  }
 0x20b   : > { %2246 = vmatprep.mubr.bf16.mxu0 %v5315_v26  ;;  %2332 = vmatprep.mubr.bf16.mxu1 %v5315_v26  ;;  %v4406_v26 = vld [vmem:[%s5184_s29 + $0x280] ss:$16 sps:$4 sm:$0xff]  }
 0x20d   : > { %2217 = vmatpush1.bf16.msra.mxu0 %v4388_v13  ;;  %2303 = vmatpush1.bf16.msra.mxu1 %v4391_v14  ;;  %v4489_v13 = vld [vmem:[%s5186_s25 + $0x2c] ss:$16 sps:$4 sm:$0xff]   ;;  %v4484_v14 = vld [vmem:[%s5186_s25 + $0x20] ss:$16 sps:$4 sm:$0xff]  }
 0x20e   : > { %2218 = vmatprep.subr.bf16.mxu0 %v4396_v15  ;;  %2304 = vmatprep.subr.bf16.mxu1 %v4399_v16  ;;  %v4487_v15 = vld [vmem:[%s5186_s25 + $0x28] ss:$16 sps:$4 sm:$0xff]   ;;  %v4492_v16 = vld [vmem:[%s5186_s25 + $0x44] ss:$16 sps:$4 sm:$0xff]  }
 0x211   : > { %2219 = vmatpush1.bf16.msra.mxu0 %v4394_v17  ;;  %2305 = vmatpush1.bf16.msra.mxu1 %v4397_v18  ;;  %v4495_v17 = vld [vmem:[%s5186_s25 + $0x4c] ss:$16 sps:$4 sm:$0xff]   ;;  %v4490_v18 = vld [vmem:[%s5186_s25 + $0x40] ss:$16 sps:$4 sm:$0xff]  }
 0x212   : > { %2220 = vmatprep.subr.bf16.mxu0 %v4402_v19  ;;  %2306 = vmatprep.subr.bf16.mxu1 %v4405_v3  ;;  %v4493_v19 = vld [vmem:[%s5186_s25 + $0x48] ss:$16 sps:$4 sm:$0xff]   ;;  %v4501_v3 = vld [vmem:[%s5186_s25 + $0x6c] ss:$16 sps:$4 sm:$0xff]  }
 0x215   : > { %2221 = vmatpush1.bf16.msra.mxu0 %v4400_v44  ;;  %2307 = vmatpush1.bf16.msra.mxu1 %v4403_v20  ;;  %v4496_v44 = vld [vmem:[%s5186_s25 + $0x60] ss:$16 sps:$4 sm:$0xff]   ;;  %v4499_v20 = vld [vmem:[%s5186_s25 + $0x68] ss:$16 sps:$4 sm:$0xff]  }
 0x216   : > { %2222 = vmatprep.subr.bf16.mxu0 %v4408_v21  ;;  %2308 = vmatprep.subr.bf16.mxu1 %v4411_v22  ;;  %v4504_v21 = vld [vmem:[%s5186_s25 + $0x84] ss:$16 sps:$4 sm:$0xff]   ;;  %v4507_v22 = vld [vmem:[%s5186_s25 + $0x8c] ss:$16 sps:$4 sm:$0xff]  }
 0x219   : > { %2223 = vmatpush1.bf16.msra.mxu0 %v4406_v26  ;;  %2309 = vmatpush1.bf16.msra.mxu1 %v4409_v23  ;;  %v4502_v26 = vld [vmem:[%s5186_s25 + $0x80] ss:$16 sps:$4 sm:$0xff]   ;;  %v4505_v23 = vld [vmem:[%s5186_s25 + $0x88] ss:$16 sps:$4 sm:$0xff]  }
 0x21a   : > { %2224 = vmatprep.subr.bf16.mxu0 %v4414_v24  ;;  %2310 = vmatprep.subr.bf16.mxu1 %v4417_v25  ;;  %v4510_v24 = vld [vmem:[%s5186_s25 + $0xa4] ss:$16 sps:$4 sm:$0xff]   ;;  %v4513_v25 = vld [vmem:[%s5186_s25 + $0xac] ss:$16 sps:$4 sm:$0xff]  }
 0x21d   : > { %2225 = vmatpush1.bf16.msra.mxu0 %v4412_v27  ;;  %2311 = vmatpush1.bf16.msra.mxu1 %v4415_v28  ;;  %v4508_v27 = vld [vmem:[%s5186_s25 + $0xa0] ss:$16 sps:$4 sm:$0xff]   ;;  %v4511_v28 = vld [vmem:[%s5186_s25 + $0xa8] ss:$16 sps:$4 sm:$0xff]  }
 0x21e   : > { %2226 = vmatprep.subr.bf16.mxu0 %v4420_v29  ;;  %2312 = vmatprep.subr.bf16.mxu1 %v4423_v30  ;;  %v4516_v29 = vld [vmem:[%s5186_s25 + $0xc4] ss:$16 sps:$4 sm:$0xff]   ;;  %v4519_v30 = vld [vmem:[%s5186_s25 + $0xcc] ss:$16 sps:$4 sm:$0xff]  }
 0x221   : > { %2227 = vmatpush1.bf16.msra.mxu0 %v4418_v31  ;;  %2313 = vmatpush1.bf16.msra.mxu1 %v4421_v32  ;;  %v4514_v31 = vld [vmem:[%s5186_s25 + $0xc0] ss:$16 sps:$4 sm:$0xff]   ;;  %v4517_v32 = vld [vmem:[%s5186_s25 + $0xc8] ss:$16 sps:$4 sm:$0xff]  }
 0x222   : > { %2228 = vmatprep.subr.bf16.mxu0 %v4426_v33  ;;  %2314 = vmatprep.subr.bf16.mxu1 %v4429_v34  ;;  %v4522_v33 = vld [vmem:[%s5186_s25 + $0xe4] ss:$16 sps:$4 sm:$0xff]   ;;  %v4525_v34 = vld [vmem:[%s5186_s25 + $0xec] ss:$16 sps:$4 sm:$0xff]  }
 0x225   : > { %2229 = vmatpush1.bf16.msra.mxu0 %v4424_v35  ;;  %2315 = vmatpush1.bf16.msra.mxu1 %v4427_v36  ;;  %v4520_v35 = vld [vmem:[%s5186_s25 + $0xe0] ss:$16 sps:$4 sm:$0xff]   ;;  %v4523_v36 = vld [vmem:[%s5186_s25 + $0xe8] ss:$16 sps:$4 sm:$0xff]  }
 0x226   : > { %2230 = vmatprep.subr.bf16.mxu0 %v4432_v37  ;;  %2316 = vmatprep.subr.bf16.mxu1 %v4435_v38  ;;  %v4528_v37 = vld [vmem:[%s5186_s25 + $0x104] ss:$16 sps:$4 sm:$0xff]   ;;  %v4531_v38 = vld [vmem:[%s5186_s25 + $0x10c] ss:$16 sps:$4 sm:$0xff]  }
 0x229   : > { %2231 = vmatpush1.bf16.msra.mxu0 %v4430_v39  ;;  %2317 = vmatpush1.bf16.msra.mxu1 %v4433_v40  ;;  %v4526_v39 = vld [vmem:[%s5186_s25 + $0x100] ss:$16 sps:$4 sm:$0xff]   ;;  %v4529_v40 = vld [vmem:[%s5186_s25 + $0x108] ss:$16 sps:$4 sm:$0xff]  }
 0x22a   : > { %2232 = vmatprep.subr.bf16.mxu0 %v4438_v41  ;;  %2318 = vmatprep.subr.bf16.mxu1 %v4441_v42  ;;  %v4534_v41 = vld [vmem:[%s5186_s25 + $0x124] ss:$16 sps:$4 sm:$0xff]   ;;  %v4537_v42 = vld [vmem:[%s5186_s25 + $0x12c] ss:$16 sps:$4 sm:$0xff]  }
 0x22d   : > { %2233 = vmatpush1.bf16.msra.mxu0 %v4436_v43  ;;  %2319 = vmatpush1.bf16.msra.mxu1 %v4439_v45  ;;  %v4532_v43 = vld [vmem:[%s5186_s25 + $0x120] ss:$16 sps:$4 sm:$0xff]   ;;  %v4535_v45 = vld [vmem:[%s5186_s25 + $0x128] ss:$16 sps:$4 sm:$0xff]  }
 0x22e   : > { %2234 = vmatprep.subr.bf16.mxu0 %v4444_v46  ;;  %2320 = vmatprep.subr.bf16.mxu1 %v4447_v47  ;;  %v4540_v46 = vld [vmem:[%s5186_s25 + $0x144] ss:$16 sps:$4 sm:$0xff]   ;;  %v4543_v47 = vld [vmem:[%s5186_s25 + $0x14c] ss:$16 sps:$4 sm:$0xff]  }
 0x231   : > { %2235 = vmatpush1.bf16.msra.mxu0 %v4442_v48  ;;  %2321 = vmatpush1.bf16.msra.mxu1 %v4445_v49  ;;  %v4538_v48 = vld [vmem:[%s5186_s25 + $0x140] ss:$16 sps:$4 sm:$0xff]   ;;  %v4541_v49 = vld [vmem:[%s5186_s25 + $0x148] ss:$16 sps:$4 sm:$0xff]  }
 0x232   : > { %2236 = vmatprep.subr.bf16.mxu0 %v4450_v50  ;;  %2322 = vmatprep.subr.bf16.mxu1 %v4453_v51  ;;  %v4546_v50 = vld [vmem:[%s5186_s25 + $0x164] ss:$16 sps:$4 sm:$0xff]   ;;  %v4549_v51 = vld [vmem:[%s5186_s25 + $0x16c] ss:$16 sps:$4 sm:$0xff]  }
 0x235   : > { %2237 = vmatpush1.bf16.msra.mxu0 %v4448_v52  ;;  %2323 = vmatpush1.bf16.msra.mxu1 %v4451_v53  ;;  %v4544_v52 = vld [vmem:[%s5186_s25 + $0x160] ss:$16 sps:$4 sm:$0xff]   ;;  %v4547_v53 = vld [vmem:[%s5186_s25 + $0x168] ss:$16 sps:$4 sm:$0xff]  }
 0x236   : > { %2238 = vmatprep.subr.bf16.mxu0 %v4456_v54  ;;  %2324 = vmatprep.subr.bf16.mxu1 %v4459_v55  ;;  %v4552_v54 = vld [vmem:[%s5186_s25 + $0x184] ss:$16 sps:$4 sm:$0xff]   ;;  %v4555_v55 = vld [vmem:[%s5186_s25 + $0x18c] ss:$16 sps:$4 sm:$0xff]  }
 0x239   : > { %2239 = vmatpush1.bf16.msra.mxu0 %v4454_v56  ;;  %2325 = vmatpush1.bf16.msra.mxu1 %v4457_v57  ;;  %v4550_v56 = vld [vmem:[%s5186_s25 + $0x180] ss:$16 sps:$4 sm:$0xff]   ;;  %v4553_v57 = vld [vmem:[%s5186_s25 + $0x188] ss:$16 sps:$4 sm:$0xff]  }
 0x23a   : > { %2240 = vmatprep.subr.bf16.mxu0 %v4462_v58  ;;  %2326 = vmatprep.subr.bf16.mxu1 %v4465_v59  ;;  %v4558_v58 = vld [vmem:[%s5186_s25 + $0x1a4] ss:$16 sps:$4 sm:$0xff]   ;;  %v4561_v59 = vld [vmem:[%s5186_s25 + $0x1ac] ss:$16 sps:$4 sm:$0xff]  }
 0x23d   : > { %2241 = vmatpush1.bf16.msra.mxu0 %v4460_v60  ;;  %2327 = vmatpush1.bf16.msra.mxu1 %v4463_v61  ;;  %v4556_v60 = vld [vmem:[%s5186_s25 + $0x1a0] ss:$16 sps:$4 sm:$0xff]   ;;  %v4559_v61 = vld [vmem:[%s5186_s25 + $0x1a8] ss:$16 sps:$4 sm:$0xff]  }
 0x23e   : > { %2242 = vmatprep.subr.bf16.mxu0 %v4468_v62  ;;  %2328 = vmatprep.subr.bf16.mxu1 %v4471_v63 }
 0x241   : > { %2243 = vmatpush1.bf16.msra.mxu0 %v4466_v0  ;;  %2329 = vmatpush1.bf16.msra.mxu1 %v4469_v1 }
 0x242   : > { %2244 = vmatprep.subr.bf16.mxu0 %v4474_v2  ;;  %2330 = vmatprep.subr.bf16.mxu1 %v4477_v4 }
 0x245   : > { %2245 = vmatpush1.bf16.msra.mxu0 %v4472_v6  ;;  %2331 = vmatpush1.bf16.msra.mxu1 %v4475_v7 }
 0x246   : > { %3187 = vmatprep.subr.bf16.mxu0 %v4480_v8  ;;  %3273 = vmatprep.subr.bf16.mxu1 %v4483_v9  ;;  %v4562_v8 = vld [vmem:[%s5186_s25 + $0x1c0] ss:$16 sps:$4 sm:$0xff]   ;;  %v4564_v9 = vld [vmem:[%s5186_s25 + $0x1c4] ss:$16 sps:$4 sm:$0xff]  }
 0x248   : > { %2247 = vmatmul.mubr.bf16.vlgmr.msra.gmra.mrb[4].mxu0 %v5359_v5  ;;  %2333 = vmatmul.mubr.bf16.vlgmr.msra.gmra.mrb[4].mxu1 %v5359_v5  ;;  %v4498_v5 = vld [vmem:[%s5186_s25 + $0x64] ss:$16 sps:$4 sm:$0xff]  }
 0x249   : > { %3188 = vmatpush1.bf16.msra.mxu0 %v4478_v10  ;;  %3274 = vmatpush1.bf16.msra.mxu1 %v4481_v11  ;;  %v4565_v10 = vld [vmem:[%s5186_s25 + $0x1c8] ss:$16 sps:$4 sm:$0xff]   ;;  %v4567_v11 = vld [vmem:[%s5186_s25 + $0x1cc] ss:$16 sps:$4 sm:$0xff]  }
 0x24a   : > { %3189 = vmatprep.subr.bf16.mxu0 %v4486_v12  ;;  %3275 = vmatprep.subr.bf16.mxu1 %v4489_v13  ;;  %v4570_v12 = vld [vmem:[%s5186_s25 + $0x1e4] ss:$16 sps:$4 sm:$0xff]   ;;  %v4573_v13 = vld [vmem:[%s5186_s25 + $0x1ec] ss:$16 sps:$4 sm:$0xff]  }
 0x24d   : > { %3190 = vmatpush1.bf16.msra.mxu0 %v4484_v14  ;;  %3276 = vmatpush1.bf16.msra.mxu1 %v4487_v15  ;;  %v4568_v14 = vld [vmem:[%s5186_s25 + $0x1e0] ss:$16 sps:$4 sm:$0xff]   ;;  %v4571_v15 = vld [vmem:[%s5186_s25 + $0x1e8] ss:$16 sps:$4 sm:$0xff]  }
 0x24e   : > { %3191 = vmatprep.subr.bf16.mxu0 %v4492_v16  ;;  %3277 = vmatprep.subr.bf16.mxu1 %v4495_v17  ;;  %v4576_v16 = vld [vmem:[%s5186_s25 + $0x204] ss:$16 sps:$4 sm:$0xff]   ;;  %v4579_v17 = vld [vmem:[%s5186_s25 + $0x20c] ss:$16 sps:$4 sm:$0xff]  }
 0x251   : > { %3192 = vmatpush1.bf16.msra.mxu0 %v4490_v18  ;;  %3278 = vmatpush1.bf16.msra.mxu1 %v4493_v19 }
 0x252   : > { %3193 = vmatprep.subr.bf16.mxu0 %v4498_v5  ;;  %3279 = vmatprep.subr.bf16.mxu1 %v4501_v3 }
 0x255   : > { %3194 = vmatpush1.bf16.msra.mxu0 %v4496_v44  ;;  %3280 = vmatpush1.bf16.msra.mxu1 %v4499_v20 }
 0x256   : > { %3195 = vmatprep.subr.bf16.mxu0 %v4504_v21  ;;  %3281 = vmatprep.subr.bf16.mxu1 %v4507_v22 }
 0x259   : > { %3196 = vmatpush1.bf16.msra.mxu0 %v4502_v26  ;;  %3282 = vmatpush1.bf16.msra.mxu1 %v4505_v23 }
 0x25a   : > { %3197 = vmatprep.subr.bf16.mxu0 %v4510_v24  ;;  %3283 = vmatprep.subr.bf16.mxu1 %v4513_v25 }
 0x25d   : > { %3198 = vmatpush1.bf16.msra.mxu0 %v4508_v27  ;;  %3284 = vmatpush1.bf16.msra.mxu1 %v4511_v28 }
 0x25e   : > { %3199 = vmatprep.subr.bf16.mxu0 %v4516_v29  ;;  %3285 = vmatprep.subr.bf16.mxu1 %v4519_v30 }
 0x261   : > { %3200 = vmatpush1.bf16.msra.mxu0 %v4514_v31  ;;  %3286 = vmatpush1.bf16.msra.mxu1 %v4517_v32 }
 0x262   : > { %3201 = vmatprep.subr.bf16.mxu0 %v4522_v33  ;;  %3287 = vmatprep.subr.bf16.mxu1 %v4525_v34 }
 0x265   : > { %3202 = vmatpush1.bf16.msra.mxu0 %v4520_v35  ;;  %3288 = vmatpush1.bf16.msra.mxu1 %v4523_v36 }
 0x266   : > { %3203 = vmatprep.subr.bf16.mxu0 %v4528_v37  ;;  %3289 = vmatprep.subr.bf16.mxu1 %v4531_v38 }
 0x269   : > { %3204 = vmatpush1.bf16.msra.mxu0 %v4526_v39  ;;  %3290 = vmatpush1.bf16.msra.mxu1 %v4529_v40 }
 0x26a   : > { %3205 = vmatprep.subr.bf16.mxu0 %v4534_v41  ;;  %3291 = vmatprep.subr.bf16.mxu1 %v4537_v42 }
 0x26d   : > { %3206 = vmatpush1.bf16.msra.mxu0 %v4532_v43  ;;  %3292 = vmatpush1.bf16.msra.mxu1 %v4535_v45 }
 0x26e   : > { %3207 = vmatprep.subr.bf16.mxu0 %v4540_v46  ;;  %3293 = vmatprep.subr.bf16.mxu1 %v4543_v47 }
 0x271   : > { %3208 = vmatpush1.bf16.msra.mxu0 %v4538_v48  ;;  %3294 = vmatpush1.bf16.msra.mxu1 %v4541_v49 }
 0x272   : > { %3209 = vmatprep.subr.bf16.mxu0 %v4546_v50  ;;  %3295 = vmatprep.subr.bf16.mxu1 %v4549_v51 }
 0x275   : > { %3210 = vmatpush1.bf16.msra.mxu0 %v4544_v52  ;;  %3296 = vmatpush1.bf16.msra.mxu1 %v4547_v53 }
 0x276   : > { %3211 = vmatprep.subr.bf16.mxu0 %v4552_v54  ;;  %3297 = vmatprep.subr.bf16.mxu1 %v4555_v55 }
 0x279   : > { %3212 = vmatpush1.bf16.msra.mxu0 %v4550_v56  ;;  %3298 = vmatpush1.bf16.msra.mxu1 %v4553_v57 }
 0x27a   : > { %3213 = vmatprep.subr.bf16.mxu0 %v4558_v58  ;;  %3299 = vmatprep.subr.bf16.mxu1 %v4561_v59 }
 0x27d   : > { %3214 = vmatpush1.bf16.msra.mxu0 %v4556_v60  ;;  %3300 = vmatpush1.bf16.msra.mxu1 %v4559_v61 }
 0x27e   : > { %3215 = vmatprep.subr.bf16.mxu0 %v4564_v9  ;;  %3301 = vmatprep.subr.bf16.mxu1 %v4567_v11 }
 0x281   : > { %3216 = vmatpush1.bf16.msra.mxu0 %v4562_v8  ;;  %3302 = vmatpush1.bf16.msra.mxu1 %v4565_v10 }
 0x282   : > { %3217 = vmatprep.subr.bf16.mxu0 %v4570_v12  ;;  %3303 = vmatprep.subr.bf16.mxu1 %v4573_v13 }
 0x285   : > { %3218 = vmatpush1.bf16.msra.mxu0 %v4568_v14  ;;  %3304 = vmatpush1.bf16.msra.mxu1 %v4571_v15  ;;  %v4574_v14 = vld [vmem:[%s5186_s25 + $0x200] ss:$16 sps:$4 sm:$0xff]   ;;  %v4577_v15 = vld [vmem:[%s5186_s25 + $0x208] ss:$16 sps:$4 sm:$0xff]  }
 0x286   : > { %3230 = vmatprep.subr.bf16.mxu0 %v4576_v16  ;;  %3316 = vmatprep.subr.bf16.mxu1 %v4579_v17  ;;  %v4582_v16 = vld [vmem:[%s5186_s25 + $0x224] ss:$16 sps:$4 sm:$0xff]   ;;  %v4585_v17 = vld [vmem:[%s5186_s25 + $0x22c] ss:$16 sps:$4 sm:$0xff]  }
 0x29b   : > { %v5553_v62 = vpop.f32.mrb[0].mxu0  ;;  %v5555_v63 = vpop.f32.mrb[0].mxu1 }
 0x29c   : > { %v5557_v0 = vpop.f32.mrb[1].mxu0  ;;  %v5559_v1 = vpop.f32.mrb[1].mxu1  ;;  %v3832_v18 = vmul.f32 -1.442695, %v5553_v62  ;;  %v3834_v19 = vmul.f32 -1.442695, %v5555_v63 }
 0x29d   : > { %v5561_v2 = vpop.f32.mrb[2].mxu0  ;;  %v5563_v4 = vpop.f32.mrb[2].mxu1  ;;  %v3833_v5 = vmul.f32 -1.442695, %v5557_v0  ;;  %v3835_v3 = vmul.f32 -1.442695, %v5559_v1 }
 0x29e   : > { %v5565_v6 = vpop.f32.mrb[3].mxu0  ;;  %v5567_v7 = vpop.f32.mrb[3].mxu1  ;;  %4670 = vpow2.f32 %v3832_v18  ;;  %v3836_v44 = vmul.f32 -1.442695, %v5561_v2  ;;  %v3838_v20 = vmul.f32 -1.442695, %v5563_v4 }
 0x29f   : > { %4672 = vpow2.f32 %v3834_v19  ;;  %v3837_v21 = vmul.f32 -1.442695, %v5565_v6  ;;  %v3839_v22 = vmul.f32 -1.442695, %v5567_v7  ;;  %v4580_v18 = vld [vmem:[%s5186_s25 + $0x220] ss:$16 sps:$4 sm:$0xff]  }
 0x2a0   : > { %4674 = vpow2.f32 %v3833_v5  ;;  %v4583_v19 = vld [vmem:[%s5186_s25 + $0x228] ss:$16 sps:$4 sm:$0xff]   ;;  %v4588_v5 = vld [vmem:[%s5186_s25 + $0x244] ss:$16 sps:$4 sm:$0xff]  }
 0x2a1   : > { %4676 = vpow2.f32 %v3835_v3  ;;  %v4591_v3 = vld [vmem:[%s5186_s25 + $0x24c] ss:$16 sps:$4 sm:$0xff]  }
 0x2a2   : > { %4678 = vpow2.f32 %v3836_v44  ;;  %v4586_v44 = vld [vmem:[%s5186_s25 + $0x240] ss:$16 sps:$4 sm:$0xff]  }
 0x2a3   : > { %4680 = vpow2.f32 %v3838_v20  ;;  %v4589_v20 = vld [vmem:[%s5186_s25 + $0x248] ss:$16 sps:$4 sm:$0xff]  }
 0x2a4   : > { %4682 = vpow2.f32 %v3837_v21  ;;  %v4594_v21 = vld [vmem:[%s5186_s25 + $0x264] ss:$16 sps:$4 sm:$0xff]  }
 0x2a5   : > { %4684 = vpow2.f32 %v3839_v22  ;;  %v4597_v22 = vld [vmem:[%s5186_s25 + $0x26c] ss:$16 sps:$4 sm:$0xff]  }
 0x2a8   : > { %v4671_v26 = vpop.eup %4670 }
 0x2a9   : > { %v4673_v23 = vpop.eup %4672  ;;  %v2367_v27 = vadd.f32 1.0, %v4671_v26  ;;  %v4592_v26 = vld [vmem:[%s5186_s25 + $0x260] ss:$16 sps:$4 sm:$0xff]  }
 0x2aa   : > { %v4675_v24 = vpop.eup %4674  ;;  %v2369_v29 = vadd.f32 1.0, %v4673_v23  ;;  %v4595_v23 = vld [vmem:[%s5186_s25 + $0x268] ss:$16 sps:$4 sm:$0xff]  }
 0x2ab   : > { %v4677_v25 = vpop.eup %4676  ;;  %v2368_v31 = vadd.f32 1.0, %v4675_v24  ;;  %4686 = vrcp.f32 %v2367_v27  ;;  %v4600_v24 = vld [vmem:[%s5186_s25 + $0x284] ss:$16 sps:$4 sm:$0xff]   ;;  %v4598_v27 = vld [vmem:[%s5186_s25 + $0x280] ss:$16 sps:$4 sm:$0xff]  }
 0x2ac   : > { %v4679_v28 = vpop.eup %4678  ;;  %v2370_v33 = vadd.f32 1.0, %v4677_v25  ;;  %4688 = vrcp.f32 %v2369_v29  ;;  %v4603_v25 = vld [vmem:[%s5186_s25 + $0x28c] ss:$16 sps:$4 sm:$0xff]   ;;  %v4606_v29 = vld [vmem:[%s5186_s25 + $0x2a4] ss:$16 sps:$4 sm:$0xff]  }
 0x2ad   : > { %v4681_v30 = vpop.eup %4680  ;;  %v2371_v35 = vadd.f32 1.0, %v4679_v28  ;;  %4690 = vrcp.f32 %v2368_v31  ;;  %v4601_v28 = vld [vmem:[%s5186_s25 + $0x288] ss:$16 sps:$4 sm:$0xff]   ;;  %v4604_v31 = vld [vmem:[%s5186_s25 + $0x2a0] ss:$16 sps:$4 sm:$0xff]  }
 0x2ae   : > { %v4683_v32 = vpop.eup %4682  ;;  %v2373_v36 = vadd.f32 1.0, %v4681_v30  ;;  %4692 = vrcp.f32 %v2370_v33  ;;  %v4609_v30 = vld [vmem:[%s5186_s25 + $0x2ac] ss:$16 sps:$4 sm:$0xff]   ;;  %v4612_v33 = vld [vmem:[%s5186_s25 + $0x2c4] ss:$16 sps:$4 sm:$0xff]  }
 0x2af   : > { %v4685_v34 = vpop.eup %4684  ;;  %v2372_v37 = vadd.f32 1.0, %v4683_v32  ;;  %4694 = vrcp.f32 %v2371_v35  ;;  %v4607_v32 = vld [vmem:[%s5186_s25 + $0x2a8] ss:$16 sps:$4 sm:$0xff]   ;;  %v4610_v35 = vld [vmem:[%s5186_s25 + $0x2c0] ss:$16 sps:$4 sm:$0xff]  }
 0x2b0   : > { %v2374_v38 = vadd.f32 1.0, %v4685_v34  ;;  %4696 = vrcp.f32 %v2373_v36  ;;  %v4615_v34 = vld [vmem:[%s5186_s25 + $0x2cc] ss:$16 sps:$4 sm:$0xff]   ;;  %v4613_v36 = vld [vmem:[%s5186_s25 + $0x2c8] ss:$16 sps:$4 sm:$0xff]  }
 0x2b1   : > { %4698 = vrcp.f32 %v2372_v37  ;;  %v4618_v37 = vld [vmem:[%s5186_s25 + $0x2e4] ss:$16 sps:$4 sm:$0xff]  }
 0x2b2   : > { %4700 = vrcp.f32 %v2374_v38  ;;  %v4621_v38 = vld [vmem:[%s5186_s25 + $0x2ec] ss:$16 sps:$4 sm:$0xff]  }
 0x2b5   : > { %v4687_v39 = vpop.eup %4686 }
 0x2b6   : > { %v4689_v40 = vpop.eup %4688  ;;  %v2391_v48 = vmul.f32 %v4687_v39, %v5553_v62  ;;  %v4616_v39 = vld [vmem:[%s5186_s25 + $0x2e0] ss:$16 sps:$4 sm:$0xff]  }
 0x2b7   : > { %v4691_v41 = vpop.eup %4690  ;;  %v2393_v49 = vmul.f32 %v4689_v40, %v5555_v63  ;;  %v4619_v40 = vld [vmem:[%s5186_s25 + $0x2e8] ss:$16 sps:$4 sm:$0xff]  }
 0x2b8   : > { %v4693_v42 = vpop.eup %4692  ;;  %v2392_v50 = vmul.f32 %v4691_v41, %v5557_v0  ;;  %v4624_v41 = vld [vmem:[%s5186_s25 + $0x304] ss:$16 sps:$4 sm:$0xff]  }
 0x2b9   : > { %v4695_v43 = vpop.eup %4694  ;;  %v2394_v51 = vmul.f32 %v4693_v42, %v5559_v1  ;;  %v4627_v42 = vld [vmem:[%s5186_s25 + $0x30c] ss:$16 sps:$4 sm:$0xff]  }
 0x2ba   : > { %v4697_v45 = vpop.eup %4696  ;;  %v2395_v54 = vmul.f32 %v4695_v43, %v5561_v2  ;;  %v4622_v43 = vld [vmem:[%s5186_s25 + $0x300] ss:$16 sps:$4 sm:$0xff]  }
 0x2bb   : > { %v4699_v46 = vpop.eup %4698  ;;  %v2397_v55 = vmul.f32 %v4697_v45, %v5563_v4  ;;  %v4625_v45 = vld [vmem:[%s5186_s25 + $0x308] ss:$16 sps:$4 sm:$0xff]  }
 0x2bc   : > { %v4701_v47 = vpop.eup %4700  ;;  %v2396_v60 = vmul.f32 %v4699_v46, %v5565_v6  ;;  %v4630_v46 = vld [vmem:[%s5186_s25 + $0x324] ss:$16 sps:$4 sm:$0xff]  }
 0x2bd   : > { %v2398_v61 = vmul.f32 %v4701_v47, %v5567_v7  ;;  %v4633_v47 = vld [vmem:[%s5186_s25 + $0x32c] ss:$16 sps:$4 sm:$0xff]  }
 0x31b   : > { %v2248_v52 = vpop.f32.mrb[4].mxu0  ;;  %v2334_v53 = vpop.f32.mrb[4].mxu1 }
 0x31c   : > { %v2399_v56 = vmul.f32 %v2391_v48, %v2248_v52  ;;  %v2401_v57 = vmul.f32 %v2393_v49, %v2334_v53  ;;  %v2250_v58 = vpop.f32.mrb[5].mxu0  ;;  %v2336_v59 = vpop.f32.mrb[5].mxu1  ;;  %v4628_v48 = vld [vmem:[%s5186_s25 + $0x320] ss:$16 sps:$4 sm:$0xff]   ;;  %v4631_v49 = vld [vmem:[%s5186_s25 + $0x328] ss:$16 sps:$4 sm:$0xff]  }
 0x31d   : > { %v2400_v62 = vmul.f32 %v2392_v50, %v2250_v58  ;;  %v2402_v63 = vmul.f32 %v2394_v51, %v2336_v59  ;;  %v2252_v0 = vpop.f32.mrb[6].mxu0  ;;  %v2338_v1 = vpop.f32.mrb[6].mxu1  ;;  %v4636_v50 = vld [vmem:[%s5186_s25 + $0x344] ss:$16 sps:$4 sm:$0xff]   ;;  %v4639_v51 = vld [vmem:[%s5186_s25 + $0x34c] ss:$16 sps:$4 sm:$0xff]  }
 0x31e   : > { %v2403_v8 = vmul.f32 %v2395_v54, %v2252_v0  ;;  %v2405_v2 = vmul.f32 %v2397_v55, %v2338_v1  ;;  %v2254_v9 = vpop.f32.mrb[7].mxu0  ;;  %v2340_v4 = vpop.f32.mrb[7].mxu1  ;;  %v4634_v52 = vld [vmem:[%s5186_s25 + $0x340] ss:$16 sps:$4 sm:$0xff]   ;;  %v4637_v53 = vld [vmem:[%s5186_s25 + $0x348] ss:$16 sps:$4 sm:$0xff]  }
 0x31f   : > { %v2404_v10 = vmul.f32 %v2396_v60, %v2254_v9  ;;  %v2406_v11 = vmul.f32 %v2398_v61, %v2340_v4  ;;  %v4642_v54 = vld [vmem:[%s5186_s25 + $0x364] ss:$16 sps:$4 sm:$0xff]   ;;  %v4645_v55 = vld [vmem:[%s5186_s25 + $0x36c] ss:$16 sps:$4 sm:$0xff]   ;;  %v4646_v60 = vld [vmem:[%s5186_s25 + $0x380] ss:$16 sps:$4 sm:$0xff]  }
 0x320   : > { %v2415_v12 = vpack.c.bf16 %v2403_v8, %v2399_v56  ;;  %v5595_v6 = vpack.c.bf16 %v2405_v2, %v2401_v57  ;;  %v4640_v56 = vld [vmem:[%s5186_s25 + $0x360] ss:$16 sps:$4 sm:$0xff]   ;;  %v4643_v57 = vld [vmem:[%s5186_s25 + $0x368] ss:$16 sps:$4 sm:$0xff]   ;;  %v4648_v58 = vld [vmem:[%s5186_s25 + $0x384] ss:$16 sps:$4 sm:$0xff]  }
 0x321   : > { %v2416_v13 = vpack.c.bf16 %v2404_v10, %v2400_v62  ;;  %v2418_v7 = vpack.c.bf16 %v2406_v11, %v2402_v63  ;;  %v4651_v59 = vld [vmem:[%s5186_s25 + $0x38c] ss:$16 sps:$4 sm:$0xff]   ;;  %v4649_v61 = vld [vmem:[%s5186_s25 + $0x388] ss:$16 sps:$4 sm:$0xff]   ;;  %v4654_v62 = vld [vmem:[%s5186_s25 + $0x3a4] ss:$16 sps:$4 sm:$0xff]  }
 0x322   : > { %v4657_v63 = vld [vmem:[%s5186_s25 + $0x3ac] ss:$16 sps:$4 sm:$0xff]   ;;  %v4652_v0 = vld [vmem:[%s5186_s25 + $0x3a0] ss:$16 sps:$4 sm:$0xff]   ;;  %v4655_v1 = vld [vmem:[%s5186_s25 + $0x3a8] ss:$16 sps:$4 sm:$0xff]  }
 0x323   : > { %3219 = vmatprep.mubr.bf16.mxu0 %v2416_v13  ;;  %3305 = vmatprep.mubr.bf16.mxu1 %v2416_v13  ;;  %v4660_v8 = vld [vmem:[%s5186_s25 + $0x3c4] ss:$16 sps:$4 sm:$0xff]   ;;  %v4663_v2 = vld [vmem:[%s5186_s25 + $0x3cc] ss:$16 sps:$4 sm:$0xff]   ;;  %v4658_v9 = vld [vmem:[%s5186_s25 + $0x3c0] ss:$16 sps:$4 sm:$0xff]  }
 0x324   : > { %3220 = vmatmul.mubr.bf16.vlgmr.msra.gmra.mrb[8].mxu0 %v2415_v12  ;;  %3306 = vmatmul.mubr.bf16.vlgmr.msra.gmra.mrb[8].mxu1 %v2415_v12  ;;  %v4661_v4 = vld [vmem:[%s5186_s25 + $0x3c8] ss:$16 sps:$4 sm:$0xff]   ;;  %v4666_v10 = vld [vmem:[%s5186_s25 + $0x3e4] ss:$16 sps:$4 sm:$0xff]   ;;  %v4669_v11 = vld [vmem:[%s5186_s25 + $0x3ec] ss:$16 sps:$4 sm:$0xff]  }
 0x325   : > { %3231 = vmatpush1.bf16.msra.mxu0 %v4574_v14  ;;  %3317 = vmatpush1.bf16.msra.mxu1 %v4577_v15  ;;  %v4664_v12 = vld [vmem:[%s5186_s25 + $0x3e0] ss:$16 sps:$4 sm:$0xff]   ;;  %v4667_v13 = vld [vmem:[%s5186_s25 + $0x3e8] ss:$16 sps:$4 sm:$0xff]  }
 0x326   : > { %3262 = vmatprep.mubr.bf16.mxu0 %v2418_v7  ;;  %3348 = vmatprep.mubr.bf16.mxu1 %v2418_v7  ;;  %v2407_v7 = vld [vmem:[#allocation3] sm:$0xff]  ;;  %v2409_v14 = vld [vmem:[#allocation3 + $0x10] sm:$0xff]  ;;  %v2408_v15 = vld [vmem:[#allocation3 + $0x8] sm:$0xff] }
 0x327   : > { %3232 = vmatprep.subr.bf16.mxu0 %v4582_v16  ;;  %3318 = vmatprep.subr.bf16.mxu1 %v4585_v17  ;;  %v2410_v16 = vld [vmem:[#allocation3 + $0x18] sm:$0xff] }
 0x329   : > { %3233 = vmatpush1.bf16.msra.mxu0 %v4580_v18  ;;  %3319 = vmatpush1.bf16.msra.mxu1 %v4583_v19  ;;  %v2411_v19 = vld [vmem:[#allocation3 + $0x20] sm:$0xff] }
 0x32a   : > { %3234 = vmatprep.subr.bf16.mxu0 %v4588_v5  ;;  %3320 = vmatprep.subr.bf16.mxu1 %v4591_v3  ;;  %v2413_v5 = vld [vmem:[#allocation3 + $0x30] sm:$0xff] }
 0x32d   : > { %3235 = vmatpush1.bf16.msra.mxu0 %v4586_v44  ;;  %3321 = vmatpush1.bf16.msra.mxu1 %v4589_v20 }
 0x32e   : > { %3236 = vmatprep.subr.bf16.mxu0 %v4594_v21  ;;  %3322 = vmatprep.subr.bf16.mxu1 %v4597_v22  ;;  %v2412_v22 = vld [vmem:[#allocation3 + $0x28] sm:$0xff] }
 0x331   : > { %3237 = vmatpush1.bf16.msra.mxu0 %v4592_v26  ;;  %3323 = vmatpush1.bf16.msra.mxu1 %v4595_v23  ;;  %v2414_v26 = vld [vmem:[#allocation3 + $0x38] sm:$0xff] }
 0x332   : > { %3238 = vmatprep.subr.bf16.mxu0 %v4600_v24  ;;  %3324 = vmatprep.subr.bf16.mxu1 %v4603_v25 }
 0x335   : > { %3239 = vmatpush1.bf16.msra.mxu0 %v4598_v27  ;;  %3325 = vmatpush1.bf16.msra.mxu1 %v4601_v28 }
 0x336   : > { %3240 = vmatprep.subr.bf16.mxu0 %v4606_v29  ;;  %3326 = vmatprep.subr.bf16.mxu1 %v4609_v30 }
 0x339   : > { %3241 = vmatpush1.bf16.msra.mxu0 %v4604_v31  ;;  %3327 = vmatpush1.bf16.msra.mxu1 %v4607_v32 }
 0x33a   : > { %3242 = vmatprep.subr.bf16.mxu0 %v4612_v33  ;;  %3328 = vmatprep.subr.bf16.mxu1 %v4615_v34  ;;  %v3379_v33 = vld [vmem:[%s5727_s0] sm:$0xff] (!%p3968_p4) }
 0x33d   : > { %3243 = vmatpush1.bf16.msra.mxu0 %v4610_v35  ;;  %3329 = vmatpush1.bf16.msra.mxu1 %v4613_v36  ;;  %v3380_v35 = vld [vmem:[%s5727_s0 + $0x8] sm:$0xff] (!%p3968_p4) }
 0x33e   : > { %3244 = vmatprep.subr.bf16.mxu0 %v4618_v37  ;;  %3330 = vmatprep.subr.bf16.mxu1 %v4621_v38  ;;  %v3381_v38 = vld [vmem:[%s5727_s0 + $0x10] sm:$0xff] (!%p3968_p4) }
 0x341   : > { %3245 = vmatpush1.bf16.msra.mxu0 %v4616_v39  ;;  %3331 = vmatpush1.bf16.msra.mxu1 %v4619_v40 }
 0x342   : > { %3246 = vmatprep.subr.bf16.mxu0 %v4624_v41  ;;  %3332 = vmatprep.subr.bf16.mxu1 %v4627_v42  ;;  %v3382_v42 = vld [vmem:[%s5727_s0 + $0x18] sm:$0xff] (!%p3968_p4) }
 0x345   : > { %3247 = vmatpush1.bf16.msra.mxu0 %v4622_v43  ;;  %3333 = vmatpush1.bf16.msra.mxu1 %v4625_v45  ;;  %v3383_v45 = vld [vmem:[%s5727_s0 + $0x20] sm:$0xff] (!%p3968_p4) }
 0x346   : > { %3248 = vmatprep.subr.bf16.mxu0 %v4630_v46  ;;  %3334 = vmatprep.subr.bf16.mxu1 %v4633_v47 }
 0x349   : > { %3249 = vmatpush1.bf16.msra.mxu0 %v4628_v48  ;;  %3335 = vmatpush1.bf16.msra.mxu1 %v4631_v49  ;;  %v3384_v48 = vld [vmem:[%s5727_s0 + $0x28] sm:$0xff] (!%p3968_p4) }
 0x34a   : > { %3250 = vmatprep.subr.bf16.mxu0 %v4636_v50  ;;  %3336 = vmatprep.subr.bf16.mxu1 %v4639_v51 }
 0x34d   : > { %3251 = vmatpush1.bf16.msra.mxu0 %v4634_v52  ;;  %3337 = vmatpush1.bf16.msra.mxu1 %v4637_v53  ;;  %v3385_v52 = vld [vmem:[%s5727_s0 + $0x30] sm:$0xff] (!%p3968_p4) }
 0x34e   : > { %3252 = vmatprep.subr.bf16.mxu0 %v4642_v54  ;;  %3338 = vmatprep.subr.bf16.mxu1 %v4645_v55  ;;  %v3386_v54 = vld [vmem:[%s5727_s0 + $0x38] sm:$0xff] (!%p3968_p4) }
 0x351   : > { %3253 = vmatpush1.bf16.msra.mxu0 %v4640_v56  ;;  %3339 = vmatpush1.bf16.msra.mxu1 %v4643_v57 }
 0x352   : > { %3254 = vmatprep.subr.bf16.mxu0 %v4648_v58  ;;  %3340 = vmatprep.subr.bf16.mxu1 %v4651_v59 }
 0x355   : > { %3255 = vmatpush1.bf16.msra.mxu0 %v4646_v60  ;;  %3341 = vmatpush1.bf16.msra.mxu1 %v4649_v61 }
 0x356   : > { %3256 = vmatprep.subr.bf16.mxu0 %v4654_v62  ;;  %3342 = vmatprep.subr.bf16.mxu1 %v4657_v63 }
 0x359   : > { %3257 = vmatpush1.bf16.msra.mxu0 %v4652_v0  ;;  %3343 = vmatpush1.bf16.msra.mxu1 %v4655_v1 }
 0x35a   : > { %3258 = vmatprep.subr.bf16.mxu0 %v4660_v8  ;;  %3344 = vmatprep.subr.bf16.mxu1 %v4663_v2 }
 0x35d   : > { %3259 = vmatpush1.bf16.msra.mxu0 %v4658_v9  ;;  %3345 = vmatpush1.bf16.msra.mxu1 %v4661_v4 }
 0x35e   : > { %3260 = vmatprep.subr.bf16.mxu0 %v4666_v10  ;;  %3346 = vmatprep.subr.bf16.mxu1 %v4669_v11 }
 0x361   : > { %3261 = vmatpush1.bf16.msra.mxu0 %v4664_v12  ;;  %3347 = vmatpush1.bf16.msra.mxu1 %v4667_v13 }
 0x364   : > { %3263 = vmatmul.mubr.bf16.vlgmr.msra.gmra.mrb[8].mxu0 %v5595_v6  ;;  %3349 = vmatmul.mubr.bf16.vlgmr.msra.gmra.mrb[8].mxu1 %v5595_v6 }
 0x437   : > { %v3264_v17 = vpop.f32.mrb[8].mxu0  ;;  %v3350_v18 = vpop.f32.mrb[8].mxu1  ;;  %3378 = sbr.rel (%p3968_p4) target bundleno = 1096 (0x448), region = 64 }
 0x438   : > { %v3359_v3 = vadd.f32 %v3264_v17, %v2407_v7  ;;  %v3361_v44 = vadd.f32 %v3350_v18, %v2409_v14  ;;  %v3266_v20 = vpop.f32.mrb[9].mxu0  ;;  %v3352_v21 = vpop.f32.mrb[9].mxu1 }
 0x439   : > { %v3360_v23 = vadd.f32 %v3266_v20, %v2408_v15  ;;  %v3362_v24 = vadd.f32 %v3352_v21, %v2410_v16  ;;  %v3268_v25 = vpop.f32.mrb[10].mxu0  ;;  %v3354_v27 = vpop.f32.mrb[10].mxu1 }
 0x43a   : > { %3367 = vst [vmem:[#allocation3] sm:$0xff] %v3359_v3  ;;  %3369 = vst [vmem:[#allocation3 + $0x10] sm:$0xff] %v3361_v44  ;;  %v3363_v6 = vadd.f32 %v3268_v25, %v2411_v19  ;;  %v3365_v28 = vadd.f32 %v3354_v27, %v2413_v5  ;;  %v3270_v29 = vpop.f32.mrb[11].mxu0  ;;  %v3356_v30 = vpop.f32.mrb[11].mxu1 }
 0x43b   : > { %3368 = vst [vmem:[#allocation3 + $0x8] sm:$0xff] %v3360_v23  ;;  %3370 = vst [vmem:[#allocation3 + $0x18] sm:$0xff] %v3362_v24  ;;  %v3364_v31 = vadd.f32 %v3270_v29, %v2412_v22  ;;  %v3366_v32 = vadd.f32 %v3356_v30, %v2414_v26 }
 0x43c   : > { %3371 = vst [vmem:[#allocation3 + $0x20] sm:$0xff] %v3363_v6  ;;  %3373 = vst [vmem:[#allocation3 + $0x30] sm:$0xff] %v3365_v28 }
 0x43d   : > { %3372 = vst [vmem:[#allocation3 + $0x28] sm:$0xff] %v3364_v31  ;;  %3374 = vst [vmem:[#allocation3 + $0x38] sm:$0xff] %v3366_v32 }
 0x441   : > { %v3387_v34 = vld [vmem:[#allocation3] sm:$0xff]  ;;  %v3389_v39 = vld [vmem:[#allocation3 + $0x10] sm:$0xff] }
 0x442   : > { %v3395_v36 = vadd.f32 %v3387_v34, %v3379_v33  ;;  %v3388_v37 = vld [vmem:[#allocation3 + $0x8] sm:$0xff]  ;;  %v3397_v41 = vadd.f32 %v3389_v39, %v3381_v38  ;;  %v3390_v43 = vld [vmem:[#allocation3 + $0x18] sm:$0xff] }
 0x443   : > { %v3396_v40 = vadd.f32 %v3388_v37, %v3380_v35  ;;  %v3398_v46 = vadd.f32 %v3390_v43, %v3382_v42  ;;  %v3391_v47 = vld [vmem:[#allocation3 + $0x20] sm:$0xff]  ;;  %v3393_v53 = vld [vmem:[#allocation3 + $0x30] sm:$0xff] }
 0x444   : > { %3403 = vst [vmem:[#allocation12] sm:$0xff] %v3395_v36  ;;  %v3392_v49 = vld [vmem:[#allocation3 + $0x28] sm:$0xff]  ;;  %3405 = vst [vmem:[#allocation12 + $0x10] sm:$0xff] %v3397_v41  ;;  %v3399_v50 = vadd.f32 %v3391_v47, %v3383_v45  ;;  %v3401_v55 = vadd.f32 %v3393_v53, %v3385_v52  ;;  %v3394_v56 = vld [vmem:[#allocation3 + $0x38] sm:$0xff] }
 0x445   : > { %3404 = vst [vmem:[#allocation12 + $0x8] sm:$0xff] %v3396_v40  ;;  %v3400_v51 = vadd.f32 %v3392_v49, %v3384_v48  ;;  %3406 = vst [vmem:[#allocation12 + $0x18] sm:$0xff] %v3398_v46  ;;  %v3402_v57 = vadd.f32 %v3394_v56, %v3386_v54 }
 0x446   : > { %3407 = vst [vmem:[#allocation12 + $0x20] sm:$0xff] %v3399_v50  ;;  %3409 = vst [vmem:[#allocation12 + $0x30] sm:$0xff] %v3401_v55 }
 0x447   : > { %3408 = vst [vmem:[#allocation12 + $0x28] sm:$0xff] %v3400_v51  ;;  %3410 = vst [vmem:[#allocation12 + $0x38] sm:$0xff] %v3402_v57 }
 0x448 PF: > { %p4032_p7 = scmp.eq.s32.totalorder %s5056_s8, 3  ;;  %s4918_s28 = smov [#allocation12]  }
 0x449   : > { %s3421_s10 = sshll.u32 %s4918_s28, 4  ;;  %s3422_s10 = int_to_ptr.vmem [resolvable:$true] %s3421_s10 }
 0x44a   : > { %s4820_s15 = scalar_lea.vmem %s3422_s10, 1024  ;;  %p4827_p6 = scmp.lt.s32.totalorder %s3422_s10, %s3422_s10 }
 0x44b   : > { %p4821_p9 = scmp.ne.s32.totalorder %s3422_s10, %s4820_s15  ;;  %p4828_p13 = scmp.lt.s32.totalorder %s4820_s15, %s4820_s15 }
 0x44d   : > { %p4822_p12 = pnand %p4821_p9, %p4032_p7  ;;  %p4829_p3 = por %p4828_p13, %p4827_p6 }
 0x44f   : > { %p4823_p10 = pneg %p4822_p12 }
 0x451   : > { %p4830_p2 = pnand %p4829_p3, %p4823_p10 }
 0x453   : > { %4833 = shalt.err (!%p4830_p2)
}
 0x454   : > { %s4834_s6 = scalar_lea.hbm %s5732_s5, 1024 }
 0x455   : > { %p4835_p8 = scmp.ne.s32.totalorder %s5732_s5, %s4834_s6  ;;  %p4840_p0 = scmp.lt.u32.totalorder %s4834_s6, %s5732_s5 }
 0x457   : > { %p4836_p5 = pnand %p4835_p8, %p4032_p7 }
 0x459   : > { %p4837_p11 = pneg %p4836_p5 }
 0x45b   : > { %p4842_p1 = pnand %p4840_p0, %p4837_p11 }
 0x45d   : > { %4845 = shalt.err (!%p4842_p1)
}
 0x45e   : > { %s4919_s12 = smov 512   ;;  %s4920_s21 = smov 32  }
 0x45f   : > { %4012 = dma.vmem_to_hbm [thread:$0]  (%p4032_p7), %s3422_s10, 1024, %s5732_s5, [#allocation6], %s4919_s12, %s4919_s12, %s4920_s21  }
 0x460   : > { %4883 = dma.done.wait (%p4032_p7), [#allocation6], 1024  }
 0x461   : > { %4885 = vsyncadd (%p4032_p7), [#allocation6], 4294966272 }
 0x462 PF: > { %s23_s23 = sadd.s32 1, %s4908_s23   ;;  %s5768_s13 = sld [smem:[#allocation17_spill]] }
 0x463   : > { %p20_p4 = scmp.ge.s32.totalorder %s23_s23, 6   ;;  %s5769_s18 = smov %s4892_s19 }
 0x464   : > { %s5770_s19 = smov %s4896_s20  ;;  %s5771_s20 = smov %s4995_s30 }
 0x465   : > { %s5772_s21 = smov %s4904_s22  ;;  %22 = sbr.rel (!%p20_p4) target bundleno = 11 (0xb), region = 118 }
 0x468   : > { %s5773_s22 = smov %s5768_s13 }
 0x46c   :  { %3437 = vsyncpa [#allocation5], 1 }
 0x46d   :  { %3439 = vsyncpa [#allocation5 + $0x1], 1 }
 0x46e   :  { %3440 = vsyncpa [#allocation8], 1 }
 0x46f   :  { %3442 = vsyncpa [#allocation8 + $0x1], 1 }
 0x470   :  { %3443 = vsyncpa [#allocation11], 1 }
 0x471   :  { %3445 = vsyncpa [#allocation11 + $0x1], 1 }
 0x472   :  { %3446 = vsyncpa [#allocation6], 1 }
 0x473   :  { %3448 = vsyncpa [#allocation6 + $0x1], 1 }

</bundles_post_ra>
